<compile_context>
chip_gen: v5e
topology: v5e:2x2
jax: 0.10.0
libtpu: 0.0.40
codegen_flags: <defaults>
</compile_context>

<pallas_src>
import numpy as np
import jax
import jax.numpy as jnp
from jax.experimental import pallas as pl
from jax.experimental.pallas import tpu as pltpu

BP = 8  # padded batch rows (sublane alignment)


# ----------------------------------------------------------------------------
# One-time parameter folding (plain JAX): BN -> conv weights, LSTM transposes,
# gate reorder (i,f,g,o) -> (i,f,o,g), decoder output-layer fold.
# ----------------------------------------------------------------------------
def _fold_params(params, cin_pad):
    eps = 1e-5

    def fold_conv(w, bn, cinp):
        cout, cin, k = w.shape
        w_mat = jnp.transpose(w, (2, 1, 0))                 # (K, Cin, Cout)
        if cinp > cin:
            w_mat = jnp.pad(w_mat, ((0, 0), (0, cinp - cin), (0, 0)))
        w_mat = w_mat.reshape(k * cinp, cout)               # (K*CinP, Cout)
        s = bn["gamma"] * jax.lax.rsqrt(bn["var"] + eps)
        return w_mat * s[None, :], (bn["beta"] - bn["mean"] * s).reshape(1, cout)

    w1, b1 = fold_conv(params["w1"], params["bn1"], cin_pad)
    w2, b2 = fold_conv(params["w2"], params["bn2"], params["w2"].shape[1])
    w3, b3 = fold_conv(params["w3"], params["bn3"], params["w3"].shape[1])

    enc, dec, out = params["enc"], params["dec"], params["out"]
    H = enc["whh"].shape[1]
    # PyTorch gate order (i, f, g, o) -> kernel order (i, f, o, g)
    perm = jnp.concatenate([jnp.arange(0, 2 * H),
                            jnp.arange(3 * H, 4 * H),
                            jnp.arange(2 * H, 3 * H)])

    wih_enc = enc["wih"].T[:, perm]                          # (F, 4H)
    whh_enc = enc["whh"].T[:, perm]                          # (H, 4H)
    b_enc = (enc["bih"] + enc["bhh"])[perm].reshape(1, -1)

    wout_t = out["w"].T                                      # (H, F)
    bout = out["b"].reshape(1, -1)                           # (1, F)
    wih_dec = dec["wih"].T                                   # (F, 4H)
    whh_dec = dec["whh"].T                                   # (H, 4H)
    w_rec = (wout_t @ wih_dec + whh_dec)[:, perm]            # (H, 4H) folded
    b_rec = (out["b"] @ wih_dec + dec["bih"] + dec["bhh"])[perm].reshape(1, -1)

    return dict(w1=w1, b1=b1, w2=w2, b2=b2, w3=w3, b3=b3,
                wih_enc=wih_enc, whh_enc=whh_enc, b_enc=b_enc,
                w_rec=w_rec, b_rec=b_rec, wout=wout_t, bout=bout)


# ----------------------------------------------------------------------------
# Fused forward: single pallas_call
# ----------------------------------------------------------------------------
def lstm_autoencoder_forward(x_in, params, cfg):
    """x_in: (B, L, C_in) float32 -> (B, L, final_out_channels) float32."""
    K, S = cfg["kernel_size"], cfg["stride"]
    H = cfg["hidden_size"]
    F = cfg["final_out_channels"]
    assert S == 1, "only stride=1 supported"
    # TODO(synk): even kernel_size changes PyTorch 'same' output length; odd only.
    assert K % 2 == 1, "only odd kernel_size supported"
    # TODO(synk): num_layers > 1 LSTM stacking not implemented.
    assert cfg.get("n_layers", 1) == 1, "only 1-layer LSTMs supported"

    B, L, Cin = x_in.shape
    assert B <= BP, "batch > 8 not supported by this single-tile kernel"
    CinP = ((Cin + 7) // 8) * 8
    C1 = params["w1"].shape[0]          # 32
    C2 = params["w2"].shape[0]          # 64
    p = K // 2
    LBP = L * BP
    LpP = (L + 2 * p) * BP

    fp = _fold_params(params, CinP)

    # Input layout glue (tiny, one-time): (B, L, Cin) -> time-major, batch and
    # channel zero-padded rows ((L+2p)*8, CinP), row index = l_pad * 8 + b.
    x_t = jnp.transpose(x_in, (1, 0, 2))                     # (L, B, Cin)
    x_t = jnp.pad(x_t, ((p, p), (0, BP - B), (0, CinP - Cin)))
    x_rows = x_t.reshape(LpP, CinP)

    def kernel(xpad_ref, w1_ref, b1_ref, w2_ref, b2_ref, w3_ref, b3_ref,
               wih_ref, whh_ref, benc_ref, wrec_ref, brec_ref,
               wout_ref, bout_ref, out_ref,
               pad2_ref, pad3_ref, xproj_ref, hbuf_ref):

        def conv_relu(src_ref, w_ref, b_ref, cinp):
            # 'same' conv as a sum of K shifted (L*8, cinp) x (cinp, cout)
            # matmuls; every slice start is a multiple of 8 sublanes.
            acc = None
            for k in range(K):
                xk = src_ref[k * BP:k * BP + LBP, :]
                wk = w_ref[k * cinp:(k + 1) * cinp, :]
                d = jnp.dot(xk, wk, preferred_element_type=jnp.float32)
                acc = d if acc is None else acc + d
            return jnp.maximum(acc + b_ref[...], 0.0)

        # --- conv stack (BN folded into weights; eval mode, dropout = id) ---
        h1 = conv_relu(xpad_ref, w1_ref, b1_ref, CinP)            # (LBP, C1)
        if p > 0:   # zero only the 2*p*8 border rows, middle is overwritten
            pad2_ref[0:p * BP, :] = jnp.zeros((p * BP, C1), jnp.float32)
            pad2_ref[p * BP + LBP:LpP, :] = jnp.zeros((p * BP, C1), jnp.float32)
        pad2_ref[p * BP:p * BP + LBP, :] = h1
        h2 = conv_relu(pad2_ref, w2_ref, b2_ref, C1)              # (LBP, C2)
        if p > 0:
            pad3_ref[0:p * BP, :] = jnp.zeros((p * BP, C2), jnp.float32)
            pad3_ref[p * BP + LBP:LpP, :] = jnp.zeros((p * BP, C2), jnp.float32)
        pad3_ref[p * BP:p * BP + LBP, :] = h2
        h3 = conv_relu(pad3_ref, w3_ref, b3_ref, C2)              # (LBP, F)

        def lstm_update(gates, c):
            # gate order (i, f, o, g): one sigmoid + one tanh over the gates
            # vreg, slice afterwards.
            sg = jax.nn.sigmoid(gates[:, :3 * H])
            g = jnp.tanh(gates[:, 3 * H:])
            i_g = sg[:, 0 * H:1 * H]
            f_g = sg[:, 1 * H:2 * H]
            o_g = sg[:, 2 * H:3 * H]
            c2 = f_g * c + i_g * g
            return o_g * jnp.tanh(c2), c2

        # --- LSTM encoder: input projection for all timesteps hoisted out ---
        xproj_ref[...] = jnp.dot(h3, wih_ref[...],
                                 preferred_element_type=jnp.float32) + benc_ref[...]
        whh = whh_ref[...]
        h = jnp.zeros((BP, H), jnp.float32)
        c = jnp.zeros((BP, H), jnp.float32)
        for t in range(L):                 # static unroll, 8-aligned slices
            gates = xproj_ref[t * BP:(t + 1) * BP, :] + jnp.dot(
                h, whh, preferred_element_type=jnp.float32)
            h, c = lstm_update(gates, c)

        # --- decoder: output[:, i] = Linear(h); (h, c) = LSTMCell(output[:, i])
        # Output->input chain folded into wrec/brec: the recurrent critical path
        # is one (8,H)x(H,4H) dot per step.  h_t is parked in hbuf; the output
        # matmul/store happens ONCE after the loop (single dense (L*8,H)x(H,F)).
        wrec = wrec_ref[...]
        brec = jnp.broadcast_to(brec_ref[...], (BP, 4 * H))
        for s in range(L):                 # static unroll, i = L-1 .. 0
            i = L - 1 - s
            hbuf_ref[i * BP:(i + 1) * BP, :] = h
            gates = jnp.dot(h, wrec, preferred_element_type=jnp.float32) + brec
            h, c = lstm_update(gates, c)

        out_ref[...] = (jnp.dot(hbuf_ref[...], wout_ref[...],
                                preferred_element_type=jnp.float32)
                        + jnp.broadcast_to(bout_ref[...], (LBP, F)))

    def full(shape):
        nd = len(shape)
        return pl.BlockSpec(shape, lambda i, _n=nd: (0,) * _n)

    operands = (x_rows, fp["w1"], fp["b1"], fp["w2"], fp["b2"], fp["w3"], fp["b3"],
                fp["wih_enc"], fp["whh_enc"], fp["b_enc"],
                fp["w_rec"], fp["b_rec"], fp["wout"], fp["bout"])

    out = pl.pallas_call(
        kernel,
        out_shape=jax.ShapeDtypeStruct((LBP, F), jnp.float32),   # lane-dense slab
        grid=(1,),
        in_specs=[full(tuple(o.shape)) for o in operands],
        out_specs=full((LBP, F)),
        scratch_shapes=[pltpu.VMEM((LpP, C1), jnp.float32),      # pad2
                        pltpu.VMEM((LpP, C2), jnp.float32),      # pad3
                        pltpu.VMEM((LBP, 4 * H), jnp.float32),   # xproj
                        pltpu.VMEM((LBP, H), jnp.float32)],      # decoder h buffer
        compiler_params=pltpu.CompilerParams(
            dimension_semantics=("arbitrary",)),
    )(*operands)

    # (L*8, F) -> (B, L, F): drop padded batch rows, back to batch-major.
    return jnp.transpose(out.reshape(L, BP, F)[:, :B, :], (1, 0, 2))


# ----------------------------------------------------------------------------
# Deterministic parameter init (shapes from the module __init__)
# ----------------------------------------------------------------------------
def init_params(key, cfg):
    Cin, F, H, K = (cfg["input_channels"], cfg["final_out_channels"],
                    cfg["hidden_size"], cfg["kernel_size"])
    ks = jax.random.split(key, 12)

    def u(k, shape, scale):
        return jax.random.uniform(k, shape, jnp.float32, -scale, scale)

    params = {
        "w1": u(ks[0], (32, Cin, K), (1.0 / (Cin * K)) ** 0.5),
        "w2": u(ks[1], (64, 32, K), (1.0 / (32 * K)) ** 0.5),
        "w3": u(ks[2], (F, 64, K), (1.0 / (64 * K)) ** 0.5),
    }
    for i, c in zip((1, 2, 3), (32, 64, F)):
        params[f"bn{i}"] = dict(gamma=jnp.ones((c,), jnp.float32),
                                beta=jnp.zeros((c,), jnp.float32),
                                mean=jnp.zeros((c,), jnp.float32),
                                var=jnp.ones((c,), jnp.float32))
    s = (1.0 / H) ** 0.5
    params["enc"] = dict(wih=u(ks[3], (4 * H, F), s), whh=u(ks[4], (4 * H, H), s),
                         bih=u(ks[5], (4 * H,), s), bhh=u(ks[6], (4 * H,), s))
    params["dec"] = dict(wih=u(ks[7], (4 * H, F), s), whh=u(ks[8], (4 * H, H), s),
                         bih=u(ks[9], (4 * H,), s), bhh=u(ks[10], (4 * H,), s))
    params["out"] = dict(w=u(ks[11], (F, H), s), b=jnp.zeros((F,), jnp.float32))
    return params


# ----------------------------------------------------------------------------
# Pure-JAX reference (unfolded math, PyTorch gate order) for correctness check
# ----------------------------------------------------------------------------
def reference_forward(x_in, params, cfg):
    K = cfg["kernel_size"]

    def conv_bn_relu(x, w, bn):
        B, L, Cin = x.shape
        Cout = w.shape[0]
        p = K // 2
        x_pad = jnp.pad(x, ((0, 0), (p, p), (0, 0)))
        x_col = jnp.stack([x_pad[:, k:k + L, :] for k in range(K)], axis=2)
        x_col = x_col.reshape(B, L, K * Cin)
        w_mat = jnp.transpose(w, (2, 1, 0)).reshape(K * Cin, Cout)
        y = jnp.einsum("blk,ko->blo", x_col, w_mat)
        y = (y - bn["mean"]) / jnp.sqrt(bn["var"] + 1e-5) * bn["gamma"] + bn["beta"]
        return jnp.maximum(y, 0.0)

    x = conv_bn_relu(x_in, params["w1"], params["bn1"])
    x = conv_bn_relu(x, params["w2"], params["bn2"])
    x = conv_bn_relu(x, params["w3"], params["bn3"])
    B, L, _F = x.shape
    H = cfg["hidden_size"]

    def cell(h, c, xt, p):
        gates = xt @ p["wih"].T + p["bih"] + h @ p["whh"].T + p["bhh"]
        ig, fg, gg, og = jnp.split(gates, 4, axis=-1)
        c2 = jax.nn.sigmoid(fg) * c + jax.nn.sigmoid(ig) * jnp.tanh(gg)
        return jax.nn.sigmoid(og) * jnp.tanh(c2), c2

    h = jnp.zeros((B, H), jnp.float32)
    c = jnp.zeros((B, H), jnp.float32)
    for t in range(L):
        h, c = cell(h, c, x[:, t], params["enc"])
    outs = [None] * L
    for i in reversed(range(L)):
        o_i = h @ params["out"]["w"].T + params["out"]["b"]
        outs[i] = o_i
        h, c = cell(h, c, o_i, params["dec"])
    return jnp.stack(outs, axis=1)


if __name__ == "__main__":
    cfg = dict(input_channels=4, final_out_channels=16, hidden_size=32,
               n_layers=1, kernel_size=3, stride=1, dropout=0.0)
    key = jax.random.PRNGKey(0)
    pkey, xkey = jax.random.split(key)
    params = init_params(pkey, cfg)

    B, L = 2, 16
    x_in = jax.random.normal(xkey, (B, L, cfg["input_channels"]), jnp.float32)

    fwd = jax.jit(lambda x: lstm_autoencoder_forward(x, params, cfg))
    out = jax.block_until_ready(fwd(x_in))
    assert out.shape == (B, L, cfg["final_out_channels"])

    ref = reference_forward(x_in, params, cfg)
    np.testing.assert_allclose(np.asarray(out), np.asarray(ref), rtol=2e-3, atol=2e-3)

    print("KERNEL_OK")
</pallas_src>

<mosaic_0001>
module attributes {stable_mosaic.version = 11 : i64} {
  func.func @kernel(%arg0: i32, %arg1: memref<144x8xf32, #tpu.memory_space<vmem>>, %arg2: memref<24x32xf32, #tpu.memory_space<vmem>>, %arg3: memref<1x32xf32, #tpu.memory_space<vmem>>, %arg4: memref<96x64xf32, #tpu.memory_space<vmem>>, %arg5: memref<1x64xf32, #tpu.memory_space<vmem>>, %arg6: memref<192x16xf32, #tpu.memory_space<vmem>>, %arg7: memref<1x16xf32, #tpu.memory_space<vmem>>, %arg8: memref<16x128xf32, #tpu.memory_space<vmem>>, %arg9: memref<32x128xf32, #tpu.memory_space<vmem>>, %arg10: memref<1x128xf32, #tpu.memory_space<vmem>>, %arg11: memref<32x128xf32, #tpu.memory_space<vmem>>, %arg12: memref<1x128xf32, #tpu.memory_space<vmem>>, %arg13: memref<32x16xf32, #tpu.memory_space<vmem>>, %arg14: memref<1x16xf32, #tpu.memory_space<vmem>>, %arg15: memref<128x16xf32, #tpu.memory_space<vmem>>, %arg16: memref<144x32xf32, #tpu.memory_space<vmem>>, %arg17: memref<144x64xf32, #tpu.memory_space<vmem>>, %arg18: memref<128x128xf32, #tpu.memory_space<vmem>>, %arg19: memref<128x32xf32, #tpu.memory_space<vmem>>) attributes {dimension_semantics = [#tpu.dimension_semantics<arbitrary>], iteration_bounds = array<i64: 1>, scalar_prefetch = 0 : i64, scratch_operands = 4 : i64, tpu.core_type = #tpu.core_type<tc>, window_params = [{pipeline_mode = #tpu.pipeline_mode<synchronous>, transform_indices = @transform_0, window_bounds = array<i64: 144, 8>}, {pipeline_mode = #tpu.pipeline_mode<synchronous>, transform_indices = @transform_1, window_bounds = array<i64: 24, 32>}, {pipeline_mode = #tpu.pipeline_mode<synchronous>, transform_indices = @transform_2, window_bounds = array<i64: 1, 32>}, {pipeline_mode = #tpu.pipeline_mode<synchronous>, transform_indices = @transform_3, window_bounds = array<i64: 96, 64>}, {pipeline_mode = #tpu.pipeline_mode<synchronous>, transform_indices = @transform_4, window_bounds = array<i64: 1, 64>}, {pipeline_mode = #tpu.pipeline_mode<synchronous>, transform_indices = @transform_5, window_bounds = array<i64: 192, 16>}, {pipeline_mode = #tpu.pipeline_mode<synchronous>, transform_indices = @transform_6, window_bounds = array<i64: 1, 16>}, {pipeline_mode = #tpu.pipeline_mode<synchronous>, transform_indices = @transform_7, window_bounds = array<i64: 16, 128>}, {pipeline_mode = #tpu.pipeline_mode<synchronous>, transform_indices = @transform_8, window_bounds = array<i64: 32, 128>}, {pipeline_mode = #tpu.pipeline_mode<synchronous>, transform_indices = @transform_9, window_bounds = array<i64: 1, 128>}, {pipeline_mode = #tpu.pipeline_mode<synchronous>, transform_indices = @transform_10, window_bounds = array<i64: 32, 128>}, {pipeline_mode = #tpu.pipeline_mode<synchronous>, transform_indices = @transform_11, window_bounds = array<i64: 1, 128>}, {pipeline_mode = #tpu.pipeline_mode<synchronous>, transform_indices = @transform_12, window_bounds = array<i64: 32, 16>}, {pipeline_mode = #tpu.pipeline_mode<synchronous>, transform_indices = @transform_13, window_bounds = array<i64: 1, 16>}, {pipeline_mode = #tpu.pipeline_mode<synchronous>, transform_indices = @transform_14, window_bounds = array<i64: 128, 16>}]} {
    %c0 = arith.constant 0 : index
    %c0_0 = arith.constant 0 : index
    %0 = vector.load %arg1[%c0, %c0_0] : memref<144x8xf32, #tpu.memory_space<vmem>>, vector<128x8xf32>
    %c0_1 = arith.constant 0 : index
    %c0_2 = arith.constant 0 : index
    %1 = vector.load %arg2[%c0_1, %c0_2] : memref<24x32xf32, #tpu.memory_space<vmem>>, vector<8x32xf32>
    %cst = arith.constant dense<0.000000e+00> : vector<128x32xf32>
    %2 = tpu.matmul %0, %1, %cst {dimension_numbers = #tpu.dot_dimension_numbers<[1], [0], [0], [1], [0, 0, 1, 1], [], []>} : vector<128x8xf32>, vector<8x32xf32>, vector<128x32xf32> -> vector<128x32xf32>
    %c8 = arith.constant 8 : index
    %c0_3 = arith.constant 0 : index
    %3 = vector.load %arg1[%c8, %c0_3] : memref<144x8xf32, #tpu.memory_space<vmem>>, vector<128x8xf32>
    %c8_4 = arith.constant 8 : index
    %c0_5 = arith.constant 0 : index
    %4 = vector.load %arg2[%c8_4, %c0_5] : memref<24x32xf32, #tpu.memory_space<vmem>>, vector<8x32xf32>
    %cst_6 = arith.constant dense<0.000000e+00> : vector<128x32xf32>
    %5 = tpu.matmul %3, %4, %cst_6 {dimension_numbers = #tpu.dot_dimension_numbers<[1], [0], [0], [1], [0, 0, 1, 1], [], []>} : vector<128x8xf32>, vector<8x32xf32>, vector<128x32xf32> -> vector<128x32xf32>
    %6 = arith.addf %2, %5 : vector<128x32xf32>
    %c16 = arith.constant 16 : index
    %c0_7 = arith.constant 0 : index
    %7 = vector.load %arg1[%c16, %c0_7] : memref<144x8xf32, #tpu.memory_space<vmem>>, vector<128x8xf32>
    %c16_8 = arith.constant 16 : index
    %c0_9 = arith.constant 0 : index
    %8 = vector.load %arg2[%c16_8, %c0_9] : memref<24x32xf32, #tpu.memory_space<vmem>>, vector<8x32xf32>
    %cst_10 = arith.constant dense<0.000000e+00> : vector<128x32xf32>
    %9 = tpu.matmul %7, %8, %cst_10 {dimension_numbers = #tpu.dot_dimension_numbers<[1], [0], [0], [1], [0, 0, 1, 1], [], []>} : vector<128x8xf32>, vector<8x32xf32>, vector<128x32xf32> -> vector<128x32xf32>
    %10 = arith.addf %6, %9 : vector<128x32xf32>
    %c0_11 = arith.constant 0 : index
    %c0_12 = arith.constant 0 : index
    %11 = vector.load %arg3[%c0_11, %c0_12] : memref<1x32xf32, #tpu.memory_space<vmem>>, vector<1x32xf32>
    %12 = vector.broadcast %11 : vector<1x32xf32> to vector<128x32xf32>
    %13 = arith.addf %10, %12 : vector<128x32xf32>
    %cst_13 = arith.constant 0.000000e+00 : f32
    %14 = vector.broadcast %cst_13 : f32 to vector<128x32xf32>
    %15 = arith.maximumf %13, %14 : vector<128x32xf32>
    %cst_14 = arith.constant 0.000000e+00 : f32
    %16 = vector.broadcast %cst_14 : f32 to vector<8x32xf32>
    %c0_15 = arith.constant 0 : index
    %c0_16 = arith.constant 0 : index
    %17 = vector.load %arg16[%c0_15, %c0_16] : memref<144x32xf32, #tpu.memory_space<vmem>>, vector<8x32xf32>
    tpu.vector_store %arg16[%c0_15, %c0_16], %16 {strides = array<i32>} : memref<144x32xf32, #tpu.memory_space<vmem>>, vector<8x32xf32>,
    %cst_17 = arith.constant 0.000000e+00 : f32
    %18 = vector.broadcast %cst_17 : f32 to vector<8x32xf32>
    %c136 = arith.constant 136 : index
    %c0_18 = arith.constant 0 : index
    %19 = vector.load %arg16[%c136, %c0_18] : memref<144x32xf32, #tpu.memory_space<vmem>>, vector<8x32xf32>
    tpu.vector_store %arg16[%c136, %c0_18], %18 {strides = array<i32>} : memref<144x32xf32, #tpu.memory_space<vmem>>, vector<8x32xf32>,
    %c8_19 = arith.constant 8 : index
    %c0_20 = arith.constant 0 : index
    %20 = vector.load %arg16[%c8_19, %c0_20] : memref<144x32xf32, #tpu.memory_space<vmem>>, vector<128x32xf32>
    tpu.vector_store %arg16[%c8_19, %c0_20], %15 {strides = array<i32>} : memref<144x32xf32, #tpu.memory_space<vmem>>, vector<128x32xf32>,
    %c0_21 = arith.constant 0 : index
    %c0_22 = arith.constant 0 : index
    %21 = vector.load %arg16[%c0_21, %c0_22] : memref<144x32xf32, #tpu.memory_space<vmem>>, vector<128x32xf32>
    %c0_23 = arith.constant 0 : index
    %c0_24 = arith.constant 0 : index
    %22 = vector.load %arg4[%c0_23, %c0_24] : memref<96x64xf32, #tpu.memory_space<vmem>>, vector<32x64xf32>
    %cst_25 = arith.constant dense<0.000000e+00> : vector<128x64xf32>
    %23 = tpu.matmul %21, %22, %cst_25 {dimension_numbers = #tpu.dot_dimension_numbers<[1], [0], [0], [1], [0, 0, 1, 1], [], []>} : vector<128x32xf32>, vector<32x64xf32>, vector<128x64xf32> -> vector<128x64xf32>
    %c8_26 = arith.constant 8 : index
    %c0_27 = arith.constant 0 : index
    %24 = vector.load %arg16[%c8_26, %c0_27] : memref<144x32xf32, #tpu.memory_space<vmem>>, vector<128x32xf32>
    %c32 = arith.constant 32 : index
    %c0_28 = arith.constant 0 : index
    %25 = vector.load %arg4[%c32, %c0_28] : memref<96x64xf32, #tpu.memory_space<vmem>>, vector<32x64xf32>
    %cst_29 = arith.constant dense<0.000000e+00> : vector<128x64xf32>
    %26 = tpu.matmul %24, %25, %cst_29 {dimension_numbers = #tpu.dot_dimension_numbers<[1], [0], [0], [1], [0, 0, 1, 1], [], []>} : vector<128x32xf32>, vector<32x64xf32>, vector<128x64xf32> -> vector<128x64xf32>
    %27 = arith.addf %23, %26 : vector<128x64xf32>
    %c16_30 = arith.constant 16 : index
    %c0_31 = arith.constant 0 : index
    %28 = vector.load %arg16[%c16_30, %c0_31] : memref<144x32xf32, #tpu.memory_space<vmem>>, vector<128x32xf32>
    %c64 = arith.constant 64 : index
    %c0_32 = arith.constant 0 : index
    %29 = vector.load %arg4[%c64, %c0_32] : memref<96x64xf32, #tpu.memory_space<vmem>>, vector<32x64xf32>
    %cst_33 = arith.constant dense<0.000000e+00> : vector<128x64xf32>
    %30 = tpu.matmul %28, %29, %cst_33 {dimension_numbers = #tpu.dot_dimension_numbers<[1], [0], [0], [1], [0, 0, 1, 1], [], []>} : vector<128x32xf32>, vector<32x64xf32>, vector<128x64xf32> -> vector<128x64xf32>
    %31 = arith.addf %27, %30 : vector<128x64xf32>
    %c0_34 = arith.constant 0 : index
    %c0_35 = arith.constant 0 : index
    %32 = vector.load %arg5[%c0_34, %c0_35] : memref<1x64xf32, #tpu.memory_space<vmem>>, vector<1x64xf32>
    %33 = vector.broadcast %32 : vector<1x64xf32> to vector<128x64xf32>
    %34 = arith.addf %31, %33 : vector<128x64xf32>
    %cst_36 = arith.constant 0.000000e+00 : f32
    %35 = vector.broadcast %cst_36 : f32 to vector<128x64xf32>
    %36 = arith.maximumf %34, %35 : vector<128x64xf32>
    %cst_37 = arith.constant 0.000000e+00 : f32
    %37 = vector.broadcast %cst_37 : f32 to vector<8x64xf32>
    %c0_38 = arith.constant 0 : index
    %c0_39 = arith.constant 0 : index
    %38 = vector.load %arg17[%c0_38, %c0_39] : memref<144x64xf32, #tpu.memory_space<vmem>>, vector<8x64xf32>
    tpu.vector_store %arg17[%c0_38, %c0_39], %37 {strides = array<i32>} : memref<144x64xf32, #tpu.memory_space<vmem>>, vector<8x64xf32>,
    %cst_40 = arith.constant 0.000000e+00 : f32
    %39 = vector.broadcast %cst_40 : f32 to vector<8x64xf32>
    %c136_41 = arith.constant 136 : index
    %c0_42 = arith.constant 0 : index
    %40 = vector.load %arg17[%c136_41, %c0_42] : memref<144x64xf32, #tpu.memory_space<vmem>>, vector<8x64xf32>
    tpu.vector_store %arg17[%c136_41, %c0_42], %39 {strides = array<i32>} : memref<144x64xf32, #tpu.memory_space<vmem>>, vector<8x64xf32>,
    %c8_43 = arith.constant 8 : index
    %c0_44 = arith.constant 0 : index
    %41 = vector.load %arg17[%c8_43, %c0_44] : memref<144x64xf32, #tpu.memory_space<vmem>>, vector<128x64xf32>
    tpu.vector_store %arg17[%c8_43, %c0_44], %36 {strides = array<i32>} : memref<144x64xf32, #tpu.memory_space<vmem>>, vector<128x64xf32>,
    %c0_45 = arith.constant 0 : index
    %c0_46 = arith.constant 0 : index
    %42 = vector.load %arg17[%c0_45, %c0_46] : memref<144x64xf32, #tpu.memory_space<vmem>>, vector<128x64xf32>
    %c0_47 = arith.constant 0 : index
    %c0_48 = arith.constant 0 : index
    %43 = vector.load %arg6[%c0_47, %c0_48] : memref<192x16xf32, #tpu.memory_space<vmem>>, vector<64x16xf32>
    %cst_49 = arith.constant dense<0.000000e+00> : vector<128x16xf32>
    %44 = tpu.matmul %42, %43, %cst_49 {dimension_numbers = #tpu.dot_dimension_numbers<[1], [0], [0], [1], [0, 0, 1, 1], [], []>} : vector<128x64xf32>, vector<64x16xf32>, vector<128x16xf32> -> vector<128x16xf32>
    %c8_50 = arith.constant 8 : index
    %c0_51 = arith.constant 0 : index
    %45 = vector.load %arg17[%c8_50, %c0_51] : memref<144x64xf32, #tpu.memory_space<vmem>>, vector<128x64xf32>
    %c64_52 = arith.constant 64 : index
    %c0_53 = arith.constant 0 : index
    %46 = vector.load %arg6[%c64_52, %c0_53] : memref<192x16xf32, #tpu.memory_space<vmem>>, vector<64x16xf32>
    %cst_54 = arith.constant dense<0.000000e+00> : vector<128x16xf32>
    %47 = tpu.matmul %45, %46, %cst_54 {dimension_numbers = #tpu.dot_dimension_numbers<[1], [0], [0], [1], [0, 0, 1, 1], [], []>} : vector<128x64xf32>, vector<64x16xf32>, vector<128x16xf32> -> vector<128x16xf32>
    %48 = arith.addf %44, %47 : vector<128x16xf32>
    %c16_55 = arith.constant 16 : index
    %c0_56 = arith.constant 0 : index
    %49 = vector.load %arg17[%c16_55, %c0_56] : memref<144x64xf32, #tpu.memory_space<vmem>>, vector<128x64xf32>
    %c128 = arith.constant 128 : index
    %c0_57 = arith.constant 0 : index
    %50 = vector.load %arg6[%c128, %c0_57] : memref<192x16xf32, #tpu.memory_space<vmem>>, vector<64x16xf32>
    %cst_58 = arith.constant dense<0.000000e+00> : vector<128x16xf32>
    %51 = tpu.matmul %49, %50, %cst_58 {dimension_numbers = #tpu.dot_dimension_numbers<[1], [0], [0], [1], [0, 0, 1, 1], [], []>} : vector<128x64xf32>, vector<64x16xf32>, vector<128x16xf32> -> vector<128x16xf32>
    %52 = arith.addf %48, %51 : vector<128x16xf32>
    %c0_59 = arith.constant 0 : index
    %c0_60 = arith.constant 0 : index
    %53 = vector.load %arg7[%c0_59, %c0_60] : memref<1x16xf32, #tpu.memory_space<vmem>>, vector<1x16xf32>
    %54 = vector.broadcast %53 : vector<1x16xf32> to vector<128x16xf32>
    %55 = arith.addf %52, %54 : vector<128x16xf32>
    %cst_61 = arith.constant 0.000000e+00 : f32
    %56 = vector.broadcast %cst_61 : f32 to vector<128x16xf32>
    %57 = arith.maximumf %55, %56 : vector<128x16xf32>
    %c0_62 = arith.constant 0 : index
    %c0_63 = arith.constant 0 : index
    %58 = vector.load %arg8[%c0_62, %c0_63] : memref<16x128xf32, #tpu.memory_space<vmem>>, vector<16x128xf32>
    %cst_64 = arith.constant dense<0.000000e+00> : vector<128x128xf32>
    %59 = tpu.matmul %57, %58, %cst_64 {dimension_numbers = #tpu.dot_dimension_numbers<[1], [0], [0], [1], [0, 0, 1, 1], [], []>} : vector<128x16xf32>, vector<16x128xf32>, vector<128x128xf32> -> vector<128x128xf32>
    %c0_65 = arith.constant 0 : index
    %c0_66 = arith.constant 0 : index
    %60 = vector.load %arg10[%c0_65, %c0_66] : memref<1x128xf32, #tpu.memory_space<vmem>>, vector<1x128xf32>
    %61 = vector.broadcast %60 : vector<1x128xf32> to vector<128x128xf32>
    %62 = arith.addf %59, %61 : vector<128x128xf32>
    %c0_67 = arith.constant 0 : index
    %c0_68 = arith.constant 0 : index
    %63 = vector.load %arg18[%c0_67, %c0_68] : memref<128x128xf32, #tpu.memory_space<vmem>>, vector<128x128xf32>
    tpu.vector_store %arg18[%c0_67, %c0_68], %62 {strides = array<i32>} : memref<128x128xf32, #tpu.memory_space<vmem>>, vector<128x128xf32>,
    %c0_69 = arith.constant 0 : index
    %c0_70 = arith.constant 0 : index
    %64 = vector.load %arg9[%c0_69, %c0_70] : memref<32x128xf32, #tpu.memory_space<vmem>>, vector<32x128xf32>
    %cst_71 = arith.constant 0.000000e+00 : f32
    %65 = vector.broadcast %cst_71 : f32 to vector<8x32xf32>
    %cst_72 = arith.constant 0.000000e+00 : f32
    %66 = vector.broadcast %cst_72 : f32 to vector<8x32xf32>
    %c0_73 = arith.constant 0 : index
    %c0_74 = arith.constant 0 : index
    %67 = vector.load %arg18[%c0_73, %c0_74] : memref<128x128xf32, #tpu.memory_space<vmem>>, vector<8x128xf32>
    %cst_75 = arith.constant dense<0.000000e+00> : vector<8x128xf32>
    %68 = tpu.matmul %65, %64, %cst_75 {dimension_numbers = #tpu.dot_dimension_numbers<[1], [0], [0], [1], [0, 0, 1, 1], [], []>} : vector<8x32xf32>, vector<32x128xf32>, vector<8x128xf32> -> vector<8x128xf32>
    %69 = arith.addf %67, %68 : vector<8x128xf32>
    %70 = vector.extract_strided_slice %69 {offsets = [0, 0], sizes = [8, 96], strides = [1, 1]} : vector<8x128xf32> to vector<8x96xf32>
    %71 = arith.negf %70 : vector<8x96xf32>
    %72 = math.exp %71 : vector<8x96xf32>
    %cst_76 = arith.constant 1.000000e+00 : f32
    %73 = vector.broadcast %cst_76 : f32 to vector<8x96xf32>
    %74 = arith.addf %73, %72 : vector<8x96xf32>
    %75 = arith.divf %73, %74 : vector<8x96xf32>
    %76 = vector.extract_strided_slice %69 {offsets = [0, 96], sizes = [8, 32], strides = [1, 1]} : vector<8x128xf32> to vector<8x32xf32>
    %77 = math.tanh %76 : vector<8x32xf32>
    %78 = vector.extract_strided_slice %75 {offsets = [0, 0], sizes = [8, 32], strides = [1, 1]} : vector<8x96xf32> to vector<8x32xf32>
    %79 = vector.extract_strided_slice %75 {offsets = [0, 32], sizes = [8, 32], strides = [1, 1]} : vector<8x96xf32> to vector<8x32xf32>
    %80 = vector.extract_strided_slice %75 {offsets = [0, 64], sizes = [8, 32], strides = [1, 1]} : vector<8x96xf32> to vector<8x32xf32>
    %81 = arith.mulf %79, %66 : vector<8x32xf32>
    %82 = arith.mulf %78, %77 : vector<8x32xf32>
    %83 = arith.addf %81, %82 : vector<8x32xf32>
    %84 = math.tanh %83 : vector<8x32xf32>
    %85 = arith.mulf %80, %84 : vector<8x32xf32>
    %c8_77 = arith.constant 8 : index
    %c0_78 = arith.constant 0 : index
    %86 = vector.load %arg18[%c8_77, %c0_78] : memref<128x128xf32, #tpu.memory_space<vmem>>, vector<8x128xf32>
    %cst_79 = arith.constant dense<0.000000e+00> : vector<8x128xf32>
    %87 = tpu.matmul %85, %64, %cst_79 {dimension_numbers = #tpu.dot_dimension_numbers<[1], [0], [0], [1], [0, 0, 1, 1], [], []>} : vector<8x32xf32>, vector<32x128xf32>, vector<8x128xf32> -> vector<8x128xf32>
    %88 = arith.addf %86, %87 : vector<8x128xf32>
    %89 = vector.extract_strided_slice %88 {offsets = [0, 0], sizes = [8, 96], strides = [1, 1]} : vector<8x128xf32> to vector<8x96xf32>
    %90 = arith.negf %89 : vector<8x96xf32>
    %91 = math.exp %90 : vector<8x96xf32>
    %cst_80 = arith.constant 1.000000e+00 : f32
    %92 = vector.broadcast %cst_80 : f32 to vector<8x96xf32>
    %93 = arith.addf %92, %91 : vector<8x96xf32>
    %94 = arith.divf %92, %93 : vector<8x96xf32>
    %95 = vector.extract_strided_slice %88 {offsets = [0, 96], sizes = [8, 32], strides = [1, 1]} : vector<8x128xf32> to vector<8x32xf32>
    %96 = math.tanh %95 : vector<8x32xf32>
    %97 = vector.extract_strided_slice %94 {offsets = [0, 0], sizes = [8, 32], strides = [1, 1]} : vector<8x96xf32> to vector<8x32xf32>
    %98 = vector.extract_strided_slice %94 {offsets = [0, 32], sizes = [8, 32], strides = [1, 1]} : vector<8x96xf32> to vector<8x32xf32>
    %99 = vector.extract_strided_slice %94 {offsets = [0, 64], sizes = [8, 32], strides = [1, 1]} : vector<8x96xf32> to vector<8x32xf32>
    %100 = arith.mulf %98, %83 : vector<8x32xf32>
    %101 = arith.mulf %97, %96 : vector<8x32xf32>
    %102 = arith.addf %100, %101 : vector<8x32xf32>
    %103 = math.tanh %102 : vector<8x32xf32>
    %104 = arith.mulf %99, %103 : vector<8x32xf32>
    %c16_81 = arith.constant 16 : index
    %c0_82 = arith.constant 0 : index
    %105 = vector.load %arg18[%c16_81, %c0_82] : memref<128x128xf32, #tpu.memory_space<vmem>>, vector<8x128xf32>
    %cst_83 = arith.constant dense<0.000000e+00> : vector<8x128xf32>
    %106 = tpu.matmul %104, %64, %cst_83 {dimension_numbers = #tpu.dot_dimension_numbers<[1], [0], [0], [1], [0, 0, 1, 1], [], []>} : vector<8x32xf32>, vector<32x128xf32>, vector<8x128xf32> -> vector<8x128xf32>
    %107 = arith.addf %105, %106 : vector<8x128xf32>
    %108 = vector.extract_strided_slice %107 {offsets = [0, 0], sizes = [8, 96], strides = [1, 1]} : vector<8x128xf32> to vector<8x96xf32>
    %109 = arith.negf %108 : vector<8x96xf32>
    %110 = math.exp %109 : vector<8x96xf32>
    %cst_84 = arith.constant 1.000000e+00 : f32
    %111 = vector.broadcast %cst_84 : f32 to vector<8x96xf32>
    %112 = arith.addf %111, %110 : vector<8x96xf32>
    %113 = arith.divf %111, %112 : vector<8x96xf32>
    %114 = vector.extract_strided_slice %107 {offsets = [0, 96], sizes = [8, 32], strides = [1, 1]} : vector<8x128xf32> to vector<8x32xf32>
    %115 = math.tanh %114 : vector<8x32xf32>
    %116 = vector.extract_strided_slice %113 {offsets = [0, 0], sizes = [8, 32], strides = [1, 1]} : vector<8x96xf32> to vector<8x32xf32>
    %117 = vector.extract_strided_slice %113 {offsets = [0, 32], sizes = [8, 32], strides = [1, 1]} : vector<8x96xf32> to vector<8x32xf32>
    %118 = vector.extract_strided_slice %113 {offsets = [0, 64], sizes = [8, 32], strides = [1, 1]} : vector<8x96xf32> to vector<8x32xf32>
    %119 = arith.mulf %117, %102 : vector<8x32xf32>
    %120 = arith.mulf %116, %115 : vector<8x32xf32>
    %121 = arith.addf %119, %120 : vector<8x32xf32>
    %122 = math.tanh %121 : vector<8x32xf32>
    %123 = arith.mulf %118, %122 : vector<8x32xf32>
    %c24 = arith.constant 24 : index
    %c0_85 = arith.constant 0 : index
    %124 = vector.load %arg18[%c24, %c0_85] : memref<128x128xf32, #tpu.memory_space<vmem>>, vector<8x128xf32>
    %cst_86 = arith.constant dense<0.000000e+00> : vector<8x128xf32>
    %125 = tpu.matmul %123, %64, %cst_86 {dimension_numbers = #tpu.dot_dimension_numbers<[1], [0], [0], [1], [0, 0, 1, 1], [], []>} : vector<8x32xf32>, vector<32x128xf32>, vector<8x128xf32> -> vector<8x128xf32>
    %126 = arith.addf %124, %125 : vector<8x128xf32>
    %127 = vector.extract_strided_slice %126 {offsets = [0, 0], sizes = [8, 96], strides = [1, 1]} : vector<8x128xf32> to vector<8x96xf32>
    %128 = arith.negf %127 : vector<8x96xf32>
    %129 = math.exp %128 : vector<8x96xf32>
    %cst_87 = arith.constant 1.000000e+00 : f32
    %130 = vector.broadcast %cst_87 : f32 to vector<8x96xf32>
    %131 = arith.addf %130, %129 : vector<8x96xf32>
    %132 = arith.divf %130, %131 : vector<8x96xf32>
    %133 = vector.extract_strided_slice %126 {offsets = [0, 96], sizes = [8, 32], strides = [1, 1]} : vector<8x128xf32> to vector<8x32xf32>
    %134 = math.tanh %133 : vector<8x32xf32>
    %135 = vector.extract_strided_slice %132 {offsets = [0, 0], sizes = [8, 32], strides = [1, 1]} : vector<8x96xf32> to vector<8x32xf32>
    %136 = vector.extract_strided_slice %132 {offsets = [0, 32], sizes = [8, 32], strides = [1, 1]} : vector<8x96xf32> to vector<8x32xf32>
    %137 = vector.extract_strided_slice %132 {offsets = [0, 64], sizes = [8, 32], strides = [1, 1]} : vector<8x96xf32> to vector<8x32xf32>
    %138 = arith.mulf %136, %121 : vector<8x32xf32>
    %139 = arith.mulf %135, %134 : vector<8x32xf32>
    %140 = arith.addf %138, %139 : vector<8x32xf32>
    %141 = math.tanh %140 : vector<8x32xf32>
    %142 = arith.mulf %137, %141 : vector<8x32xf32>
    %c32_88 = arith.constant 32 : index
    %c0_89 = arith.constant 0 : index
    %143 = vector.load %arg18[%c32_88, %c0_89] : memref<128x128xf32, #tpu.memory_space<vmem>>, vector<8x128xf32>
    %cst_90 = arith.constant dense<0.000000e+00> : vector<8x128xf32>
    %144 = tpu.matmul %142, %64, %cst_90 {dimension_numbers = #tpu.dot_dimension_numbers<[1], [0], [0], [1], [0, 0, 1, 1], [], []>} : vector<8x32xf32>, vector<32x128xf32>, vector<8x128xf32> -> vector<8x128xf32>
    %145 = arith.addf %143, %144 : vector<8x128xf32>
    %146 = vector.extract_strided_slice %145 {offsets = [0, 0], sizes = [8, 96], strides = [1, 1]} : vector<8x128xf32> to vector<8x96xf32>
    %147 = arith.negf %146 : vector<8x96xf32>
    %148 = math.exp %147 : vector<8x96xf32>
    %cst_91 = arith.constant 1.000000e+00 : f32
    %149 = vector.broadcast %cst_91 : f32 to vector<8x96xf32>
    %150 = arith.addf %149, %148 : vector<8x96xf32>
    %151 = arith.divf %149, %150 : vector<8x96xf32>
    %152 = vector.extract_strided_slice %145 {offsets = [0, 96], sizes = [8, 32], strides = [1, 1]} : vector<8x128xf32> to vector<8x32xf32>
    %153 = math.tanh %152 : vector<8x32xf32>
    %154 = vector.extract_strided_slice %151 {offsets = [0, 0], sizes = [8, 32], strides = [1, 1]} : vector<8x96xf32> to vector<8x32xf32>
    %155 = vector.extract_strided_slice %151 {offsets = [0, 32], sizes = [8, 32], strides = [1, 1]} : vector<8x96xf32> to vector<8x32xf32>
    %156 = vector.extract_strided_slice %151 {offsets = [0, 64], sizes = [8, 32], strides = [1, 1]} : vector<8x96xf32> to vector<8x32xf32>
    %157 = arith.mulf %155, %140 : vector<8x32xf32>
    %158 = arith.mulf %154, %153 : vector<8x32xf32>
    %159 = arith.addf %157, %158 : vector<8x32xf32>
    %160 = math.tanh %159 : vector<8x32xf32>
    %161 = arith.mulf %156, %160 : vector<8x32xf32>
    %c40 = arith.constant 40 : index
    %c0_92 = arith.constant 0 : index
    %162 = vector.load %arg18[%c40, %c0_92] : memref<128x128xf32, #tpu.memory_space<vmem>>, vector<8x128xf32>
    %cst_93 = arith.constant dense<0.000000e+00> : vector<8x128xf32>
    %163 = tpu.matmul %161, %64, %cst_93 {dimension_numbers = #tpu.dot_dimension_numbers<[1], [0], [0], [1], [0, 0, 1, 1], [], []>} : vector<8x32xf32>, vector<32x128xf32>, vector<8x128xf32> -> vector<8x128xf32>
    %164 = arith.addf %162, %163 : vector<8x128xf32>
    %165 = vector.extract_strided_slice %164 {offsets = [0, 0], sizes = [8, 96], strides = [1, 1]} : vector<8x128xf32> to vector<8x96xf32>
    %166 = arith.negf %165 : vector<8x96xf32>
    %167 = math.exp %166 : vector<8x96xf32>
    %cst_94 = arith.constant 1.000000e+00 : f32
    %168 = vector.broadcast %cst_94 : f32 to vector<8x96xf32>
    %169 = arith.addf %168, %167 : vector<8x96xf32>
    %170 = arith.divf %168, %169 : vector<8x96xf32>
    %171 = vector.extract_strided_slice %164 {offsets = [0, 96], sizes = [8, 32], strides = [1, 1]} : vector<8x128xf32> to vector<8x32xf32>
    %172 = math.tanh %171 : vector<8x32xf32>
    %173 = vector.extract_strided_slice %170 {offsets = [0, 0], sizes = [8, 32], strides = [1, 1]} : vector<8x96xf32> to vector<8x32xf32>
    %174 = vector.extract_strided_slice %170 {offsets = [0, 32], sizes = [8, 32], strides = [1, 1]} : vector<8x96xf32> to vector<8x32xf32>
    %175 = vector.extract_strided_slice %170 {offsets = [0, 64], sizes = [8, 32], strides = [1, 1]} : vector<8x96xf32> to vector<8x32xf32>
    %176 = arith.mulf %174, %159 : vector<8x32xf32>
    %177 = arith.mulf %173, %172 : vector<8x32xf32>
    %178 = arith.addf %176, %177 : vector<8x32xf32>
    %179 = math.tanh %178 : vector<8x32xf32>
    %180 = arith.mulf %175, %179 : vector<8x32xf32>
    %c48 = arith.constant 48 : index
    %c0_95 = arith.constant 0 : index
    %181 = vector.load %arg18[%c48, %c0_95] : memref<128x128xf32, #tpu.memory_space<vmem>>, vector<8x128xf32>
    %cst_96 = arith.constant dense<0.000000e+00> : vector<8x128xf32>
    %182 = tpu.matmul %180, %64, %cst_96 {dimension_numbers = #tpu.dot_dimension_numbers<[1], [0], [0], [1], [0, 0, 1, 1], [], []>} : vector<8x32xf32>, vector<32x128xf32>, vector<8x128xf32> -> vector<8x128xf32>
    %183 = arith.addf %181, %182 : vector<8x128xf32>
    %184 = vector.extract_strided_slice %183 {offsets = [0, 0], sizes = [8, 96], strides = [1, 1]} : vector<8x128xf32> to vector<8x96xf32>
    %185 = arith.negf %184 : vector<8x96xf32>
    %186 = math.exp %185 : vector<8x96xf32>
    %cst_97 = arith.constant 1.000000e+00 : f32
    %187 = vector.broadcast %cst_97 : f32 to vector<8x96xf32>
    %188 = arith.addf %187, %186 : vector<8x96xf32>
    %189 = arith.divf %187, %188 : vector<8x96xf32>
    %190 = vector.extract_strided_slice %183 {offsets = [0, 96], sizes = [8, 32], strides = [1, 1]} : vector<8x128xf32> to vector<8x32xf32>
    %191 = math.tanh %190 : vector<8x32xf32>
    %192 = vector.extract_strided_slice %189 {offsets = [0, 0], sizes = [8, 32], strides = [1, 1]} : vector<8x96xf32> to vector<8x32xf32>
    %193 = vector.extract_strided_slice %189 {offsets = [0, 32], sizes = [8, 32], strides = [1, 1]} : vector<8x96xf32> to vector<8x32xf32>
    %194 = vector.extract_strided_slice %189 {offsets = [0, 64], sizes = [8, 32], strides = [1, 1]} : vector<8x96xf32> to vector<8x32xf32>
    %195 = arith.mulf %193, %178 : vector<8x32xf32>
    %196 = arith.mulf %192, %191 : vector<8x32xf32>
    %197 = arith.addf %195, %196 : vector<8x32xf32>
    %198 = math.tanh %197 : vector<8x32xf32>
    %199 = arith.mulf %194, %198 : vector<8x32xf32>
    %c56 = arith.constant 56 : index
    %c0_98 = arith.constant 0 : index
    %200 = vector.load %arg18[%c56, %c0_98] : memref<128x128xf32, #tpu.memory_space<vmem>>, vector<8x128xf32>
    %cst_99 = arith.constant dense<0.000000e+00> : vector<8x128xf32>
    %201 = tpu.matmul %199, %64, %cst_99 {dimension_numbers = #tpu.dot_dimension_numbers<[1], [0], [0], [1], [0, 0, 1, 1], [], []>} : vector<8x32xf32>, vector<32x128xf32>, vector<8x128xf32> -> vector<8x128xf32>
    %202 = arith.addf %200, %201 : vector<8x128xf32>
    %203 = vector.extract_strided_slice %202 {offsets = [0, 0], sizes = [8, 96], strides = [1, 1]} : vector<8x128xf32> to vector<8x96xf32>
    %204 = arith.negf %203 : vector<8x96xf32>
    %205 = math.exp %204 : vector<8x96xf32>
    %cst_100 = arith.constant 1.000000e+00 : f32
    %206 = vector.broadcast %cst_100 : f32 to vector<8x96xf32>
    %207 = arith.addf %206, %205 : vector<8x96xf32>
    %208 = arith.divf %206, %207 : vector<8x96xf32>
    %209 = vector.extract_strided_slice %202 {offsets = [0, 96], sizes = [8, 32], strides = [1, 1]} : vector<8x128xf32> to vector<8x32xf32>
    %210 = math.tanh %209 : vector<8x32xf32>
    %211 = vector.extract_strided_slice %208 {offsets = [0, 0], sizes = [8, 32], strides = [1, 1]} : vector<8x96xf32> to vector<8x32xf32>
    %212 = vector.extract_strided_slice %208 {offsets = [0, 32], sizes = [8, 32], strides = [1, 1]} : vector<8x96xf32> to vector<8x32xf32>
    %213 = vector.extract_strided_slice %208 {offsets = [0, 64], sizes = [8, 32], strides = [1, 1]} : vector<8x96xf32> to vector<8x32xf32>
    %214 = arith.mulf %212, %197 : vector<8x32xf32>
    %215 = arith.mulf %211, %210 : vector<8x32xf32>
    %216 = arith.addf %214, %215 : vector<8x32xf32>
    %217 = math.tanh %216 : vector<8x32xf32>
    %218 = arith.mulf %213, %217 : vector<8x32xf32>
    %c64_101 = arith.constant 64 : index
    %c0_102 = arith.constant 0 : index
    %219 = vector.load %arg18[%c64_101, %c0_102] : memref<128x128xf32, #tpu.memory_space<vmem>>, vector<8x128xf32>
    %cst_103 = arith.constant dense<0.000000e+00> : vector<8x128xf32>
    %220 = tpu.matmul %218, %64, %cst_103 {dimension_numbers = #tpu.dot_dimension_numbers<[1], [0], [0], [1], [0, 0, 1, 1], [], []>} : vector<8x32xf32>, vector<32x128xf32>, vector<8x128xf32> -> vector<8x128xf32>
    %221 = arith.addf %219, %220 : vector<8x128xf32>
    %222 = vector.extract_strided_slice %221 {offsets = [0, 0], sizes = [8, 96], strides = [1, 1]} : vector<8x128xf32> to vector<8x96xf32>
    %223 = arith.negf %222 : vector<8x96xf32>
    %224 = math.exp %223 : vector<8x96xf32>
    %cst_104 = arith.constant 1.000000e+00 : f32
    %225 = vector.broadcast %cst_104 : f32 to vector<8x96xf32>
    %226 = arith.addf %225, %224 : vector<8x96xf32>
    %227 = arith.divf %225, %226 : vector<8x96xf32>
    %228 = vector.extract_strided_slice %221 {offsets = [0, 96], sizes = [8, 32], strides = [1, 1]} : vector<8x128xf32> to vector<8x32xf32>
    %229 = math.tanh %228 : vector<8x32xf32>
    %230 = vector.extract_strided_slice %227 {offsets = [0, 0], sizes = [8, 32], strides = [1, 1]} : vector<8x96xf32> to vector<8x32xf32>
    %231 = vector.extract_strided_slice %227 {offsets = [0, 32], sizes = [8, 32], strides = [1, 1]} : vector<8x96xf32> to vector<8x32xf32>
    %232 = vector.extract_strided_slice %227 {offsets = [0, 64], sizes = [8, 32], strides = [1, 1]} : vector<8x96xf32> to vector<8x32xf32>
    %233 = arith.mulf %231, %216 : vector<8x32xf32>
    %234 = arith.mulf %230, %229 : vector<8x32xf32>
    %235 = arith.addf %233, %234 : vector<8x32xf32>
    %236 = math.tanh %235 : vector<8x32xf32>
    %237 = arith.mulf %232, %236 : vector<8x32xf32>
    %c72 = arith.constant 72 : index
    %c0_105 = arith.constant 0 : index
    %238 = vector.load %arg18[%c72, %c0_105] : memref<128x128xf32, #tpu.memory_space<vmem>>, vector<8x128xf32>
    %cst_106 = arith.constant dense<0.000000e+00> : vector<8x128xf32>
    %239 = tpu.matmul %237, %64, %cst_106 {dimension_numbers = #tpu.dot_dimension_numbers<[1], [0], [0], [1], [0, 0, 1, 1], [], []>} : vector<8x32xf32>, vector<32x128xf32>, vector<8x128xf32> -> vector<8x128xf32>
    %240 = arith.addf %238, %239 : vector<8x128xf32>
    %241 = vector.extract_strided_slice %240 {offsets = [0, 0], sizes = [8, 96], strides = [1, 1]} : vector<8x128xf32> to vector<8x96xf32>
    %242 = arith.negf %241 : vector<8x96xf32>
    %243 = math.exp %242 : vector<8x96xf32>
    %cst_107 = arith.constant 1.000000e+00 : f32
    %244 = vector.broadcast %cst_107 : f32 to vector<8x96xf32>
    %245 = arith.addf %244, %243 : vector<8x96xf32>
    %246 = arith.divf %244, %245 : vector<8x96xf32>
    %247 = vector.extract_strided_slice %240 {offsets = [0, 96], sizes = [8, 32], strides = [1, 1]} : vector<8x128xf32> to vector<8x32xf32>
    %248 = math.tanh %247 : vector<8x32xf32>
    %249 = vector.extract_strided_slice %246 {offsets = [0, 0], sizes = [8, 32], strides = [1, 1]} : vector<8x96xf32> to vector<8x32xf32>
    %250 = vector.extract_strided_slice %246 {offsets = [0, 32], sizes = [8, 32], strides = [1, 1]} : vector<8x96xf32> to vector<8x32xf32>
    %251 = vector.extract_strided_slice %246 {offsets = [0, 64], sizes = [8, 32], strides = [1, 1]} : vector<8x96xf32> to vector<8x32xf32>
    %252 = arith.mulf %250, %235 : vector<8x32xf32>
    %253 = arith.mulf %249, %248 : vector<8x32xf32>
    %254 = arith.addf %252, %253 : vector<8x32xf32>
    %255 = math.tanh %254 : vector<8x32xf32>
    %256 = arith.mulf %251, %255 : vector<8x32xf32>
    %c80 = arith.constant 80 : index
    %c0_108 = arith.constant 0 : index
    %257 = vector.load %arg18[%c80, %c0_108] : memref<128x128xf32, #tpu.memory_space<vmem>>, vector<8x128xf32>
    %cst_109 = arith.constant dense<0.000000e+00> : vector<8x128xf32>
    %258 = tpu.matmul %256, %64, %cst_109 {dimension_numbers = #tpu.dot_dimension_numbers<[1], [0], [0], [1], [0, 0, 1, 1], [], []>} : vector<8x32xf32>, vector<32x128xf32>, vector<8x128xf32> -> vector<8x128xf32>
    %259 = arith.addf %257, %258 : vector<8x128xf32>
    %260 = vector.extract_strided_slice %259 {offsets = [0, 0], sizes = [8, 96], strides = [1, 1]} : vector<8x128xf32> to vector<8x96xf32>
    %261 = arith.negf %260 : vector<8x96xf32>
    %262 = math.exp %261 : vector<8x96xf32>
    %cst_110 = arith.constant 1.000000e+00 : f32
    %263 = vector.broadcast %cst_110 : f32 to vector<8x96xf32>
    %264 = arith.addf %263, %262 : vector<8x96xf32>
    %265 = arith.divf %263, %264 : vector<8x96xf32>
    %266 = vector.extract_strided_slice %259 {offsets = [0, 96], sizes = [8, 32], strides = [1, 1]} : vector<8x128xf32> to vector<8x32xf32>
    %267 = math.tanh %266 : vector<8x32xf32>
    %268 = vector.extract_strided_slice %265 {offsets = [0, 0], sizes = [8, 32], strides = [1, 1]} : vector<8x96xf32> to vector<8x32xf32>
    %269 = vector.extract_strided_slice %265 {offsets = [0, 32], sizes = [8, 32], strides = [1, 1]} : vector<8x96xf32> to vector<8x32xf32>
    %270 = vector.extract_strided_slice %265 {offsets = [0, 64], sizes = [8, 32], strides = [1, 1]} : vector<8x96xf32> to vector<8x32xf32>
    %271 = arith.mulf %269, %254 : vector<8x32xf32>
    %272 = arith.mulf %268, %267 : vector<8x32xf32>
    %273 = arith.addf %271, %272 : vector<8x32xf32>
    %274 = math.tanh %273 : vector<8x32xf32>
    %275 = arith.mulf %270, %274 : vector<8x32xf32>
    %c88 = arith.constant 88 : index
    %c0_111 = arith.constant 0 : index
    %276 = vector.load %arg18[%c88, %c0_111] : memref<128x128xf32, #tpu.memory_space<vmem>>, vector<8x128xf32>
    %cst_112 = arith.constant dense<0.000000e+00> : vector<8x128xf32>
    %277 = tpu.matmul %275, %64, %cst_112 {dimension_numbers = #tpu.dot_dimension_numbers<[1], [0], [0], [1], [0, 0, 1, 1], [], []>} : vector<8x32xf32>, vector<32x128xf32>, vector<8x128xf32> -> vector<8x128xf32>
    %278 = arith.addf %276, %277 : vector<8x128xf32>
    %279 = vector.extract_strided_slice %278 {offsets = [0, 0], sizes = [8, 96], strides = [1, 1]} : vector<8x128xf32> to vector<8x96xf32>
    %280 = arith.negf %279 : vector<8x96xf32>
    %281 = math.exp %280 : vector<8x96xf32>
    %cst_113 = arith.constant 1.000000e+00 : f32
    %282 = vector.broadcast %cst_113 : f32 to vector<8x96xf32>
    %283 = arith.addf %282, %281 : vector<8x96xf32>
    %284 = arith.divf %282, %283 : vector<8x96xf32>
    %285 = vector.extract_strided_slice %278 {offsets = [0, 96], sizes = [8, 32], strides = [1, 1]} : vector<8x128xf32> to vector<8x32xf32>
    %286 = math.tanh %285 : vector<8x32xf32>
    %287 = vector.extract_strided_slice %284 {offsets = [0, 0], sizes = [8, 32], strides = [1, 1]} : vector<8x96xf32> to vector<8x32xf32>
    %288 = vector.extract_strided_slice %284 {offsets = [0, 32], sizes = [8, 32], strides = [1, 1]} : vector<8x96xf32> to vector<8x32xf32>
    %289 = vector.extract_strided_slice %284 {offsets = [0, 64], sizes = [8, 32], strides = [1, 1]} : vector<8x96xf32> to vector<8x32xf32>
    %290 = arith.mulf %288, %273 : vector<8x32xf32>
    %291 = arith.mulf %287, %286 : vector<8x32xf32>
    %292 = arith.addf %290, %291 : vector<8x32xf32>
    %293 = math.tanh %292 : vector<8x32xf32>
    %294 = arith.mulf %289, %293 : vector<8x32xf32>
    %c96 = arith.constant 96 : index
    %c0_114 = arith.constant 0 : index
    %295 = vector.load %arg18[%c96, %c0_114] : memref<128x128xf32, #tpu.memory_space<vmem>>, vector<8x128xf32>
    %cst_115 = arith.constant dense<0.000000e+00> : vector<8x128xf32>
    %296 = tpu.matmul %294, %64, %cst_115 {dimension_numbers = #tpu.dot_dimension_numbers<[1], [0], [0], [1], [0, 0, 1, 1], [], []>} : vector<8x32xf32>, vector<32x128xf32>, vector<8x128xf32> -> vector<8x128xf32>
    %297 = arith.addf %295, %296 : vector<8x128xf32>
    %298 = vector.extract_strided_slice %297 {offsets = [0, 0], sizes = [8, 96], strides = [1, 1]} : vector<8x128xf32> to vector<8x96xf32>
    %299 = arith.negf %298 : vector<8x96xf32>
    %300 = math.exp %299 : vector<8x96xf32>
    %cst_116 = arith.constant 1.000000e+00 : f32
    %301 = vector.broadcast %cst_116 : f32 to vector<8x96xf32>
    %302 = arith.addf %301, %300 : vector<8x96xf32>
    %303 = arith.divf %301, %302 : vector<8x96xf32>
    %304 = vector.extract_strided_slice %297 {offsets = [0, 96], sizes = [8, 32], strides = [1, 1]} : vector<8x128xf32> to vector<8x32xf32>
    %305 = math.tanh %304 : vector<8x32xf32>
    %306 = vector.extract_strided_slice %303 {offsets = [0, 0], sizes = [8, 32], strides = [1, 1]} : vector<8x96xf32> to vector<8x32xf32>
    %307 = vector.extract_strided_slice %303 {offsets = [0, 32], sizes = [8, 32], strides = [1, 1]} : vector<8x96xf32> to vector<8x32xf32>
    %308 = vector.extract_strided_slice %303 {offsets = [0, 64], sizes = [8, 32], strides = [1, 1]} : vector<8x96xf32> to vector<8x32xf32>
    %309 = arith.mulf %307, %292 : vector<8x32xf32>
    %310 = arith.mulf %306, %305 : vector<8x32xf32>
    %311 = arith.addf %309, %310 : vector<8x32xf32>
    %312 = math.tanh %311 : vector<8x32xf32>
    %313 = arith.mulf %308, %312 : vector<8x32xf32>
    %c104 = arith.constant 104 : index
    %c0_117 = arith.constant 0 : index
    %314 = vector.load %arg18[%c104, %c0_117] : memref<128x128xf32, #tpu.memory_space<vmem>>, vector<8x128xf32>
    %cst_118 = arith.constant dense<0.000000e+00> : vector<8x128xf32>
    %315 = tpu.matmul %313, %64, %cst_118 {dimension_numbers = #tpu.dot_dimension_numbers<[1], [0], [0], [1], [0, 0, 1, 1], [], []>} : vector<8x32xf32>, vector<32x128xf32>, vector<8x128xf32> -> vector<8x128xf32>
    %316 = arith.addf %314, %315 : vector<8x128xf32>
    %317 = vector.extract_strided_slice %316 {offsets = [0, 0], sizes = [8, 96], strides = [1, 1]} : vector<8x128xf32> to vector<8x96xf32>
    %318 = arith.negf %317 : vector<8x96xf32>
    %319 = math.exp %318 : vector<8x96xf32>
    %cst_119 = arith.constant 1.000000e+00 : f32
    %320 = vector.broadcast %cst_119 : f32 to vector<8x96xf32>
    %321 = arith.addf %320, %319 : vector<8x96xf32>
    %322 = arith.divf %320, %321 : vector<8x96xf32>
    %323 = vector.extract_strided_slice %316 {offsets = [0, 96], sizes = [8, 32], strides = [1, 1]} : vector<8x128xf32> to vector<8x32xf32>
    %324 = math.tanh %323 : vector<8x32xf32>
    %325 = vector.extract_strided_slice %322 {offsets = [0, 0], sizes = [8, 32], strides = [1, 1]} : vector<8x96xf32> to vector<8x32xf32>
    %326 = vector.extract_strided_slice %322 {offsets = [0, 32], sizes = [8, 32], strides = [1, 1]} : vector<8x96xf32> to vector<8x32xf32>
    %327 = vector.extract_strided_slice %322 {offsets = [0, 64], sizes = [8, 32], strides = [1, 1]} : vector<8x96xf32> to vector<8x32xf32>
    %328 = arith.mulf %326, %311 : vector<8x32xf32>
    %329 = arith.mulf %325, %324 : vector<8x32xf32>
    %330 = arith.addf %328, %329 : vector<8x32xf32>
    %331 = math.tanh %330 : vector<8x32xf32>
    %332 = arith.mulf %327, %331 : vector<8x32xf32>
    %c112 = arith.constant 112 : index
    %c0_120 = arith.constant 0 : index
    %333 = vector.load %arg18[%c112, %c0_120] : memref<128x128xf32, #tpu.memory_space<vmem>>, vector<8x128xf32>
    %cst_121 = arith.constant dense<0.000000e+00> : vector<8x128xf32>
    %334 = tpu.matmul %332, %64, %cst_121 {dimension_numbers = #tpu.dot_dimension_numbers<[1], [0], [0], [1], [0, 0, 1, 1], [], []>} : vector<8x32xf32>, vector<32x128xf32>, vector<8x128xf32> -> vector<8x128xf32>
    %335 = arith.addf %333, %334 : vector<8x128xf32>
    %336 = vector.extract_strided_slice %335 {offsets = [0, 0], sizes = [8, 96], strides = [1, 1]} : vector<8x128xf32> to vector<8x96xf32>
    %337 = arith.negf %336 : vector<8x96xf32>
    %338 = math.exp %337 : vector<8x96xf32>
    %cst_122 = arith.constant 1.000000e+00 : f32
    %339 = vector.broadcast %cst_122 : f32 to vector<8x96xf32>
    %340 = arith.addf %339, %338 : vector<8x96xf32>
    %341 = arith.divf %339, %340 : vector<8x96xf32>
    %342 = vector.extract_strided_slice %335 {offsets = [0, 96], sizes = [8, 32], strides = [1, 1]} : vector<8x128xf32> to vector<8x32xf32>
    %343 = math.tanh %342 : vector<8x32xf32>
    %344 = vector.extract_strided_slice %341 {offsets = [0, 0], sizes = [8, 32], strides = [1, 1]} : vector<8x96xf32> to vector<8x32xf32>
    %345 = vector.extract_strided_slice %341 {offsets = [0, 32], sizes = [8, 32], strides = [1, 1]} : vector<8x96xf32> to vector<8x32xf32>
    %346 = vector.extract_strided_slice %341 {offsets = [0, 64], sizes = [8, 32], strides = [1, 1]} : vector<8x96xf32> to vector<8x32xf32>
    %347 = arith.mulf %345, %330 : vector<8x32xf32>
    %348 = arith.mulf %344, %343 : vector<8x32xf32>
    %349 = arith.addf %347, %348 : vector<8x32xf32>
    %350 = math.tanh %349 : vector<8x32xf32>
    %351 = arith.mulf %346, %350 : vector<8x32xf32>
    %c120 = arith.constant 120 : index
    %c0_123 = arith.constant 0 : index
    %352 = vector.load %arg18[%c120, %c0_123] : memref<128x128xf32, #tpu.memory_space<vmem>>, vector<8x128xf32>
    %cst_124 = arith.constant dense<0.000000e+00> : vector<8x128xf32>
    %353 = tpu.matmul %351, %64, %cst_124 {dimension_numbers = #tpu.dot_dimension_numbers<[1], [0], [0], [1], [0, 0, 1, 1], [], []>} : vector<8x32xf32>, vector<32x128xf32>, vector<8x128xf32> -> vector<8x128xf32>
    %354 = arith.addf %352, %353 : vector<8x128xf32>
    %355 = vector.extract_strided_slice %354 {offsets = [0, 0], sizes = [8, 96], strides = [1, 1]} : vector<8x128xf32> to vector<8x96xf32>
    %356 = arith.negf %355 : vector<8x96xf32>
    %357 = math.exp %356 : vector<8x96xf32>
    %cst_125 = arith.constant 1.000000e+00 : f32
    %358 = vector.broadcast %cst_125 : f32 to vector<8x96xf32>
    %359 = arith.addf %358, %357 : vector<8x96xf32>
    %360 = arith.divf %358, %359 : vector<8x96xf32>
    %361 = vector.extract_strided_slice %354 {offsets = [0, 96], sizes = [8, 32], strides = [1, 1]} : vector<8x128xf32> to vector<8x32xf32>
    %362 = math.tanh %361 : vector<8x32xf32>
    %363 = vector.extract_strided_slice %360 {offsets = [0, 0], sizes = [8, 32], strides = [1, 1]} : vector<8x96xf32> to vector<8x32xf32>
    %364 = vector.extract_strided_slice %360 {offsets = [0, 32], sizes = [8, 32], strides = [1, 1]} : vector<8x96xf32> to vector<8x32xf32>
    %365 = vector.extract_strided_slice %360 {offsets = [0, 64], sizes = [8, 32], strides = [1, 1]} : vector<8x96xf32> to vector<8x32xf32>
    %366 = arith.mulf %364, %349 : vector<8x32xf32>
    %367 = arith.mulf %363, %362 : vector<8x32xf32>
    %368 = arith.addf %366, %367 : vector<8x32xf32>
    %369 = math.tanh %368 : vector<8x32xf32>
    %370 = arith.mulf %365, %369 : vector<8x32xf32>
    %c0_126 = arith.constant 0 : index
    %c0_127 = arith.constant 0 : index
    %371 = vector.load %arg11[%c0_126, %c0_127] : memref<32x128xf32, #tpu.memory_space<vmem>>, vector<32x128xf32>
    %c0_128 = arith.constant 0 : index
    %c0_129 = arith.constant 0 : index
    %372 = vector.load %arg12[%c0_128, %c0_129] : memref<1x128xf32, #tpu.memory_space<vmem>>, vector<1x128xf32>
    %373 = vector.shape_cast %372 : vector<1x128xf32> to vector<1x128xf32>
    %374 = vector.broadcast %373 : vector<1x128xf32> to vector<8x128xf32>
    %c120_130 = arith.constant 120 : index
    %c0_131 = arith.constant 0 : index
    %375 = vector.load %arg19[%c120_130, %c0_131] : memref<128x32xf32, #tpu.memory_space<vmem>>, vector<8x32xf32>
    tpu.vector_store %arg19[%c120_130, %c0_131], %370 {strides = array<i32>} : memref<128x32xf32, #tpu.memory_space<vmem>>, vector<8x32xf32>,
    %cst_132 = arith.constant dense<0.000000e+00> : vector<8x128xf32>
    %376 = tpu.matmul %370, %371, %cst_132 {dimension_numbers = #tpu.dot_dimension_numbers<[1], [0], [0], [1], [0, 0, 1, 1], [], []>} : vector<8x32xf32>, vector<32x128xf32>, vector<8x128xf32> -> vector<8x128xf32>
    %377 = arith.addf %376, %374 : vector<8x128xf32>
    %378 = vector.extract_strided_slice %377 {offsets = [0, 0], sizes = [8, 96], strides = [1, 1]} : vector<8x128xf32> to vector<8x96xf32>
    %379 = arith.negf %378 : vector<8x96xf32>
    %380 = math.exp %379 : vector<8x96xf32>
    %cst_133 = arith.constant 1.000000e+00 : f32
    %381 = vector.broadcast %cst_133 : f32 to vector<8x96xf32>
    %382 = arith.addf %381, %380 : vector<8x96xf32>
    %383 = arith.divf %381, %382 : vector<8x96xf32>
    %384 = vector.extract_strided_slice %377 {offsets = [0, 96], sizes = [8, 32], strides = [1, 1]} : vector<8x128xf32> to vector<8x32xf32>
    %385 = math.tanh %384 : vector<8x32xf32>
    %386 = vector.extract_strided_slice %383 {offsets = [0, 0], sizes = [8, 32], strides = [1, 1]} : vector<8x96xf32> to vector<8x32xf32>
    %387 = vector.extract_strided_slice %383 {offsets = [0, 32], sizes = [8, 32], strides = [1, 1]} : vector<8x96xf32> to vector<8x32xf32>
    %388 = vector.extract_strided_slice %383 {offsets = [0, 64], sizes = [8, 32], strides = [1, 1]} : vector<8x96xf32> to vector<8x32xf32>
    %389 = arith.mulf %387, %368 : vector<8x32xf32>
    %390 = arith.mulf %386, %385 : vector<8x32xf32>
    %391 = arith.addf %389, %390 : vector<8x32xf32>
    %392 = math.tanh %391 : vector<8x32xf32>
    %393 = arith.mulf %388, %392 : vector<8x32xf32>
    %c112_134 = arith.constant 112 : index
    %c0_135 = arith.constant 0 : index
    %394 = vector.load %arg19[%c112_134, %c0_135] : memref<128x32xf32, #tpu.memory_space<vmem>>, vector<8x32xf32>
    tpu.vector_store %arg19[%c112_134, %c0_135], %393 {strides = array<i32>} : memref<128x32xf32, #tpu.memory_space<vmem>>, vector<8x32xf32>,
    %cst_136 = arith.constant dense<0.000000e+00> : vector<8x128xf32>
    %395 = tpu.matmul %393, %371, %cst_136 {dimension_numbers = #tpu.dot_dimension_numbers<[1], [0], [0], [1], [0, 0, 1, 1], [], []>} : vector<8x32xf32>, vector<32x128xf32>, vector<8x128xf32> -> vector<8x128xf32>
    %396 = arith.addf %395, %374 : vector<8x128xf32>
    %397 = vector.extract_strided_slice %396 {offsets = [0, 0], sizes = [8, 96], strides = [1, 1]} : vector<8x128xf32> to vector<8x96xf32>
    %398 = arith.negf %397 : vector<8x96xf32>
    %399 = math.exp %398 : vector<8x96xf32>
    %cst_137 = arith.constant 1.000000e+00 : f32
    %400 = vector.broadcast %cst_137 : f32 to vector<8x96xf32>
    %401 = arith.addf %400, %399 : vector<8x96xf32>
    %402 = arith.divf %400, %401 : vector<8x96xf32>
    %403 = vector.extract_strided_slice %396 {offsets = [0, 96], sizes = [8, 32], strides = [1, 1]} : vector<8x128xf32> to vector<8x32xf32>
    %404 = math.tanh %403 : vector<8x32xf32>
    %405 = vector.extract_strided_slice %402 {offsets = [0, 0], sizes = [8, 32], strides = [1, 1]} : vector<8x96xf32> to vector<8x32xf32>
    %406 = vector.extract_strided_slice %402 {offsets = [0, 32], sizes = [8, 32], strides = [1, 1]} : vector<8x96xf32> to vector<8x32xf32>
    %407 = vector.extract_strided_slice %402 {offsets = [0, 64], sizes = [8, 32], strides = [1, 1]} : vector<8x96xf32> to vector<8x32xf32>
    %408 = arith.mulf %406, %391 : vector<8x32xf32>
    %409 = arith.mulf %405, %404 : vector<8x32xf32>
    %410 = arith.addf %408, %409 : vector<8x32xf32>
    %411 = math.tanh %410 : vector<8x32xf32>
    %412 = arith.mulf %407, %411 : vector<8x32xf32>
    %c104_138 = arith.constant 104 : index
    %c0_139 = arith.constant 0 : index
    %413 = vector.load %arg19[%c104_138, %c0_139] : memref<128x32xf32, #tpu.memory_space<vmem>>, vector<8x32xf32>
    tpu.vector_store %arg19[%c104_138, %c0_139], %412 {strides = array<i32>} : memref<128x32xf32, #tpu.memory_space<vmem>>, vector<8x32xf32>,
    %cst_140 = arith.constant dense<0.000000e+00> : vector<8x128xf32>
    %414 = tpu.matmul %412, %371, %cst_140 {dimension_numbers = #tpu.dot_dimension_numbers<[1], [0], [0], [1], [0, 0, 1, 1], [], []>} : vector<8x32xf32>, vector<32x128xf32>, vector<8x128xf32> -> vector<8x128xf32>
    %415 = arith.addf %414, %374 : vector<8x128xf32>
    %416 = vector.extract_strided_slice %415 {offsets = [0, 0], sizes = [8, 96], strides = [1, 1]} : vector<8x128xf32> to vector<8x96xf32>
    %417 = arith.negf %416 : vector<8x96xf32>
    %418 = math.exp %417 : vector<8x96xf32>
    %cst_141 = arith.constant 1.000000e+00 : f32
    %419 = vector.broadcast %cst_141 : f32 to vector<8x96xf32>
    %420 = arith.addf %419, %418 : vector<8x96xf32>
    %421 = arith.divf %419, %420 : vector<8x96xf32>
    %422 = vector.extract_strided_slice %415 {offsets = [0, 96], sizes = [8, 32], strides = [1, 1]} : vector<8x128xf32> to vector<8x32xf32>
    %423 = math.tanh %422 : vector<8x32xf32>
    %424 = vector.extract_strided_slice %421 {offsets = [0, 0], sizes = [8, 32], strides = [1, 1]} : vector<8x96xf32> to vector<8x32xf32>
    %425 = vector.extract_strided_slice %421 {offsets = [0, 32], sizes = [8, 32], strides = [1, 1]} : vector<8x96xf32> to vector<8x32xf32>
    %426 = vector.extract_strided_slice %421 {offsets = [0, 64], sizes = [8, 32], strides = [1, 1]} : vector<8x96xf32> to vector<8x32xf32>
    %427 = arith.mulf %425, %410 : vector<8x32xf32>
    %428 = arith.mulf %424, %423 : vector<8x32xf32>
    %429 = arith.addf %427, %428 : vector<8x32xf32>
    %430 = math.tanh %429 : vector<8x32xf32>
    %431 = arith.mulf %426, %430 : vector<8x32xf32>
    %c96_142 = arith.constant 96 : index
    %c0_143 = arith.constant 0 : index
    %432 = vector.load %arg19[%c96_142, %c0_143] : memref<128x32xf32, #tpu.memory_space<vmem>>, vector<8x32xf32>
    tpu.vector_store %arg19[%c96_142, %c0_143], %431 {strides = array<i32>} : memref<128x32xf32, #tpu.memory_space<vmem>>, vector<8x32xf32>,
    %cst_144 = arith.constant dense<0.000000e+00> : vector<8x128xf32>
    %433 = tpu.matmul %431, %371, %cst_144 {dimension_numbers = #tpu.dot_dimension_numbers<[1], [0], [0], [1], [0, 0, 1, 1], [], []>} : vector<8x32xf32>, vector<32x128xf32>, vector<8x128xf32> -> vector<8x128xf32>
    %434 = arith.addf %433, %374 : vector<8x128xf32>
    %435 = vector.extract_strided_slice %434 {offsets = [0, 0], sizes = [8, 96], strides = [1, 1]} : vector<8x128xf32> to vector<8x96xf32>
    %436 = arith.negf %435 : vector<8x96xf32>
    %437 = math.exp %436 : vector<8x96xf32>
    %cst_145 = arith.constant 1.000000e+00 : f32
    %438 = vector.broadcast %cst_145 : f32 to vector<8x96xf32>
    %439 = arith.addf %438, %437 : vector<8x96xf32>
    %440 = arith.divf %438, %439 : vector<8x96xf32>
    %441 = vector.extract_strided_slice %434 {offsets = [0, 96], sizes = [8, 32], strides = [1, 1]} : vector<8x128xf32> to vector<8x32xf32>
    %442 = math.tanh %441 : vector<8x32xf32>
    %443 = vector.extract_strided_slice %440 {offsets = [0, 0], sizes = [8, 32], strides = [1, 1]} : vector<8x96xf32> to vector<8x32xf32>
    %444 = vector.extract_strided_slice %440 {offsets = [0, 32], sizes = [8, 32], strides = [1, 1]} : vector<8x96xf32> to vector<8x32xf32>
    %445 = vector.extract_strided_slice %440 {offsets = [0, 64], sizes = [8, 32], strides = [1, 1]} : vector<8x96xf32> to vector<8x32xf32>
    %446 = arith.mulf %444, %429 : vector<8x32xf32>
    %447 = arith.mulf %443, %442 : vector<8x32xf32>
    %448 = arith.addf %446, %447 : vector<8x32xf32>
    %449 = math.tanh %448 : vector<8x32xf32>
    %450 = arith.mulf %445, %449 : vector<8x32xf32>
    %c88_146 = arith.constant 88 : index
    %c0_147 = arith.constant 0 : index
    %451 = vector.load %arg19[%c88_146, %c0_147] : memref<128x32xf32, #tpu.memory_space<vmem>>, vector<8x32xf32>
    tpu.vector_store %arg19[%c88_146, %c0_147], %450 {strides = array<i32>} : memref<128x32xf32, #tpu.memory_space<vmem>>, vector<8x32xf32>,
    %cst_148 = arith.constant dense<0.000000e+00> : vector<8x128xf32>
    %452 = tpu.matmul %450, %371, %cst_148 {dimension_numbers = #tpu.dot_dimension_numbers<[1], [0], [0], [1], [0, 0, 1, 1], [], []>} : vector<8x32xf32>, vector<32x128xf32>, vector<8x128xf32> -> vector<8x128xf32>
    %453 = arith.addf %452, %374 : vector<8x128xf32>
    %454 = vector.extract_strided_slice %453 {offsets = [0, 0], sizes = [8, 96], strides = [1, 1]} : vector<8x128xf32> to vector<8x96xf32>
    %455 = arith.negf %454 : vector<8x96xf32>
    %456 = math.exp %455 : vector<8x96xf32>
    %cst_149 = arith.constant 1.000000e+00 : f32
    %457 = vector.broadcast %cst_149 : f32 to vector<8x96xf32>
    %458 = arith.addf %457, %456 : vector<8x96xf32>
    %459 = arith.divf %457, %458 : vector<8x96xf32>
    %460 = vector.extract_strided_slice %453 {offsets = [0, 96], sizes = [8, 32], strides = [1, 1]} : vector<8x128xf32> to vector<8x32xf32>
    %461 = math.tanh %460 : vector<8x32xf32>
    %462 = vector.extract_strided_slice %459 {offsets = [0, 0], sizes = [8, 32], strides = [1, 1]} : vector<8x96xf32> to vector<8x32xf32>
    %463 = vector.extract_strided_slice %459 {offsets = [0, 32], sizes = [8, 32], strides = [1, 1]} : vector<8x96xf32> to vector<8x32xf32>
    %464 = vector.extract_strided_slice %459 {offsets = [0, 64], sizes = [8, 32], strides = [1, 1]} : vector<8x96xf32> to vector<8x32xf32>
    %465 = arith.mulf %463, %448 : vector<8x32xf32>
    %466 = arith.mulf %462, %461 : vector<8x32xf32>
    %467 = arith.addf %465, %466 : vector<8x32xf32>
    %468 = math.tanh %467 : vector<8x32xf32>
    %469 = arith.mulf %464, %468 : vector<8x32xf32>
    %c80_150 = arith.constant 80 : index
    %c0_151 = arith.constant 0 : index
    %470 = vector.load %arg19[%c80_150, %c0_151] : memref<128x32xf32, #tpu.memory_space<vmem>>, vector<8x32xf32>
    tpu.vector_store %arg19[%c80_150, %c0_151], %469 {strides = array<i32>} : memref<128x32xf32, #tpu.memory_space<vmem>>, vector<8x32xf32>,
    %cst_152 = arith.constant dense<0.000000e+00> : vector<8x128xf32>
    %471 = tpu.matmul %469, %371, %cst_152 {dimension_numbers = #tpu.dot_dimension_numbers<[1], [0], [0], [1], [0, 0, 1, 1], [], []>} : vector<8x32xf32>, vector<32x128xf32>, vector<8x128xf32> -> vector<8x128xf32>
    %472 = arith.addf %471, %374 : vector<8x128xf32>
    %473 = vector.extract_strided_slice %472 {offsets = [0, 0], sizes = [8, 96], strides = [1, 1]} : vector<8x128xf32> to vector<8x96xf32>
    %474 = arith.negf %473 : vector<8x96xf32>
    %475 = math.exp %474 : vector<8x96xf32>
    %cst_153 = arith.constant 1.000000e+00 : f32
    %476 = vector.broadcast %cst_153 : f32 to vector<8x96xf32>
    %477 = arith.addf %476, %475 : vector<8x96xf32>
    %478 = arith.divf %476, %477 : vector<8x96xf32>
    %479 = vector.extract_strided_slice %472 {offsets = [0, 96], sizes = [8, 32], strides = [1, 1]} : vector<8x128xf32> to vector<8x32xf32>
    %480 = math.tanh %479 : vector<8x32xf32>
    %481 = vector.extract_strided_slice %478 {offsets = [0, 0], sizes = [8, 32], strides = [1, 1]} : vector<8x96xf32> to vector<8x32xf32>
    %482 = vector.extract_strided_slice %478 {offsets = [0, 32], sizes = [8, 32], strides = [1, 1]} : vector<8x96xf32> to vector<8x32xf32>
    %483 = vector.extract_strided_slice %478 {offsets = [0, 64], sizes = [8, 32], strides = [1, 1]} : vector<8x96xf32> to vector<8x32xf32>
    %484 = arith.mulf %482, %467 : vector<8x32xf32>
    %485 = arith.mulf %481, %480 : vector<8x32xf32>
    %486 = arith.addf %484, %485 : vector<8x32xf32>
    %487 = math.tanh %486 : vector<8x32xf32>
    %488 = arith.mulf %483, %487 : vector<8x32xf32>
    %c72_154 = arith.constant 72 : index
    %c0_155 = arith.constant 0 : index
    %489 = vector.load %arg19[%c72_154, %c0_155] : memref<128x32xf32, #tpu.memory_space<vmem>>, vector<8x32xf32>
    tpu.vector_store %arg19[%c72_154, %c0_155], %488 {strides = array<i32>} : memref<128x32xf32, #tpu.memory_space<vmem>>, vector<8x32xf32>,
    %cst_156 = arith.constant dense<0.000000e+00> : vector<8x128xf32>
    %490 = tpu.matmul %488, %371, %cst_156 {dimension_numbers = #tpu.dot_dimension_numbers<[1], [0], [0], [1], [0, 0, 1, 1], [], []>} : vector<8x32xf32>, vector<32x128xf32>, vector<8x128xf32> -> vector<8x128xf32>
    %491 = arith.addf %490, %374 : vector<8x128xf32>
    %492 = vector.extract_strided_slice %491 {offsets = [0, 0], sizes = [8, 96], strides = [1, 1]} : vector<8x128xf32> to vector<8x96xf32>
    %493 = arith.negf %492 : vector<8x96xf32>
    %494 = math.exp %493 : vector<8x96xf32>
    %cst_157 = arith.constant 1.000000e+00 : f32
    %495 = vector.broadcast %cst_157 : f32 to vector<8x96xf32>
    %496 = arith.addf %495, %494 : vector<8x96xf32>
    %497 = arith.divf %495, %496 : vector<8x96xf32>
    %498 = vector.extract_strided_slice %491 {offsets = [0, 96], sizes = [8, 32], strides = [1, 1]} : vector<8x128xf32> to vector<8x32xf32>
    %499 = math.tanh %498 : vector<8x32xf32>
    %500 = vector.extract_strided_slice %497 {offsets = [0, 0], sizes = [8, 32], strides = [1, 1]} : vector<8x96xf32> to vector<8x32xf32>
    %501 = vector.extract_strided_slice %497 {offsets = [0, 32], sizes = [8, 32], strides = [1, 1]} : vector<8x96xf32> to vector<8x32xf32>
    %502 = vector.extract_strided_slice %497 {offsets = [0, 64], sizes = [8, 32], strides = [1, 1]} : vector<8x96xf32> to vector<8x32xf32>
    %503 = arith.mulf %501, %486 : vector<8x32xf32>
    %504 = arith.mulf %500, %499 : vector<8x32xf32>
    %505 = arith.addf %503, %504 : vector<8x32xf32>
    %506 = math.tanh %505 : vector<8x32xf32>
    %507 = arith.mulf %502, %506 : vector<8x32xf32>
    %c64_158 = arith.constant 64 : index
    %c0_159 = arith.constant 0 : index
    %508 = vector.load %arg19[%c64_158, %c0_159] : memref<128x32xf32, #tpu.memory_space<vmem>>, vector<8x32xf32>
    tpu.vector_store %arg19[%c64_158, %c0_159], %507 {strides = array<i32>} : memref<128x32xf32, #tpu.memory_space<vmem>>, vector<8x32xf32>,
    %cst_160 = arith.constant dense<0.000000e+00> : vector<8x128xf32>
    %509 = tpu.matmul %507, %371, %cst_160 {dimension_numbers = #tpu.dot_dimension_numbers<[1], [0], [0], [1], [0, 0, 1, 1], [], []>} : vector<8x32xf32>, vector<32x128xf32>, vector<8x128xf32> -> vector<8x128xf32>
    %510 = arith.addf %509, %374 : vector<8x128xf32>
    %511 = vector.extract_strided_slice %510 {offsets = [0, 0], sizes = [8, 96], strides = [1, 1]} : vector<8x128xf32> to vector<8x96xf32>
    %512 = arith.negf %511 : vector<8x96xf32>
    %513 = math.exp %512 : vector<8x96xf32>
    %cst_161 = arith.constant 1.000000e+00 : f32
    %514 = vector.broadcast %cst_161 : f32 to vector<8x96xf32>
    %515 = arith.addf %514, %513 : vector<8x96xf32>
    %516 = arith.divf %514, %515 : vector<8x96xf32>
    %517 = vector.extract_strided_slice %510 {offsets = [0, 96], sizes = [8, 32], strides = [1, 1]} : vector<8x128xf32> to vector<8x32xf32>
    %518 = math.tanh %517 : vector<8x32xf32>
    %519 = vector.extract_strided_slice %516 {offsets = [0, 0], sizes = [8, 32], strides = [1, 1]} : vector<8x96xf32> to vector<8x32xf32>
    %520 = vector.extract_strided_slice %516 {offsets = [0, 32], sizes = [8, 32], strides = [1, 1]} : vector<8x96xf32> to vector<8x32xf32>
    %521 = vector.extract_strided_slice %516 {offsets = [0, 64], sizes = [8, 32], strides = [1, 1]} : vector<8x96xf32> to vector<8x32xf32>
    %522 = arith.mulf %520, %505 : vector<8x32xf32>
    %523 = arith.mulf %519, %518 : vector<8x32xf32>
    %524 = arith.addf %522, %523 : vector<8x32xf32>
    %525 = math.tanh %524 : vector<8x32xf32>
    %526 = arith.mulf %521, %525 : vector<8x32xf32>
    %c56_162 = arith.constant 56 : index
    %c0_163 = arith.constant 0 : index
    %527 = vector.load %arg19[%c56_162, %c0_163] : memref<128x32xf32, #tpu.memory_space<vmem>>, vector<8x32xf32>
    tpu.vector_store %arg19[%c56_162, %c0_163], %526 {strides = array<i32>} : memref<128x32xf32, #tpu.memory_space<vmem>>, vector<8x32xf32>,
    %cst_164 = arith.constant dense<0.000000e+00> : vector<8x128xf32>
    %528 = tpu.matmul %526, %371, %cst_164 {dimension_numbers = #tpu.dot_dimension_numbers<[1], [0], [0], [1], [0, 0, 1, 1], [], []>} : vector<8x32xf32>, vector<32x128xf32>, vector<8x128xf32> -> vector<8x128xf32>
    %529 = arith.addf %528, %374 : vector<8x128xf32>
    %530 = vector.extract_strided_slice %529 {offsets = [0, 0], sizes = [8, 96], strides = [1, 1]} : vector<8x128xf32> to vector<8x96xf32>
    %531 = arith.negf %530 : vector<8x96xf32>
    %532 = math.exp %531 : vector<8x96xf32>
    %cst_165 = arith.constant 1.000000e+00 : f32
    %533 = vector.broadcast %cst_165 : f32 to vector<8x96xf32>
    %534 = arith.addf %533, %532 : vector<8x96xf32>
    %535 = arith.divf %533, %534 : vector<8x96xf32>
    %536 = vector.extract_strided_slice %529 {offsets = [0, 96], sizes = [8, 32], strides = [1, 1]} : vector<8x128xf32> to vector<8x32xf32>
    %537 = math.tanh %536 : vector<8x32xf32>
    %538 = vector.extract_strided_slice %535 {offsets = [0, 0], sizes = [8, 32], strides = [1, 1]} : vector<8x96xf32> to vector<8x32xf32>
    %539 = vector.extract_strided_slice %535 {offsets = [0, 32], sizes = [8, 32], strides = [1, 1]} : vector<8x96xf32> to vector<8x32xf32>
    %540 = vector.extract_strided_slice %535 {offsets = [0, 64], sizes = [8, 32], strides = [1, 1]} : vector<8x96xf32> to vector<8x32xf32>
    %541 = arith.mulf %539, %524 : vector<8x32xf32>
    %542 = arith.mulf %538, %537 : vector<8x32xf32>
    %543 = arith.addf %541, %542 : vector<8x32xf32>
    %544 = math.tanh %543 : vector<8x32xf32>
    %545 = arith.mulf %540, %544 : vector<8x32xf32>
    %c48_166 = arith.constant 48 : index
    %c0_167 = arith.constant 0 : index
    %546 = vector.load %arg19[%c48_166, %c0_167] : memref<128x32xf32, #tpu.memory_space<vmem>>, vector<8x32xf32>
    tpu.vector_store %arg19[%c48_166, %c0_167], %545 {strides = array<i32>} : memref<128x32xf32, #tpu.memory_space<vmem>>, vector<8x32xf32>,
    %cst_168 = arith.constant dense<0.000000e+00> : vector<8x128xf32>
    %547 = tpu.matmul %545, %371, %cst_168 {dimension_numbers = #tpu.dot_dimension_numbers<[1], [0], [0], [1], [0, 0, 1, 1], [], []>} : vector<8x32xf32>, vector<32x128xf32>, vector<8x128xf32> -> vector<8x128xf32>
    %548 = arith.addf %547, %374 : vector<8x128xf32>
    %549 = vector.extract_strided_slice %548 {offsets = [0, 0], sizes = [8, 96], strides = [1, 1]} : vector<8x128xf32> to vector<8x96xf32>
    %550 = arith.negf %549 : vector<8x96xf32>
    %551 = math.exp %550 : vector<8x96xf32>
    %cst_169 = arith.constant 1.000000e+00 : f32
    %552 = vector.broadcast %cst_169 : f32 to vector<8x96xf32>
    %553 = arith.addf %552, %551 : vector<8x96xf32>
    %554 = arith.divf %552, %553 : vector<8x96xf32>
    %555 = vector.extract_strided_slice %548 {offsets = [0, 96], sizes = [8, 32], strides = [1, 1]} : vector<8x128xf32> to vector<8x32xf32>
    %556 = math.tanh %555 : vector<8x32xf32>
    %557 = vector.extract_strided_slice %554 {offsets = [0, 0], sizes = [8, 32], strides = [1, 1]} : vector<8x96xf32> to vector<8x32xf32>
    %558 = vector.extract_strided_slice %554 {offsets = [0, 32], sizes = [8, 32], strides = [1, 1]} : vector<8x96xf32> to vector<8x32xf32>
    %559 = vector.extract_strided_slice %554 {offsets = [0, 64], sizes = [8, 32], strides = [1, 1]} : vector<8x96xf32> to vector<8x32xf32>
    %560 = arith.mulf %558, %543 : vector<8x32xf32>
    %561 = arith.mulf %557, %556 : vector<8x32xf32>
    %562 = arith.addf %560, %561 : vector<8x32xf32>
    %563 = math.tanh %562 : vector<8x32xf32>
    %564 = arith.mulf %559, %563 : vector<8x32xf32>
    %c40_170 = arith.constant 40 : index
    %c0_171 = arith.constant 0 : index
    %565 = vector.load %arg19[%c40_170, %c0_171] : memref<128x32xf32, #tpu.memory_space<vmem>>, vector<8x32xf32>
    tpu.vector_store %arg19[%c40_170, %c0_171], %564 {strides = array<i32>} : memref<128x32xf32, #tpu.memory_space<vmem>>, vector<8x32xf32>,
    %cst_172 = arith.constant dense<0.000000e+00> : vector<8x128xf32>
    %566 = tpu.matmul %564, %371, %cst_172 {dimension_numbers = #tpu.dot_dimension_numbers<[1], [0], [0], [1], [0, 0, 1, 1], [], []>} : vector<8x32xf32>, vector<32x128xf32>, vector<8x128xf32> -> vector<8x128xf32>
    %567 = arith.addf %566, %374 : vector<8x128xf32>
    %568 = vector.extract_strided_slice %567 {offsets = [0, 0], sizes = [8, 96], strides = [1, 1]} : vector<8x128xf32> to vector<8x96xf32>
    %569 = arith.negf %568 : vector<8x96xf32>
    %570 = math.exp %569 : vector<8x96xf32>
    %cst_173 = arith.constant 1.000000e+00 : f32
    %571 = vector.broadcast %cst_173 : f32 to vector<8x96xf32>
    %572 = arith.addf %571, %570 : vector<8x96xf32>
    %573 = arith.divf %571, %572 : vector<8x96xf32>
    %574 = vector.extract_strided_slice %567 {offsets = [0, 96], sizes = [8, 32], strides = [1, 1]} : vector<8x128xf32> to vector<8x32xf32>
    %575 = math.tanh %574 : vector<8x32xf32>
    %576 = vector.extract_strided_slice %573 {offsets = [0, 0], sizes = [8, 32], strides = [1, 1]} : vector<8x96xf32> to vector<8x32xf32>
    %577 = vector.extract_strided_slice %573 {offsets = [0, 32], sizes = [8, 32], strides = [1, 1]} : vector<8x96xf32> to vector<8x32xf32>
    %578 = vector.extract_strided_slice %573 {offsets = [0, 64], sizes = [8, 32], strides = [1, 1]} : vector<8x96xf32> to vector<8x32xf32>
    %579 = arith.mulf %577, %562 : vector<8x32xf32>
    %580 = arith.mulf %576, %575 : vector<8x32xf32>
    %581 = arith.addf %579, %580 : vector<8x32xf32>
    %582 = math.tanh %581 : vector<8x32xf32>
    %583 = arith.mulf %578, %582 : vector<8x32xf32>
    %c32_174 = arith.constant 32 : index
    %c0_175 = arith.constant 0 : index
    %584 = vector.load %arg19[%c32_174, %c0_175] : memref<128x32xf32, #tpu.memory_space<vmem>>, vector<8x32xf32>
    tpu.vector_store %arg19[%c32_174, %c0_175], %583 {strides = array<i32>} : memref<128x32xf32, #tpu.memory_space<vmem>>, vector<8x32xf32>,
    %cst_176 = arith.constant dense<0.000000e+00> : vector<8x128xf32>
    %585 = tpu.matmul %583, %371, %cst_176 {dimension_numbers = #tpu.dot_dimension_numbers<[1], [0], [0], [1], [0, 0, 1, 1], [], []>} : vector<8x32xf32>, vector<32x128xf32>, vector<8x128xf32> -> vector<8x128xf32>
    %586 = arith.addf %585, %374 : vector<8x128xf32>
    %587 = vector.extract_strided_slice %586 {offsets = [0, 0], sizes = [8, 96], strides = [1, 1]} : vector<8x128xf32> to vector<8x96xf32>
    %588 = arith.negf %587 : vector<8x96xf32>
    %589 = math.exp %588 : vector<8x96xf32>
    %cst_177 = arith.constant 1.000000e+00 : f32
    %590 = vector.broadcast %cst_177 : f32 to vector<8x96xf32>
    %591 = arith.addf %590, %589 : vector<8x96xf32>
    %592 = arith.divf %590, %591 : vector<8x96xf32>
    %593 = vector.extract_strided_slice %586 {offsets = [0, 96], sizes = [8, 32], strides = [1, 1]} : vector<8x128xf32> to vector<8x32xf32>
    %594 = math.tanh %593 : vector<8x32xf32>
    %595 = vector.extract_strided_slice %592 {offsets = [0, 0], sizes = [8, 32], strides = [1, 1]} : vector<8x96xf32> to vector<8x32xf32>
    %596 = vector.extract_strided_slice %592 {offsets = [0, 32], sizes = [8, 32], strides = [1, 1]} : vector<8x96xf32> to vector<8x32xf32>
    %597 = vector.extract_strided_slice %592 {offsets = [0, 64], sizes = [8, 32], strides = [1, 1]} : vector<8x96xf32> to vector<8x32xf32>
    %598 = arith.mulf %596, %581 : vector<8x32xf32>
    %599 = arith.mulf %595, %594 : vector<8x32xf32>
    %600 = arith.addf %598, %599 : vector<8x32xf32>
    %601 = math.tanh %600 : vector<8x32xf32>
    %602 = arith.mulf %597, %601 : vector<8x32xf32>
    %c24_178 = arith.constant 24 : index
    %c0_179 = arith.constant 0 : index
    %603 = vector.load %arg19[%c24_178, %c0_179] : memref<128x32xf32, #tpu.memory_space<vmem>>, vector<8x32xf32>
    tpu.vector_store %arg19[%c24_178, %c0_179], %602 {strides = array<i32>} : memref<128x32xf32, #tpu.memory_space<vmem>>, vector<8x32xf32>,
    %cst_180 = arith.constant dense<0.000000e+00> : vector<8x128xf32>
    %604 = tpu.matmul %602, %371, %cst_180 {dimension_numbers = #tpu.dot_dimension_numbers<[1], [0], [0], [1], [0, 0, 1, 1], [], []>} : vector<8x32xf32>, vector<32x128xf32>, vector<8x128xf32> -> vector<8x128xf32>
    %605 = arith.addf %604, %374 : vector<8x128xf32>
    %606 = vector.extract_strided_slice %605 {offsets = [0, 0], sizes = [8, 96], strides = [1, 1]} : vector<8x128xf32> to vector<8x96xf32>
    %607 = arith.negf %606 : vector<8x96xf32>
    %608 = math.exp %607 : vector<8x96xf32>
    %cst_181 = arith.constant 1.000000e+00 : f32
    %609 = vector.broadcast %cst_181 : f32 to vector<8x96xf32>
    %610 = arith.addf %609, %608 : vector<8x96xf32>
    %611 = arith.divf %609, %610 : vector<8x96xf32>
    %612 = vector.extract_strided_slice %605 {offsets = [0, 96], sizes = [8, 32], strides = [1, 1]} : vector<8x128xf32> to vector<8x32xf32>
    %613 = math.tanh %612 : vector<8x32xf32>
    %614 = vector.extract_strided_slice %611 {offsets = [0, 0], sizes = [8, 32], strides = [1, 1]} : vector<8x96xf32> to vector<8x32xf32>
    %615 = vector.extract_strided_slice %611 {offsets = [0, 32], sizes = [8, 32], strides = [1, 1]} : vector<8x96xf32> to vector<8x32xf32>
    %616 = vector.extract_strided_slice %611 {offsets = [0, 64], sizes = [8, 32], strides = [1, 1]} : vector<8x96xf32> to vector<8x32xf32>
    %617 = arith.mulf %615, %600 : vector<8x32xf32>
    %618 = arith.mulf %614, %613 : vector<8x32xf32>
    %619 = arith.addf %617, %618 : vector<8x32xf32>
    %620 = math.tanh %619 : vector<8x32xf32>
    %621 = arith.mulf %616, %620 : vector<8x32xf32>
    %c16_182 = arith.constant 16 : index
    %c0_183 = arith.constant 0 : index
    %622 = vector.load %arg19[%c16_182, %c0_183] : memref<128x32xf32, #tpu.memory_space<vmem>>, vector<8x32xf32>
    tpu.vector_store %arg19[%c16_182, %c0_183], %621 {strides = array<i32>} : memref<128x32xf32, #tpu.memory_space<vmem>>, vector<8x32xf32>,
    %cst_184 = arith.constant dense<0.000000e+00> : vector<8x128xf32>
    %623 = tpu.matmul %621, %371, %cst_184 {dimension_numbers = #tpu.dot_dimension_numbers<[1], [0], [0], [1], [0, 0, 1, 1], [], []>} : vector<8x32xf32>, vector<32x128xf32>, vector<8x128xf32> -> vector<8x128xf32>
    %624 = arith.addf %623, %374 : vector<8x128xf32>
    %625 = vector.extract_strided_slice %624 {offsets = [0, 0], sizes = [8, 96], strides = [1, 1]} : vector<8x128xf32> to vector<8x96xf32>
    %626 = arith.negf %625 : vector<8x96xf32>
    %627 = math.exp %626 : vector<8x96xf32>
    %cst_185 = arith.constant 1.000000e+00 : f32
    %628 = vector.broadcast %cst_185 : f32 to vector<8x96xf32>
    %629 = arith.addf %628, %627 : vector<8x96xf32>
    %630 = arith.divf %628, %629 : vector<8x96xf32>
    %631 = vector.extract_strided_slice %624 {offsets = [0, 96], sizes = [8, 32], strides = [1, 1]} : vector<8x128xf32> to vector<8x32xf32>
    %632 = math.tanh %631 : vector<8x32xf32>
    %633 = vector.extract_strided_slice %630 {offsets = [0, 0], sizes = [8, 32], strides = [1, 1]} : vector<8x96xf32> to vector<8x32xf32>
    %634 = vector.extract_strided_slice %630 {offsets = [0, 32], sizes = [8, 32], strides = [1, 1]} : vector<8x96xf32> to vector<8x32xf32>
    %635 = vector.extract_strided_slice %630 {offsets = [0, 64], sizes = [8, 32], strides = [1, 1]} : vector<8x96xf32> to vector<8x32xf32>
    %636 = arith.mulf %634, %619 : vector<8x32xf32>
    %637 = arith.mulf %633, %632 : vector<8x32xf32>
    %638 = arith.addf %636, %637 : vector<8x32xf32>
    %639 = math.tanh %638 : vector<8x32xf32>
    %640 = arith.mulf %635, %639 : vector<8x32xf32>
    %c8_186 = arith.constant 8 : index
    %c0_187 = arith.constant 0 : index
    %641 = vector.load %arg19[%c8_186, %c0_187] : memref<128x32xf32, #tpu.memory_space<vmem>>, vector<8x32xf32>
    tpu.vector_store %arg19[%c8_186, %c0_187], %640 {strides = array<i32>} : memref<128x32xf32, #tpu.memory_space<vmem>>, vector<8x32xf32>,
    %cst_188 = arith.constant dense<0.000000e+00> : vector<8x128xf32>
    %642 = tpu.matmul %640, %371, %cst_188 {dimension_numbers = #tpu.dot_dimension_numbers<[1], [0], [0], [1], [0, 0, 1, 1], [], []>} : vector<8x32xf32>, vector<32x128xf32>, vector<8x128xf32> -> vector<8x128xf32>
    %643 = arith.addf %642, %374 : vector<8x128xf32>
    %644 = vector.extract_strided_slice %643 {offsets = [0, 0], sizes = [8, 96], strides = [1, 1]} : vector<8x128xf32> to vector<8x96xf32>
    %645 = arith.negf %644 : vector<8x96xf32>
    %646 = math.exp %645 : vector<8x96xf32>
    %cst_189 = arith.constant 1.000000e+00 : f32
    %647 = vector.broadcast %cst_189 : f32 to vector<8x96xf32>
    %648 = arith.addf %647, %646 : vector<8x96xf32>
    %649 = arith.divf %647, %648 : vector<8x96xf32>
    %650 = vector.extract_strided_slice %643 {offsets = [0, 96], sizes = [8, 32], strides = [1, 1]} : vector<8x128xf32> to vector<8x32xf32>
    %651 = math.tanh %650 : vector<8x32xf32>
    %652 = vector.extract_strided_slice %649 {offsets = [0, 0], sizes = [8, 32], strides = [1, 1]} : vector<8x96xf32> to vector<8x32xf32>
    %653 = vector.extract_strided_slice %649 {offsets = [0, 32], sizes = [8, 32], strides = [1, 1]} : vector<8x96xf32> to vector<8x32xf32>
    %654 = vector.extract_strided_slice %649 {offsets = [0, 64], sizes = [8, 32], strides = [1, 1]} : vector<8x96xf32> to vector<8x32xf32>
    %655 = arith.mulf %653, %638 : vector<8x32xf32>
    %656 = arith.mulf %652, %651 : vector<8x32xf32>
    %657 = arith.addf %655, %656 : vector<8x32xf32>
    %658 = math.tanh %657 : vector<8x32xf32>
    %659 = arith.mulf %654, %658 : vector<8x32xf32>
    %c0_190 = arith.constant 0 : index
    %c0_191 = arith.constant 0 : index
    %660 = vector.load %arg19[%c0_190, %c0_191] : memref<128x32xf32, #tpu.memory_space<vmem>>, vector<8x32xf32>
    tpu.vector_store %arg19[%c0_190, %c0_191], %659 {strides = array<i32>} : memref<128x32xf32, #tpu.memory_space<vmem>>, vector<8x32xf32>,
    %c0_192 = arith.constant 0 : index
    %c0_193 = arith.constant 0 : index
    %661 = vector.load %arg19[%c0_192, %c0_193] : memref<128x32xf32, #tpu.memory_space<vmem>>, vector<128x32xf32>
    %c0_194 = arith.constant 0 : index
    %c0_195 = arith.constant 0 : index
    %662 = vector.load %arg13[%c0_194, %c0_195] : memref<32x16xf32, #tpu.memory_space<vmem>>, vector<32x16xf32>
    %cst_196 = arith.constant dense<0.000000e+00> : vector<128x16xf32>
    %663 = tpu.matmul %661, %662, %cst_196 {dimension_numbers = #tpu.dot_dimension_numbers<[1], [0], [0], [1], [0, 0, 1, 1], [], []>} : vector<128x32xf32>, vector<32x16xf32>, vector<128x16xf32> -> vector<128x16xf32>
    %c0_197 = arith.constant 0 : index
    %c0_198 = arith.constant 0 : index
    %664 = vector.load %arg14[%c0_197, %c0_198] : memref<1x16xf32, #tpu.memory_space<vmem>>, vector<1x16xf32>
    %665 = vector.shape_cast %664 : vector<1x16xf32> to vector<1x16xf32>
    %666 = vector.broadcast %665 : vector<1x16xf32> to vector<128x16xf32>
    %667 = arith.addf %663, %666 : vector<128x16xf32>
    %c0_199 = arith.constant 0 : index
    %c0_200 = arith.constant 0 : index
    %668 = vector.load %arg15[%c0_199, %c0_200] : memref<128x16xf32, #tpu.memory_space<vmem>>, vector<128x16xf32>
    tpu.vector_store %arg15[%c0_199, %c0_200], %667 {strides = array<i32>} : memref<128x16xf32, #tpu.memory_space<vmem>>, vector<128x16xf32>,
    return
  }
  func.func @transform_0(%arg0: i32) -> (i32, i32) {
    %c0_i32 = arith.constant 0 : i32
    %c0_i32_0 = arith.constant 0 : i32
    %c0_i32_1 = arith.constant 0 : i32
    return %c0_i32, %c0_i32_0 : i32, i32
  }
  func.func @transform_1(%arg0: i32) -> (i32, i32) {
    %c0_i32 = arith.constant 0 : i32
    %c0_i32_0 = arith.constant 0 : i32
    %c0_i32_1 = arith.constant 0 : i32
    return %c0_i32, %c0_i32_0 : i32, i32
  }
  func.func @transform_2(%arg0: i32) -> (i32, i32) {
    %c0_i32 = arith.constant 0 : i32
    %c0_i32_0 = arith.constant 0 : i32
    %c0_i32_1 = arith.constant 0 : i32
    return %c0_i32, %c0_i32_0 : i32, i32
  }
  func.func @transform_3(%arg0: i32) -> (i32, i32) {
    %c0_i32 = arith.constant 0 : i32
    %c0_i32_0 = arith.constant 0 : i32
    %c0_i32_1 = arith.constant 0 : i32
    return %c0_i32, %c0_i32_0 : i32, i32
  }
  func.func @transform_4(%arg0: i32) -> (i32, i32) {
    %c0_i32 = arith.constant 0 : i32
    %c0_i32_0 = arith.constant 0 : i32
    %c0_i32_1 = arith.constant 0 : i32
    return %c0_i32, %c0_i32_0 : i32, i32
  }
  func.func @transform_5(%arg0: i32) -> (i32, i32) {
    %c0_i32 = arith.constant 0 : i32
    %c0_i32_0 = arith.constant 0 : i32
    %c0_i32_1 = arith.constant 0 : i32
    return %c0_i32, %c0_i32_0 : i32, i32
  }
  func.func @transform_6(%arg0: i32) -> (i32, i32) {
    %c0_i32 = arith.constant 0 : i32
    %c0_i32_0 = arith.constant 0 : i32
    %c0_i32_1 = arith.constant 0 : i32
    return %c0_i32, %c0_i32_0 : i32, i32
  }
  func.func @transform_7(%arg0: i32) -> (i32, i32) {
    %c0_i32 = arith.constant 0 : i32
    %c0_i32_0 = arith.constant 0 : i32
    %c0_i32_1 = arith.constant 0 : i32
    return %c0_i32, %c0_i32_0 : i32, i32
  }
  func.func @transform_8(%arg0: i32) -> (i32, i32) {
    %c0_i32 = arith.constant 0 : i32
    %c0_i32_0 = arith.constant 0 : i32
    %c0_i32_1 = arith.constant 0 : i32
    return %c0_i32, %c0_i32_0 : i32, i32
  }
  func.func @transform_9(%arg0: i32) -> (i32, i32) {
    %c0_i32 = arith.constant 0 : i32
    %c0_i32_0 = arith.constant 0 : i32
    %c0_i32_1 = arith.constant 0 : i32
    return %c0_i32, %c0_i32_0 : i32, i32
  }
  func.func @transform_10(%arg0: i32) -> (i32, i32) {
    %c0_i32 = arith.constant 0 : i32
    %c0_i32_0 = arith.constant 0 : i32
    %c0_i32_1 = arith.constant 0 : i32
    return %c0_i32, %c0_i32_0 : i32, i32
  }
  func.func @transform_11(%arg0: i32) -> (i32, i32) {
    %c0_i32 = arith.constant 0 : i32
    %c0_i32_0 = arith.constant 0 : i32
    %c0_i32_1 = arith.constant 0 : i32
    return %c0_i32, %c0_i32_0 : i32, i32
  }
  func.func @transform_12(%arg0: i32) -> (i32, i32) {
    %c0_i32 = arith.constant 0 : i32
    %c0_i32_0 = arith.constant 0 : i32
    %c0_i32_1 = arith.constant 0 : i32
    return %c0_i32, %c0_i32_0 : i32, i32
  }
  func.func @transform_13(%arg0: i32) -> (i32, i32) {
    %c0_i32 = arith.constant 0 : i32
    %c0_i32_0 = arith.constant 0 : i32
    %c0_i32_1 = arith.constant 0 : i32
    return %c0_i32, %c0_i32_0 : i32, i32
  }
  func.func @transform_14(%arg0: i32) -> (i32, i32) {
    %c0_i32 = arith.constant 0 : i32
    %c0_i32_0 = arith.constant 0 : i32
    %c0_i32_1 = arith.constant 0 : i32
    return %c0_i32, %c0_i32_0 : i32, i32
  }
}

</mosaic_0001>

<bundles_post_ra>
// kernel: _lambda_.1
= control target key start
LH: loop header
LB: loop body
LE: loop exit
PB: predicated region body
PF: predicated region fallthrough
CT: control target
= control target key end

     0   :  { %vm66_vm0 = vcmask 64512   ;;  %vm430_vm1 = vcmask 261120   ;;  %vm840_vm2 = vcmask 523264   ;;  %vm1268_vm3 = vcmask 130048   ;;  %s4061_s28 = smov 32   ;;  %s4062_s29 = smov 64   ;;  %s5236_s1 = inlined_call_operand.vmem [shape: f32[24,32], index: 1, kind: input, shape index: {}]   ;;  %s5237_s0 = inlined_call_operand.vmem [shape: f32[144,8], index: 0, kind: input, shape index: {}]   ;;  %s5238_s2 = inlined_call_operand.vmem [shape: f32[1,32], index: 2, kind: input, shape index: {}]   ;;  %s5239_s3 = inlined_call_operand.vmem [shape: f32[96,64], index: 3, kind: input, shape index: {}]   ;;  %s5240_s5 = inlined_call_operand.vmem [shape: f32[192,16], index: 5, kind: input, shape index: {}]   ;;  %s5241_s4 = inlined_call_operand.vmem [shape: f32[1,64], index: 4, kind: input, shape index: {}]   ;;  %s5242_s8 = inlined_call_operand.vmem [shape: f32[32,128], index: 8, kind: input, shape index: {}]   ;;  %s5243_s7 = inlined_call_operand.vmem [shape: f32[16,128], index: 7, kind: input, shape index: {}]   ;;  %s5244_s6 = inlined_call_operand.vmem [shape: f32[1,16], index: 6, kind: input, shape index: {}, may-alias: {6,13}]   ;;  %s5245_s9 = inlined_call_operand.vmem [shape: f32[1,128], index: 9, kind: input, shape index: {}]   ;;  %s5246_s10 = inlined_call_operand.vmem [shape: f32[32,128], index: 10, kind: input, shape index: {}]   ;;  %s5247_s11 = inlined_call_operand.vmem [shape: f32[1,128], index: 11, kind: input, shape index: {}]   ;;  %s5248_s12 = inlined_call_operand.vmem [shape: f32[32,16], index: 12, kind: input, shape index: {}]   ;;  %s5249_s13 = inlined_call_operand.vmem [shape: f32[1,16], index: 13, kind: input, shape index: {}, may-alias: {6,13}]   ;;  %s5250_s14 = inlined_call_operand.vmem [shape: f32[128,16], index: 14, kind: output, shape index: {}]  }
   0x1   :  { %v65_v0 = vld [vmem:[%s5236_s1 + $0x8] sm:$0xff]  ;;  %v4144_v1 = vld [vmem:[%s5237_s0 + $0x50] sm:$0xff]  ;;  %v63_v2 = vld [vmem:[%s5236_s1] sm:$0xff] }
   0x2   :  { %3791 = vmatpush.msra.mxu1 %v65_v0  ;;  %3792 = vmatpush.msra.mxu2 %v65_v0  ;;  %v4152_v3 = vld [vmem:[%s5237_s0 + $0x70] sm:$0xff]  ;;  %v48_v5 = vld [vmem:[%s5237_s0 + $0x8] sm:$0xff]  ;;  %v4168_v6 = vld [vmem:[%s5237_s0 + $0x58] sm:$0xff] }
   0x3   :  { %v264_v4 = vld [vmem:[%s5236_s1 + $0x10] sm:$0xff]  ;;  %3563 = vmatmul.msk.f32.vlgmr.msra.gmra.mxu1 %vm66_vm0, %v4144_v1  ;;  %3567 = vmatmul.msk.f32.vlgmr.msra.gmra.mxu2 %vm66_vm0, %v4152_v3  ;;  %v4173_v7 = vld [vmem:[%s5237_s0 + $0x78] sm:$0xff]  ;;  %v4186_v9 = vld [vmem:[%s5237_s0 + $0x60] sm:$0xff] }
   0x4   :  { %198 = vmatpush.msrb.mxu1 %v63_v2  ;;  %328 = vmatpush.msrb.mxu2 %v264_v4  ;;  %v248_v8 = vld [vmem:[%s5237_s0 + $0x10] sm:$0xff]  ;;  %v4191_v10 = vld [vmem:[%s5237_s0 + $0x80] sm:$0xff]  ;;  %v249_v11 = vld [vmem:[%s5237_s0 + $0x18] sm:$0xff] }
   0x5   :  { %130 = vmatpush.msra.mxu0 %v65_v0  ;;  %v60_v12 = vld [vmem:[%s5237_s0 + $0x68] sm:$0xff]  ;;  %v250_v13 = vld [vmem:[%s5237_s0 + $0x20] sm:$0xff]  ;;  %v252_v16 = vld [vmem:[%s5237_s0 + $0x30] sm:$0xff] }
   0x6   :  { %3554 = vmatmul.msk.f32.vlgmr.msra.gmra.mxu0 %vm66_vm0, %v48_v5  ;;  %v47_v14 = vld [vmem:[%s5237_s0] sm:$0xff]  ;;  %v251_v15 = vld [vmem:[%s5237_s0 + $0x28] sm:$0xff]  ;;  %v253_v17 = vld [vmem:[%s5237_s0 + $0x38] sm:$0xff] }
   0x7   :  { %v254_v18 = vld [vmem:[%s5237_s0 + $0x40] sm:$0xff]  ;;  %v473_v19 = vld [vmem:[%s5239_s3 + $0x38] sm:$0xff]  ;;  %v255_v20 = vld [vmem:[%s5237_s0 + $0x48] sm:$0xff] }
   0x8   :  { %534 = vmatpush.msrb.mxu0 %v473_v19  ;;  %3793 = vmatpush.msra.mxu3 %v473_v19  ;;  %v472_v21 = vld [vmem:[%s5239_s3 + $0x30] sm:$0xff]  ;;  %v674_v22 = vld [vmem:[%s5239_s3 + $0x58] sm:$0xff]  ;;  %v471_v23 = vld [vmem:[%s5239_s3 + $0x28] sm:$0xff] }
   0x9   :  { %735 = vmatpush.msra.mxu1 %v674_v22  ;;  %v470_v24 = vld [vmem:[%s5239_s3 + $0x20] sm:$0xff]  ;;  %v263_v31 = vld [vmem:[%s5237_s0 + $0x88] sm:$0xff]  ;;  %v673_v32 = vld [vmem:[%s5239_s3 + $0x50] sm:$0xff] }
   0xa   :  { %535 = vmatpush.msrb.mxu0 %v472_v21  ;;  %3794 = vmatpush.msra.mxu3 %v472_v21  ;;  %v468_v33 = vld [vmem:[%s5239_s3 + $0x18] sm:$0xff]  ;;  %v672_v34 = vld [vmem:[%s5239_s3 + $0x48] sm:$0xff]  ;;  %v671_v36 = vld [vmem:[%s5239_s3 + $0x40] sm:$0xff] }
   0xb   :  { %3564 = vmatmul.msk.f32.gmra.mxu1 %vm66_vm0, %v4168_v6  ;;  %3568 = vmatmul.msk.f32.gmra.mxu2 %vm66_vm0, %v4173_v7  ;;  %v4322_v42 = vld [vmem:[%s5238_s2] ss:$0 sm:$0xff]  ;;  %v467_v50 = vld [vmem:[%s5239_s3 + $0x10] sm:$0xff] }
   0xc   :  { %536 = vmatpush.msrb.mxu0 %v471_v23  ;;  %3795 = vmatpush.msra.mxu3 %v471_v23 }
   0xd   :  { %736 = vmatpush.msra.mxu1 %v673_v32 }
   0xe   :  { %3555 = vmatmul.msk.f32.gmra.mxu0 %vm66_vm0, %v248_v8  ;;  %3796 = vmatpush.msra.mxu3 %v470_v24 }
   0xf   :  { %537 = vmatpush.msrb.mxu0 %v470_v24  ;;  %737 = vmatpush.msra.mxu1 %v672_v34 }
  0x11   :  { %602 = vmatpush.msra.mxu0 %v468_v33  ;;  %738 = vmatpush.msra.mxu1 %v671_v36 }
  0x13   :  { %3565 = vmatmul.msk.f32.gmra.mxu1 %vm66_vm0, %v4186_v9  ;;  %3569 = vmatmul.msk.f32.gmra.mxu2 %vm66_vm0, %v4191_v10 }
  0x14   :  { %603 = vmatpush.msra.mxu0 %v467_v50 }
  0x16   :  { %3556 = vmatmul.msk.f32.gmra.mxu0 %vm66_vm0, %v249_v11 }
  0x1b   :  { %3566 = vmatmul.msk.f32.gmra.mxu1 %vm66_vm0, %v60_v12  ;;  %3586 = vmatmul.msk.f32.vlgmr.msrb.gmra.mxu2 %vm66_vm0, %v248_v8 }
  0x1e   :  { %3557 = vmatmul.msk.f32.gmra.mxu0 %vm66_vm0, %v250_v13 }
  0x23   :  { %3570 = vmatmul.msk.f32.vlgmr.msrb.gmra.mxu1 %vm66_vm0, %v47_v14  ;;  %3587 = vmatmul.msk.f32.gmra.mxu2 %vm66_vm0, %v249_v11 }
  0x26   :  { %3558 = vmatmul.msk.f32.gmra.mxu0 %vm66_vm0, %v251_v15 }
  0x2b   :  { %3571 = vmatmul.msk.f32.gmra.mxu1 %vm66_vm0, %v48_v5  ;;  %3588 = vmatmul.msk.f32.gmra.mxu2 %vm66_vm0, %v250_v13 }
  0x2e   :  { %3559 = vmatmul.msk.f32.gmra.mxu0 %vm66_vm0, %v252_v16 }
  0x33   :  { %3572 = vmatmul.msk.f32.gmra.mxu1 %vm66_vm0, %v248_v8  ;;  %3589 = vmatmul.msk.f32.gmra.mxu2 %vm66_vm0, %v251_v15 }
  0x36   :  { %3560 = vmatmul.msk.f32.gmra.mxu0 %vm66_vm0, %v253_v17 }
  0x3b   :  { %3573 = vmatmul.msk.f32.gmra.mxu1 %vm66_vm0, %v249_v11  ;;  %3590 = vmatmul.msk.f32.gmra.mxu2 %vm66_vm0, %v252_v16  ;;  %v466_v11 = vld [vmem:[%s5239_s3 + $0x8] sm:$0xff] }
  0x3c   :  { %604 = vmatpush.msra.mxu0 %v466_v11 }
  0x3e   :  { %3561 = vmatmul.msk.f32.gmra.mxu0 %vm66_vm0, %v254_v18 }
  0x43   :  { %3574 = vmatmul.msk.f32.gmra.mxu1 %vm66_vm0, %v250_v13  ;;  %3591 = vmatmul.msk.f32.gmra.mxu2 %vm66_vm0, %v253_v17 }
  0x46   :  { %3562 = vmatmul.msk.f32.gmra.mxu0 %vm66_vm0, %v255_v20 }
  0x4b   :  { %3575 = vmatmul.msk.f32.gmra.mxu1 %vm66_vm0, %v251_v15  ;;  %3592 = vmatmul.msk.f32.gmra.mxu2 %vm66_vm0, %v254_v18 }
  0x53   :  { %3576 = vmatmul.msk.f32.gmra.mxu1 %vm66_vm0, %v252_v16  ;;  %3593 = vmatmul.msk.f32.gmra.mxu2 %vm66_vm0, %v255_v20 }
  0x5b   :  { %3577 = vmatmul.msk.f32.gmra.mxu1 %vm66_vm0, %v253_v17  ;;  %3594 = vmatmul.msk.f32.gmra.mxu2 %vm66_vm0, %v4144_v1 }
  0x63   :  { %3578 = vmatmul.msk.f32.gmra.mxu1 %vm66_vm0, %v254_v18  ;;  %3595 = vmatmul.msk.f32.gmra.mxu2 %vm66_vm0, %v4168_v6 }
  0x6b   :  { %3579 = vmatmul.msk.f32.gmra.mxu1 %vm66_vm0, %v255_v20  ;;  %3596 = vmatmul.msk.f32.gmra.mxu2 %vm66_vm0, %v4186_v9 }
  0x73   :  { %3580 = vmatmul.msk.f32.gmra.mxu1 %vm66_vm0, %v4144_v1  ;;  %3597 = vmatmul.msk.f32.gmra.mxu2 %vm66_vm0, %v60_v12 }
  0x7b   :  { %3581 = vmatmul.msk.f32.gmra.mxu1 %vm66_vm0, %v4168_v6  ;;  %3598 = vmatmul.msk.f32.gmra.mxu2 %vm66_vm0, %v4152_v3 }
  0x80   :  { %v4278_v25 = vpop.f32.mrf.mxu1 }
  0x83   :  { %3582 = vmatmul.msk.f32.gmra.mxu1 %vm66_vm0, %v4186_v9  ;;  %3599 = vmatmul.msk.f32.gmra.mxu2 %vm66_vm0, %v4173_v7  ;;  %v132_v29 = vpop.f32.mrf.mxu0 }
  0x86   :  { %v4284_v26 = vpop.f32.mrf.mxu2 }
  0x88   :  { %v4286_v27 = vpop.f32.mrf.mxu1 }
  0x8b   :  { %3583 = vmatmul.msk.f32.gmra.mxu1 %vm66_vm0, %v60_v12  ;;  %3600 = vmatmul.msk.f32.gmra.mxu2 %vm66_vm0, %v4191_v10  ;;  %v135_v38 = vpop.f32.mrf.mxu0 }
  0x8e   :  { %v4291_v28 = vpop.f32.mrf.mxu2 }
  0x90   :  { %v4293_v30 = vpop.f32.mrf.mxu1 }
  0x93   :  { %3584 = vmatmul.msk.f32.gmra.mxu1 %vm66_vm0, %v4152_v3  ;;  %3601 = vmatmul.msk.f32.gmra.mxu2 %vm66_vm0, %v263_v31  ;;  %v138_v43 = vpop.f32.mrf.mxu0 }
  0x96   :  { %v4310_v35 = vpop.f32.mrf.mxu2 }
  0x98   :  { %v4315_v37 = vpop.f32.mrf.mxu1 }
  0x9b   :  { %3585 = vmatmul.msk.f32.gmra.mxu1 %vm66_vm0, %v4173_v7  ;;  %v141_v52 = vpop.f32.mrf.mxu0 }
  0x9e   :  { %v330_v39 = vpop.f32.mrf.mxu2 }
  0xa0   :  { %v200_v40 = vpop.f32.mrf.mxu1 }
  0xa1   :  { %v201_v41 = vadd.f32 %v200_v40, %v132_v29 }
  0xa3   :  { %v378_v44 = vadd.f32 %v330_v39, %v201_v41  ;;  %v144_v62 = vpop.f32.mrf.mxu0 }
  0xa5   :  { %v398_v45 = vadd.f32 %v4322_v42, %v378_v44 }
  0xa6   :  { %v333_v46 = vpop.f32.mrf.mxu2 }
  0xa7   :  { %v414_v47 = vmax.f32 %v398_v45, 0.0 }
  0xa8   :  { %v203_v48 = vpop.f32.mrf.mxu1 }
  0xa9   :  { %433 = vst.msk [vmem:[#allocation2 + $0x8] sm:$0xff] %vm430_vm1, %v414_v47  ;;  %v204_v49 = vadd.f32 %v203_v48, %v135_v38 }
  0xab   :  { %v379_v51 = vadd.f32 %v333_v46, %v204_v49  ;;  %v147_v9 = vpop.f32.mrf.mxu0 }
  0xad   :  { %v399_v53 = vadd.f32 %v4322_v42, %v379_v51 }
  0xae   :  { %v336_v54 = vpop.f32.mrf.mxu2 }
  0xaf   :  { %v415_v55 = vmax.f32 %v399_v53, 0.0 }
  0xb0   :  { %v206_v56 = vpop.f32.mrf.mxu1  ;;  %v4330_v57 = vld [vmem:[#allocation2 + $0x8] sm:$0xff] }
  0xb1   :  { %434 = vst.msk [vmem:[#allocation2 + $0x10] sm:$0xff] %vm430_vm1, %v415_v55  ;;  %v207_v58 = vadd.f32 %v206_v56, %v138_v43  ;;  %3602 = vmatmul.msk.f32.vlgmr.msrb.gmra.mxu0 %vm430_vm1, %v4330_v57  ;;  %v465_v43 = vld [vmem:[%s5239_s3] sm:$0xff] }
  0xb2   :  { %605 = vmatpush.msra.mxu0 %v465_v43 }
  0xb3   :  { %v380_v59 = vadd.f32 %v336_v54, %v207_v58  ;;  %v150_v19 = vpop.f32.mrf.mxu0 }
  0xb5   :  { %v400_v60 = vadd.f32 %v4322_v42, %v380_v59 }
  0xb6   :  { %v339_v61 = vpop.f32.mrf.mxu2 }
  0xb7   :  { %v416_v63 = vmax.f32 %v400_v60, 0.0 }
  0xb8   :  { %v209_v0 = vpop.f32.mrf.mxu1  ;;  %v4336_v1 = vld [vmem:[#allocation2 + $0x10] sm:$0xff] }
  0xb9   :  { %435 = vst.msk [vmem:[#allocation2 + $0x18] sm:$0xff] %vm430_vm1, %v416_v63  ;;  %v210_v2 = vadd.f32 %v209_v0, %v141_v52  ;;  %3603 = vmatmul.msk.f32.gmra.mxu0 %vm430_vm1, %v4336_v1  ;;  %3634 = vmatmul.msk.f32.vlgmr.msra.gmra.mxu1 %vm430_vm1, %v4336_v1  ;;  %v4060_v52 = vmov 0.0  }
  0xba   :  { %431 = vst.msk [vmem:[#allocation2] sm:$0xff] %vm430_vm1, %v4060_v52 }
  0xbb   :  { %v381_v3 = vadd.f32 %v339_v61, %v210_v2  ;;  %v153_v33 = vpop.f32.mrf.mxu0  ;;  %432 = vst.msk [vmem:[#allocation2 + $0x88] sm:$0xff] %vm430_vm1, %v4060_v52 }
  0xbc   :  { %841 = vst.msk [vmem:[#allocation3] sm:$0xff] %vm840_vm2, %v4060_v52 }
  0xbd   :  { %v401_v4 = vadd.f32 %v4322_v42, %v381_v3  ;;  %842 = vst.msk [vmem:[#allocation3 + $0x88] sm:$0xff] %vm840_vm2, %v4060_v52 }
  0xbe   :  { %v342_v5 = vpop.f32.mrf.mxu2 }
  0xbf   :  { %v417_v6 = vmax.f32 %v401_v4, 0.0 }
  0xc0   :  { %v212_v7 = vpop.f32.mrf.mxu1  ;;  %v4344_v8 = vld [vmem:[#allocation2 + $0x18] sm:$0xff] }
  0xc1   :  { %436 = vst.msk [vmem:[#allocation2 + $0x20] sm:$0xff] %vm430_vm1, %v417_v6  ;;  %v213_v10 = vadd.f32 %v212_v7, %v144_v62  ;;  %3604 = vmatmul.msk.f32.gmra.mxu0 %vm430_vm1, %v4344_v8  ;;  %3635 = vmatmul.msk.f32.gmra.mxu1 %vm430_vm1, %v4344_v8 }
  0xc3   :  { %v382_v12 = vadd.f32 %v342_v5, %v213_v10  ;;  %v156_v46 = vpop.f32.mrf.mxu0 }
  0xc5   :  { %v402_v13 = vadd.f32 %v4322_v42, %v382_v12 }
  0xc6   :  { %v345_v14 = vpop.f32.mrf.mxu2 }
  0xc7   :  { %v418_v15 = vmax.f32 %v402_v13, 0.0 }
  0xc8   :  { %v215_v16 = vpop.f32.mrf.mxu1  ;;  %v4355_v17 = vld [vmem:[#allocation2 + $0x20] sm:$0xff] }
  0xc9   :  { %437 = vst.msk [vmem:[#allocation2 + $0x28] sm:$0xff] %vm430_vm1, %v418_v15  ;;  %v216_v18 = vadd.f32 %v215_v16, %v147_v9  ;;  %3605 = vmatmul.msk.f32.gmra.mxu0 %vm430_vm1, %v4355_v17  ;;  %3636 = vmatmul.msk.f32.gmra.mxu1 %vm430_vm1, %v4355_v17 }
  0xcb   :  { %v383_v20 = vadd.f32 %v345_v14, %v216_v18 }
  0xcd   :  { %v403_v21 = vadd.f32 %v4322_v42, %v383_v20  ;;  %v890_v20 = vld [vmem:[%s5240_s5 + $0x70] sm:$0xff] }
  0xce   :  { %v348_v22 = vpop.f32.mrf.mxu2 }
  0xcf   :  { %v419_v23 = vmax.f32 %v403_v21, 0.0 }
  0xd0   :  { %v218_v24 = vpop.f32.mrf.mxu1  ;;  %v4363_v29 = vld [vmem:[#allocation2 + $0x28] sm:$0xff] }
  0xd1   :  { %438 = vst.msk [vmem:[#allocation2 + $0x30] sm:$0xff] %vm430_vm1, %v419_v23  ;;  %v219_v31 = vadd.f32 %v218_v24, %v150_v19  ;;  %3606 = vmatmul.msk.f32.gmra.mxu0 %vm430_vm1, %v4363_v29  ;;  %3637 = vmatmul.msk.f32.gmra.mxu1 %vm430_vm1, %v4363_v29  ;;  %v1096_v19 = vld [vmem:[%s5240_s5 + $0xb8] sm:$0xff] }
  0xd2   :  { %1153 = vmatpush.msrb.mxu0 %v1096_v19  ;;  %v1089_v19 = vld [vmem:[%s5240_s5 + $0x80] sm:$0xff] }
  0xd3   :  { %v384_v32 = vadd.f32 %v348_v22, %v219_v31 }
  0xd5   :  { %v404_v34 = vadd.f32 %v4322_v42, %v384_v32 }
  0xd6   :  { %v351_v36 = vpop.f32.mrf.mxu2 }
  0xd7   :  { %v420_v38 = vmax.f32 %v404_v34, 0.0 }
  0xd8   :  { %v221_v39 = vpop.f32.mrf.mxu1  ;;  %v4371_v40 = vld [vmem:[#allocation2 + $0x30] sm:$0xff] }
  0xd9   :  { %439 = vst.msk [vmem:[#allocation2 + $0x38] sm:$0xff] %vm430_vm1, %v420_v38  ;;  %v222_v41 = vadd.f32 %v221_v39, %v153_v33  ;;  %3607 = vmatmul.msk.f32.gmra.mxu0 %vm430_vm1, %v4371_v40  ;;  %3638 = vmatmul.msk.f32.gmra.mxu1 %vm430_vm1, %v4371_v40  ;;  %v1095_v39 = vld [vmem:[%s5240_s5 + $0xb0] sm:$0xff] }
  0xda   :  { %1154 = vmatpush.msrb.mxu0 %v1095_v39 }
  0xdb   :  { %v385_v44 = vadd.f32 %v351_v36, %v222_v41 }
  0xdd   :  { %v405_v45 = vadd.f32 %v4322_v42, %v385_v44 }
  0xde   :  { %v354_v47 = vpop.f32.mrf.mxu2 }
  0xdf   :  { %v421_v48 = vmax.f32 %v405_v45, 0.0 }
  0xe0   :  { %v224_v49 = vpop.f32.mrf.mxu1  ;;  %v4382_v50 = vld [vmem:[#allocation2 + $0x38] sm:$0xff] }
  0xe1   :  { %440 = vst.msk [vmem:[#allocation2 + $0x40] sm:$0xff] %vm430_vm1, %v421_v48  ;;  %v225_v51 = vadd.f32 %v224_v49, %v156_v46  ;;  %3608 = vmatmul.msk.f32.gmra.mxu0 %vm430_vm1, %v4382_v50  ;;  %3639 = vmatmul.msk.f32.gmra.mxu1 %vm430_vm1, %v4382_v50 }
  0xe3   :  { %v386_v53 = vadd.f32 %v354_v47, %v225_v51  ;;  %v889_v47 = vld [vmem:[%s5240_s5 + $0x68] sm:$0xff] }
  0xe5   :  { %v406_v54 = vadd.f32 %v4322_v42, %v386_v53 }
  0xe6   :  { %v357_v55 = vpop.f32.mrf.mxu2 }
  0xe7   :  { %v422_v56 = vmax.f32 %v406_v54, 0.0 }
  0xe8   :  { %v227_v58 = vpop.f32.mrf.mxu1  ;;  %v4394_v59 = vld [vmem:[#allocation2 + $0x40] sm:$0xff] }
  0xe9   :  { %441 = vst.msk [vmem:[#allocation2 + $0x48] sm:$0xff] %vm430_vm1, %v422_v56  ;;  %v228_v60 = vadd.f32 %v227_v58, %v4278_v25  ;;  %3609 = vmatmul.msk.f32.gmra.mxu0 %vm430_vm1, %v4394_v59  ;;  %3640 = vmatmul.msk.f32.gmra.mxu1 %vm430_vm1, %v4394_v59 }
  0xeb   :  { %v387_v61 = vadd.f32 %v357_v55, %v228_v60  ;;  %v1094_v55 = vld [vmem:[%s5240_s5 + $0xa8] sm:$0xff] }
  0xec   :  { %1155 = vmatpush.msrb.mxu0 %v1094_v55 }
  0xed   :  { %v407_v62 = vadd.f32 %v4322_v42, %v387_v61  ;;  %v887_v61 = vld [vmem:[%s5240_s5 + $0x58] sm:$0xff] }
  0xee   :  { %v360_v63 = vpop.f32.mrf.mxu2 }
  0xef   :  { %v423_v0 = vmax.f32 %v407_v62, 0.0  ;;  %v1092_v62 = vld [vmem:[%s5240_s5 + $0x98] sm:$0xff] }
  0xf0   :  { %v230_v2 = vpop.f32.mrf.mxu1  ;;  %v4403_v3 = vld [vmem:[#allocation2 + $0x48] sm:$0xff] }
  0xf1   :  { %442 = vst.msk [vmem:[#allocation2 + $0x50] sm:$0xff] %vm430_vm1, %v423_v0  ;;  %v231_v4 = vadd.f32 %v230_v2, %v4286_v27  ;;  %3610 = vmatmul.msk.f32.gmra.mxu0 %vm430_vm1, %v4403_v3  ;;  %3641 = vmatmul.msk.f32.gmra.mxu1 %vm430_vm1, %v4403_v3  ;;  %v891_v27 = vld [vmem:[%s5240_s5 + $0x78] sm:$0xff]  ;;  %v881_v2 = vld [vmem:[%s5240_s5 + $0x30] sm:$0xff] }
  0xf2   :  { %948 = vmatpush.msra.mxu2 %v891_v27  ;;  %v882_v0 = vld [vmem:[%s5240_s5 + $0x38] sm:$0xff]  ;;  %v877_v27 = vld [vmem:[%s5240_s5 + $0x10] sm:$0xff] }
  0xf3   :  { %v388_v25 = vadd.f32 %v360_v63, %v231_v4  ;;  %v886_v63 = vld [vmem:[%s5240_s5 + $0x50] sm:$0xff]  ;;  %1016 = vmatpush.msrb.mxu3 %v882_v0  ;;  %v885_v4 = vld [vmem:[%s5240_s5 + $0x48] sm:$0xff] }
  0xf4   :  { %949 = vmatpush.msra.mxu2 %v890_v20 }
  0xf5   :  { %v408_v5 = vadd.f32 %v4322_v42, %v388_v25  ;;  %1017 = vmatpush.msrb.mxu3 %v881_v2  ;;  %v880_v25 = vld [vmem:[%s5240_s5 + $0x28] sm:$0xff] }
  0xf6   :  { %v363_v6 = vpop.f32.mrf.mxu2  ;;  %950 = vmatpush.msra.mxu2 %v889_v47 }
  0xf7   :  { %v424_v7 = vmax.f32 %v408_v5, 0.0  ;;  %1018 = vmatpush.msrb.mxu3 %v880_v25  ;;  %v879_v5 = vld [vmem:[%s5240_s5 + $0x20] sm:$0xff] }
  0xf8   :  { %v233_v9 = vpop.f32.mrf.mxu1  ;;  %v4412_v10 = vld [vmem:[#allocation2 + $0x50] sm:$0xff] }
  0xf9   :  { %443 = vst.msk [vmem:[#allocation2 + $0x58] sm:$0xff] %vm430_vm1, %v424_v7  ;;  %v234_v11 = vadd.f32 %v233_v9, %v4293_v30  ;;  %3611 = vmatmul.msk.f32.gmra.mxu0 %vm430_vm1, %v4412_v10  ;;  %3642 = vmatmul.msk.f32.gmra.mxu1 %vm430_vm1, %v4412_v10  ;;  %v670_v7 = vld [vmem:[#allocation2 + $0x88] sm:$0xff]  ;;  %v878_v9 = vld [vmem:[%s5240_s5 + $0x18] sm:$0xff] }
  0xfa   :  { %1019 = vmatpush.msrb.mxu3 %v879_v5 }
  0xfb   :  { %v389_v12 = vadd.f32 %v363_v6, %v234_v11  ;;  %v1090_v6 = vld [vmem:[%s5240_s5 + $0x88] sm:$0xff] }
  0xfc   :  { %1020 = vmatpush.msrb.mxu3 %v878_v9 }
  0xfd   :  { %v409_v13 = vadd.f32 %v4322_v42, %v389_v12  ;;  %v876_v12 = vld [vmem:[%s5240_s5 + $0x8] sm:$0xff] }
  0xfe   :  { %v366_v14 = vpop.f32.mrf.mxu2  ;;  %1021 = vmatpush.msrb.mxu3 %v877_v27 }
  0xff   :  { %v425_v15 = vmax.f32 %v409_v13, 0.0 }
 0x100   :  { %v236_v16 = vpop.f32.mrf.mxu1  ;;  %v4424_v18 = vld [vmem:[#allocation2 + $0x58] sm:$0xff]  ;;  %1022 = vmatpush.msrb.mxu3 %v876_v12 }
 0x101   :  { %444 = vst.msk [vmem:[#allocation2 + $0x60] sm:$0xff] %vm430_vm1, %v425_v15  ;;  %v237_v30 = vadd.f32 %v236_v16, %v4315_v37  ;;  %3612 = vmatmul.msk.f32.gmra.mxu0 %vm430_vm1, %v4424_v18  ;;  %3643 = vmatmul.msk.f32.gmra.mxu1 %vm430_vm1, %v4424_v18  ;;  %v449_v37 = vld [vmem:[#allocation2] sm:$0xff]  ;;  %v859_v16 = vld [vmem:[#allocation3] sm:$0xff] }
 0x102   :  { %v884_v15 = vld [vmem:[%s5240_s5 + $0x40] sm:$0xff] }
 0x103   :  { %v390_v21 = vadd.f32 %v366_v14, %v237_v30  ;;  %v875_v14 = vld [vmem:[%s5240_s5] sm:$0xff] }
 0x104   :  { %1023 = vmatpush.msrb.mxu3 %v875_v14 }
 0x105   :  { %v410_v22 = vadd.f32 %v4322_v42, %v390_v21 }
 0x106   :  { %v369_v23 = vpop.f32.mrf.mxu2 }
 0x107   :  { %v426_v24 = vmax.f32 %v410_v22, 0.0 }
 0x108   :  { %v239_v31 = vpop.f32.mrf.mxu1  ;;  %v4439_v32 = vld [vmem:[#allocation2 + $0x60] sm:$0xff] }
 0x109   :  { %445 = vst.msk [vmem:[#allocation2 + $0x68] sm:$0xff] %vm430_vm1, %v426_v24  ;;  %v240_v33 = vadd.f32 %v239_v31, %v4284_v26  ;;  %3613 = vmatmul.msk.f32.vlgmr.msra.gmra.mxu3 %vm430_vm1, %v4439_v32  ;;  %3618 = vmatmul.msk.f32.vlgmr.msra.gmra.mxu0 %vm430_vm1, %v449_v37  ;;  %v4606_v24 = vld [vmem:[%s5242_s8 + $0x18] sm:$0xff]  ;;  %v1263_v31 = vld [vmem:[%s5243_s7 + $0x8] sm:$0xff] }
 0x10a   :  { %3644 = vmatmul.msk.f32.gmra.mxu1 %vm430_vm1, %v4439_v32  ;;  %1610 = vmatpush.msra.mxu3 %v4606_v24 }
 0x10b   :  { %v391_v34 = vadd.f32 %v369_v23, %v240_v33  ;;  %v4601_v23 = vld [vmem:[%s5241_s4] ss:$0 sm:$0xff]  ;;  %1331 = vmatpush.msrb.mxu1 %v1263_v31 }
 0x10d   :  { %v411_v36 = vadd.f32 %v4322_v42, %v391_v34 }
 0x10e   :  { %v372_v38 = vpop.f32.mrf.mxu2 }
 0x10f   :  { %v427_v41 = vmax.f32 %v411_v36, 0.0 }
 0x110   :  { %v242_v43 = vpop.f32.mrf.mxu1  ;;  %v4452_v26 = vld [vmem:[#allocation2 + $0x68] sm:$0xff] }
 0x111   :  { %446 = vst.msk [vmem:[#allocation2 + $0x70] sm:$0xff] %vm430_vm1, %v427_v41  ;;  %v243_v44 = vadd.f32 %v242_v43, %v4291_v28  ;;  %3614 = vmatmul.msk.f32.gmra.mxu3 %vm430_vm1, %v4452_v26  ;;  %3619 = vmatmul.msk.f32.gmra.mxu0 %vm430_vm1, %v4330_v57 }
 0x112   :  { %3645 = vmatmul.msk.f32.gmra.mxu1 %vm430_vm1, %v4452_v26 }
 0x113   :  { %v392_v45 = vadd.f32 %v372_v38, %v243_v44 }
 0x115   :  { %v412_v46 = vadd.f32 %v4322_v42, %v392_v45 }
 0x116   :  { %v375_v51 = vpop.f32.mrf.mxu2 }
 0x117   :  { %v428_v48 = vmax.f32 %v412_v46, 0.0 }
 0x118   :  { %v245_v49 = vpop.f32.mrf.mxu1  ;;  %v4466_v28 = vld [vmem:[#allocation2 + $0x70] sm:$0xff] }
 0x119   :  { %447 = vst.msk [vmem:[#allocation2 + $0x78] sm:$0xff] %vm430_vm1, %v428_v48  ;;  %v246_v57 = vadd.f32 %v245_v49, %v4310_v35  ;;  %3615 = vmatmul.msk.f32.gmra.mxu3 %vm430_vm1, %v4466_v28  ;;  %3620 = vmatmul.msk.f32.gmra.mxu0 %vm430_vm1, %v4336_v1  ;;  %v888_v35 = vld [vmem:[%s5240_s5 + $0x60] sm:$0xff] }
 0x11a   :  { %3646 = vmatmul.msk.f32.gmra.mxu1 %vm430_vm1, %v4466_v28  ;;  %951 = vmatpush.msra.mxu2 %v888_v35 }
 0x11b   :  { %v393_v53 = vadd.f32 %v375_v51, %v246_v57 }
 0x11c   :  { %952 = vmatpush.msra.mxu2 %v887_v61 }
 0x11d   :  { %v413_v54 = vadd.f32 %v4322_v42, %v393_v53 }
 0x11e   :  { %953 = vmatpush.msra.mxu2 %v886_v63 }
 0x11f   :  { %v429_v56 = vmax.f32 %v413_v54, 0.0 }
 0x120   :  { %v4480_v58 = vld [vmem:[#allocation2 + $0x78] sm:$0xff]  ;;  %954 = vmatpush.msra.mxu2 %v885_v4 }
 0x121   :  { %448 = vst.msk [vmem:[#allocation2 + $0x80] sm:$0xff] %vm430_vm1, %v429_v56  ;;  %3616 = vmatmul.msk.f32.gmra.mxu3 %vm430_vm1, %v4480_v58  ;;  %3621 = vmatmul.msk.f32.gmra.mxu0 %vm430_vm1, %v4344_v8  ;;  %v1093_v8 = vld [vmem:[%s5240_s5 + $0xa0] sm:$0xff] }
 0x122   :  { %3647 = vmatmul.msk.f32.gmra.mxu1 %vm430_vm1, %v4480_v58  ;;  %1156 = vmatpush.msrb.mxu0 %v1093_v8 }
 0x123   :  { %955 = vmatpush.msra.mxu2 %v884_v15 }
 0x124   :  { %1157 = vmatpush.msrb.mxu0 %v1092_v62 }
 0x125   :  { %1418 = vmatpush.msrb.mxu2 %v4606_v24 }
 0x128   :  { %v469_v42 = vld [vmem:[#allocation2 + $0x80] sm:$0xff] }
 0x129   :  { %3617 = vmatmul.msk.f32.gmra.mxu3 %vm430_vm1, %v469_v42  ;;  %3622 = vmatmul.msk.f32.gmra.mxu0 %vm430_vm1, %v4355_v17 }
 0x12a   :  { %3648 = vmatmul.msk.f32.gmra.mxu1 %vm430_vm1, %v469_v42 }
 0x12e   :  { %v4496_v1 = vpop.f32.mrf.mxu0 }
 0x131   :  { %3623 = vmatmul.msk.f32.gmra.mxu0 %vm430_vm1, %v4363_v29  ;;  %3666 = vmatmul.msk.f32.vlgmr.msrb.gmra.mxu3 %vm840_vm2, %v859_v16 }
 0x132   :  { %3649 = vmatmul.msk.f32.gmra.mxu1 %vm430_vm1, %v670_v7 }
 0x136   :  { %v4503_v60 = vpop.f32.mrf.mxu0  ;;  %v740_v11 = vpop.f32.mrf.mxu1 }
 0x139   :  { %3624 = vmatmul.msk.f32.gmra.mxu0 %vm430_vm1, %v4371_v40 }
 0x13e   :  { %v4510_v17 = vpop.f32.mrf.mxu0 }
 0x141   :  { %3625 = vmatmul.msk.f32.gmra.mxu0 %vm430_vm1, %v4382_v50  ;;  %v1091_v50 = vld [vmem:[%s5240_s5 + $0x90] sm:$0xff] }
 0x142   :  { %1158 = vmatpush.msrb.mxu0 %v1091_v50 }
 0x144   :  { %1159 = vmatpush.msrb.mxu0 %v1090_v6 }
 0x146   :  { %v4517_v29 = vpop.f32.mrf.mxu0  ;;  %1160 = vmatpush.msrb.mxu0 %v1089_v19 }
 0x149   :  { %3626 = vmatmul.msk.f32.gmra.mxu0 %vm430_vm1, %v4394_v59 }
 0x14e   :  { %v4524_v40 = vpop.f32.mrf.mxu0 }
 0x151   :  { %3627 = vmatmul.msk.f32.gmra.mxu0 %vm430_vm1, %v4403_v3 }
 0x156   :  { %v4537_v59 = vpop.f32.mrf.mxu0 }
 0x159   :  { %3628 = vmatmul.msk.f32.gmra.mxu0 %vm430_vm1, %v4412_v10 }
 0x15e   :  { %v4547_v3 = vpop.f32.mrf.mxu0 }
 0x161   :  { %3629 = vmatmul.msk.f32.gmra.mxu0 %vm430_vm1, %v4424_v18  ;;  %v743_v18 = vpop.f32.mrf.mxu1 }
 0x166   :  { %v4561_v10 = vpop.f32.mrf.mxu0 }
 0x169   :  { %3630 = vmatmul.msk.f32.gmra.mxu0 %vm430_vm1, %v4439_v32  ;;  %v746_v20 = vpop.f32.mrf.mxu1 }
 0x16e   :  { %v4575_v13 = vpop.f32.mrf.mxu0 }
 0x171   :  { %3631 = vmatmul.msk.f32.gmra.mxu0 %vm430_vm1, %v4452_v26  ;;  %v749_v32 = vpop.f32.mrf.mxu1 }
 0x176   :  { %v4586_v30 = vpop.f32.mrf.mxu0 }
 0x179   :  { %3632 = vmatmul.msk.f32.gmra.mxu0 %vm430_vm1, %v4466_v28  ;;  %v752_v43 = vpop.f32.mrf.mxu1 }
 0x17e   :  { %v4593_v21 = vpop.f32.mrf.mxu0 }
 0x181   :  { %3633 = vmatmul.msk.f32.gmra.mxu0 %vm430_vm1, %v4480_v58  ;;  %v755_v28 = vpop.f32.mrf.mxu1 }
 0x186   :  { %v607_v22 = vpop.f32.mrf.mxu0 }
 0x187   :  { %v608_v37 = vadd.f32 %v607_v22, %v4496_v1 }
 0x189   :  { %v788_v33 = vadd.f32 %v740_v11, %v608_v37  ;;  %v758_v35 = vpop.f32.mrf.mxu1  ;;  %v1262_v37 = vld [vmem:[%s5243_s7] sm:$0xff] }
 0x18a   :  { %1332 = vmatpush.msrb.mxu1 %v1262_v37 }
 0x18b   :  { %v808_v34 = vadd.f32 %v4601_v23, %v788_v33 }
 0x18d   :  { %v824_v36 = vmax.f32 %v808_v34, 0.0 }
 0x18e   :  { %v610_v38 = vpop.f32.mrf.mxu0 }
 0x18f   :  { %843 = vst.msk [vmem:[#allocation3 + $0x8] sm:$0xff] %vm840_vm2, %v824_v36  ;;  %v611_v39 = vadd.f32 %v610_v38, %v4503_v60  ;;  %v4635_v60 = vld [vmem:[%s5242_s8 + $0x10] sm:$0xff] }
 0x190   :  { %1419 = vmatpush.msrb.mxu2 %v4635_v60  ;;  %1611 = vmatpush.msra.mxu3 %v4635_v60 }
 0x191   :  { %v789_v41 = vadd.f32 %v743_v18, %v611_v39  ;;  %v761_v0 = vpop.f32.mrf.mxu1 }
 0x193   :  { %v809_v26 = vadd.f32 %v4601_v23, %v789_v41 }
 0x195   :  { %v825_v44 = vmax.f32 %v809_v26, 0.0 }
 0x196   :  { %v613_v45 = vpop.f32.mrf.mxu0  ;;  %v860_v46 = vld [vmem:[#allocation3 + $0x8] sm:$0xff] }
 0x197   :  { %844 = vst.msk [vmem:[#allocation3 + $0x10] sm:$0xff] %vm840_vm2, %v825_v44  ;;  %v614_v47 = vadd.f32 %v613_v45, %v4510_v17  ;;  %3650 = vmatmul.msk.f32.vlgmr.msra.gmra.mxu2 %vm840_vm2, %v860_v46  ;;  %3667 = vmatmul.msk.f32.gmra.mxu3 %vm840_vm2, %v860_v46 }
 0x199   :  { %v790_v48 = vadd.f32 %v746_v20, %v614_v47  ;;  %v764_v7 = vpop.f32.mrf.mxu1 }
 0x19b   :  { %v810_v49 = vadd.f32 %v4601_v23, %v790_v48 }
 0x19d   :  { %v826_v51 = vmax.f32 %v810_v49, 0.0 }
 0x19e   :  { %v616_v57 = vpop.f32.mrf.mxu0  ;;  %v861_v53 = vld [vmem:[#allocation3 + $0x10] sm:$0xff] }
 0x19f   :  { %845 = vst.msk [vmem:[#allocation3 + $0x18] sm:$0xff] %vm840_vm2, %v826_v51  ;;  %v617_v54 = vadd.f32 %v616_v57, %v4517_v29  ;;  %3651 = vmatmul.msk.f32.gmra.mxu2 %vm840_vm2, %v861_v53  ;;  %3668 = vmatmul.msk.f32.gmra.mxu3 %vm840_vm2, %v861_v53 }
 0x1a0   :  { %3682 = vmatmul.msk.f32.vlgmr.msrb.gmra.mxu0 %vm840_vm2, %v861_v53 }
 0x1a1   :  { %v791_v55 = vadd.f32 %v749_v32, %v617_v54  ;;  %v767_v16 = vpop.f32.mrf.mxu1 }
 0x1a3   :  { %v811_v56 = vadd.f32 %v4601_v23, %v791_v55 }
 0x1a5   :  { %v827_v58 = vmax.f32 %v811_v56, 0.0 }
 0x1a6   :  { %v619_v42 = vpop.f32.mrf.mxu0  ;;  %v862_v1 = vld [vmem:[#allocation3 + $0x18] sm:$0xff] }
 0x1a7   :  { %846 = vst.msk [vmem:[#allocation3 + $0x20] sm:$0xff] %vm840_vm2, %v827_v58  ;;  %v620_v8 = vadd.f32 %v619_v42, %v4524_v40  ;;  %3652 = vmatmul.msk.f32.gmra.mxu2 %vm840_vm2, %v862_v1  ;;  %3669 = vmatmul.msk.f32.gmra.mxu3 %vm840_vm2, %v862_v1 }
 0x1a8   :  { %3683 = vmatmul.msk.f32.gmra.mxu0 %vm840_vm2, %v862_v1 }
 0x1a9   :  { %v792_v61 = vadd.f32 %v752_v43, %v620_v8  ;;  %v770_v33 = vpop.f32.mrf.mxu1  ;;  %v572_v43 = vpop.f32.mrf.mxu3 }
 0x1ab   :  { %v812_v17 = vadd.f32 %v4601_v23, %v792_v61 }
 0x1ad   :  { %v828_v62 = vmax.f32 %v812_v17, 0.0 }
 0x1ae   :  { %v622_v29 = vpop.f32.mrf.mxu0  ;;  %v863_v63 = vld [vmem:[#allocation3 + $0x20] sm:$0xff] }
 0x1af   :  { %847 = vst.msk [vmem:[#allocation3 + $0x28] sm:$0xff] %vm840_vm2, %v828_v62  ;;  %v623_v40 = vadd.f32 %v622_v29, %v4537_v59  ;;  %3653 = vmatmul.msk.f32.gmra.mxu2 %vm840_vm2, %v863_v63  ;;  %3670 = vmatmul.msk.f32.gmra.mxu3 %vm840_vm2, %v863_v63 }
 0x1b0   :  { %3684 = vmatmul.msk.f32.gmra.mxu0 %vm840_vm2, %v863_v63 }
 0x1b1   :  { %v793_v50 = vadd.f32 %v755_v28, %v623_v40  ;;  %v575_v57 = vpop.f32.mrf.mxu3 }
 0x1b3   :  { %v813_v2 = vadd.f32 %v4601_v23, %v793_v50 }
 0x1b5   :  { %v829_v4 = vmax.f32 %v813_v2, 0.0 }
 0x1b6   :  { %v625_v25 = vpop.f32.mrf.mxu0  ;;  %v864_v5 = vld [vmem:[#allocation3 + $0x28] sm:$0xff] }
 0x1b7   :  { %848 = vst.msk [vmem:[#allocation3 + $0x30] sm:$0xff] %vm840_vm2, %v829_v4  ;;  %v626_v6 = vadd.f32 %v625_v25, %v4547_v3  ;;  %3654 = vmatmul.msk.f32.gmra.mxu2 %vm840_vm2, %v864_v5  ;;  %3671 = vmatmul.msk.f32.gmra.mxu3 %vm840_vm2, %v864_v5 }
 0x1b8   :  { %3685 = vmatmul.msk.f32.gmra.mxu0 %vm840_vm2, %v864_v5 }
 0x1b9   :  { %v794_v59 = vadd.f32 %v758_v35, %v626_v6  ;;  %v578_v8 = vpop.f32.mrf.mxu3 }
 0x1bb   :  { %v814_v9 = vadd.f32 %v4601_v23, %v794_v59 }
 0x1bd   :  { %v830_v11 = vmax.f32 %v814_v9, 0.0 }
 0x1be   :  { %v628_v27 = vpop.f32.mrf.mxu0  ;;  %v865_v12 = vld [vmem:[#allocation3 + $0x30] sm:$0xff] }
 0x1bf   :  { %849 = vst.msk [vmem:[#allocation3 + $0x38] sm:$0xff] %vm840_vm2, %v830_v11  ;;  %v629_v14 = vadd.f32 %v628_v27, %v4561_v10  ;;  %3655 = vmatmul.msk.f32.gmra.mxu2 %vm840_vm2, %v865_v12  ;;  %3672 = vmatmul.msk.f32.gmra.mxu3 %vm840_vm2, %v865_v12  ;;  %v4666_v10 = vld [vmem:[%s5242_s8 + $0x8] sm:$0xff] }
 0x1c0   :  { %3686 = vmatmul.msk.f32.gmra.mxu0 %vm840_vm2, %v865_v12  ;;  %1420 = vmatpush.msrb.mxu2 %v4666_v10 }
 0x1c1   :  { %v795_v3 = vadd.f32 %v761_v0, %v629_v14  ;;  %1612 = vmatpush.msra.mxu3 %v4666_v10  ;;  %v581_v2 = vpop.f32.mrf.mxu3 }
 0x1c3   :  { %v815_v15 = vadd.f32 %v4601_v23, %v795_v3 }
 0x1c5   :  { %v831_v18 = vmax.f32 %v815_v15, 0.0 }
 0x1c6   :  { %v631_v19 = vpop.f32.mrf.mxu0  ;;  %v866_v20 = vld [vmem:[#allocation3 + $0x38] sm:$0xff] }
 0x1c7   :  { %850 = vst.msk [vmem:[#allocation3 + $0x40] sm:$0xff] %vm840_vm2, %v831_v18  ;;  %v632_v22 = vadd.f32 %v631_v19, %v4575_v13  ;;  %3656 = vmatmul.msk.f32.gmra.mxu2 %vm840_vm2, %v866_v20  ;;  %3673 = vmatmul.msk.f32.gmra.mxu3 %vm840_vm2, %v866_v20 }
 0x1c8   :  { %3687 = vmatmul.msk.f32.gmra.mxu0 %vm840_vm2, %v866_v20 }
 0x1c9   :  { %v796_v31 = vadd.f32 %v764_v7, %v632_v22  ;;  %v584_v27 = vpop.f32.mrf.mxu3 }
 0x1cb   :  { %v816_v13 = vadd.f32 %v4601_v23, %v796_v31 }
 0x1cd   :  { %v832_v32 = vmax.f32 %v816_v13, 0.0  ;;  %v1088_v13 = vld [vmem:[#allocation3 + $0x88] sm:$0xff] }
 0x1ce   :  { %v634_v34 = vpop.f32.mrf.mxu0  ;;  %v867_v36 = vld [vmem:[#allocation3 + $0x40] sm:$0xff] }
 0x1cf   :  { %851 = vst.msk [vmem:[#allocation3 + $0x48] sm:$0xff] %vm840_vm2, %v832_v32  ;;  %v635_v38 = vadd.f32 %v634_v34, %v4586_v30  ;;  %3657 = vmatmul.msk.f32.gmra.mxu2 %vm840_vm2, %v867_v36  ;;  %3674 = vmatmul.msk.f32.gmra.mxu3 %vm840_vm2, %v867_v36  ;;  %v773_v30 = vpop.f32.mrf.mxu1  ;;  %v4740_v34 = vld [vmem:[%s5244_s6] ss:$0 sm:$0xff] }
 0x1d0   :  { %3688 = vmatmul.msk.f32.gmra.mxu0 %vm840_vm2, %v867_v36 }
 0x1d1   :  { %v797_v39 = vadd.f32 %v767_v16, %v635_v38  ;;  %v1025_v31 = vpop.f32.mrf.mxu3 }
 0x1d3   :  { %v817_v41 = vadd.f32 %v4601_v23, %v797_v39 }
 0x1d5   :  { %v833_v26 = vmax.f32 %v817_v41, 0.0 }
 0x1d6   :  { %v637_v44 = vpop.f32.mrf.mxu0  ;;  %v868_v45 = vld [vmem:[#allocation3 + $0x48] sm:$0xff] }
 0x1d7   :  { %852 = vst.msk [vmem:[#allocation3 + $0x50] sm:$0xff] %vm840_vm2, %v833_v26  ;;  %v638_v46 = vadd.f32 %v637_v44, %v4593_v21  ;;  %3658 = vmatmul.msk.f32.gmra.mxu2 %vm840_vm2, %v868_v45  ;;  %3675 = vmatmul.msk.f32.gmra.mxu3 %vm840_vm2, %v868_v45  ;;  %v4694_v21 = vld [vmem:[%s5242_s8] sm:$0xff]  ;;  %v776_v55 = vpop.f32.mrf.mxu1 }
 0x1d8   :  { %3689 = vmatmul.msk.f32.gmra.mxu0 %vm840_vm2, %v868_v45  ;;  %1421 = vmatpush.msrb.mxu2 %v4694_v21 }
 0x1d9   :  { %v798_v47 = vadd.f32 %v770_v33, %v638_v46  ;;  %1613 = vmatpush.msra.mxu3 %v4694_v21 }
 0x1da   :  { %1482 = vmatpush.msra.mxu2 %v4606_v24 }
 0x1db   :  { %v818_v48 = vadd.f32 %v4601_v23, %v798_v47  ;;  %1738 = vmatpush.msrb.mxu3 %v4606_v24 }
 0x1dc   :  { %1483 = vmatpush.msra.mxu2 %v4635_v60 }
 0x1dd   :  { %v834_v49 = vmax.f32 %v818_v48, 0.0  ;;  %1739 = vmatpush.msrb.mxu3 %v4635_v60 }
 0x1de   :  { %v640_v28 = vpop.f32.mrf.mxu0  ;;  %v869_v51 = vld [vmem:[#allocation3 + $0x50] sm:$0xff]  ;;  %1484 = vmatpush.msra.mxu2 %v4666_v10 }
 0x1df   :  { %853 = vst.msk [vmem:[#allocation3 + $0x58] sm:$0xff] %vm840_vm2, %v834_v49  ;;  %v641_v53 = vadd.f32 %v640_v28, %v572_v43  ;;  %3659 = vmatmul.msk.f32.gmra.mxu2 %vm840_vm2, %v869_v51  ;;  %3676 = vmatmul.msk.f32.gmra.mxu3 %vm840_vm2, %v869_v51  ;;  %v779_v62 = vpop.f32.mrf.mxu1 }
 0x1e0   :  { %3690 = vmatmul.msk.f32.gmra.mxu0 %vm840_vm2, %v869_v51  ;;  %1740 = vmatpush.msrb.mxu3 %v4666_v10 }
 0x1e1   :  { %v799_v54 = vadd.f32 %v773_v30, %v641_v53  ;;  %1485 = vmatpush.msra.mxu2 %v4694_v21 }
 0x1e2   :  { %1741 = vmatpush.msrb.mxu3 %v4694_v21 }
 0x1e3   :  { %v819_v56 = vadd.f32 %v4601_v23, %v799_v54 }
 0x1e5   :  { %v835_v58 = vmax.f32 %v819_v56, 0.0 }
 0x1e6   :  { %v643_v35 = vpop.f32.mrf.mxu0  ;;  %v870_v42 = vld [vmem:[#allocation3 + $0x58] sm:$0xff] }
 0x1e7   :  { %854 = vst.msk [vmem:[#allocation3 + $0x60] sm:$0xff] %vm840_vm2, %v835_v58  ;;  %v644_v1 = vadd.f32 %v643_v35, %v575_v57  ;;  %3660 = vmatmul.msk.f32.gmra.mxu2 %vm840_vm2, %v870_v42  ;;  %3677 = vmatmul.msk.f32.gmra.mxu3 %vm840_vm2, %v870_v42  ;;  %v782_v5 = vpop.f32.mrf.mxu1 }
 0x1e8   :  { %3691 = vmatmul.msk.f32.gmra.mxu0 %vm840_vm2, %v870_v42 }
 0x1e9   :  { %v800_v61 = vadd.f32 %v776_v55, %v644_v1 }
 0x1eb   :  { %v820_v17 = vadd.f32 %v4601_v23, %v800_v61 }
 0x1ed   :  { %v836_v29 = vmax.f32 %v820_v17, 0.0 }
 0x1ee   :  { %v646_v63 = vpop.f32.mrf.mxu0  ;;  %v871_v40 = vld [vmem:[#allocation3 + $0x60] sm:$0xff] }
 0x1ef   :  { %855 = vst.msk [vmem:[#allocation3 + $0x68] sm:$0xff] %vm840_vm2, %v836_v29  ;;  %v647_v0 = vadd.f32 %v646_v63, %v578_v8  ;;  %3661 = vmatmul.msk.f32.gmra.mxu2 %vm840_vm2, %v871_v40  ;;  %3678 = vmatmul.msk.f32.gmra.mxu3 %vm840_vm2, %v871_v40  ;;  %v785_v15 = vpop.f32.mrf.mxu1 }
 0x1f0   :  { %3692 = vmatmul.msk.f32.gmra.mxu0 %vm840_vm2, %v871_v40 }
 0x1f1   :  { %v801_v50 = vadd.f32 %v779_v62, %v647_v0 }
 0x1f3   :  { %v821_v4 = vadd.f32 %v4601_v23, %v801_v50 }
 0x1f5   :  { %v837_v25 = vmax.f32 %v821_v4, 0.0 }
 0x1f6   :  { %v649_v6 = vpop.f32.mrf.mxu0  ;;  %v872_v59 = vld [vmem:[#allocation3 + $0x68] sm:$0xff] }
 0x1f7   :  { %856 = vst.msk [vmem:[#allocation3 + $0x70] sm:$0xff] %vm840_vm2, %v837_v25  ;;  %v650_v7 = vadd.f32 %v649_v6, %v581_v2  ;;  %3662 = vmatmul.msk.f32.gmra.mxu2 %vm840_vm2, %v872_v59  ;;  %3679 = vmatmul.msk.f32.gmra.mxu3 %vm840_vm2, %v872_v59 }
 0x1f8   :  { %3693 = vmatmul.msk.f32.gmra.mxu0 %vm840_vm2, %v872_v59 }
 0x1f9   :  { %v802_v9 = vadd.f32 %v782_v5, %v650_v7 }
 0x1fb   :  { %v822_v11 = vadd.f32 %v4601_v23, %v802_v9 }
 0x1fd   :  { %v838_v12 = vmax.f32 %v822_v11, 0.0 }
 0x1fe   :  { %v652_v14 = vpop.f32.mrf.mxu0  ;;  %v873_v3 = vld [vmem:[#allocation3 + $0x70] sm:$0xff] }
 0x1ff   :  { %857 = vst.msk [vmem:[#allocation3 + $0x78] sm:$0xff] %vm840_vm2, %v838_v12  ;;  %v653_v16 = vadd.f32 %v652_v14, %v584_v27  ;;  %3663 = vmatmul.msk.f32.gmra.mxu2 %vm840_vm2, %v873_v3  ;;  %3680 = vmatmul.msk.f32.gmra.mxu3 %vm840_vm2, %v873_v3 }
 0x200   :  { %3694 = vmatmul.msk.f32.gmra.mxu0 %vm840_vm2, %v873_v3 }
 0x201   :  { %v803_v18 = vadd.f32 %v785_v15, %v653_v16 }
 0x203   :  { %v823_v19 = vadd.f32 %v4601_v23, %v803_v18 }
 0x205   :  { %v839_v20 = vmax.f32 %v823_v19, 0.0 }
 0x206   :  { %v874_v22 = vld [vmem:[#allocation3 + $0x78] sm:$0xff] }
 0x207   :  { %858 = vst.msk [vmem:[#allocation3 + $0x80] sm:$0xff] %vm840_vm2, %v839_v20  ;;  %3664 = vmatmul.msk.f32.gmra.mxu2 %vm840_vm2, %v874_v22  ;;  %3681 = vmatmul.msk.f32.gmra.mxu3 %vm840_vm2, %v874_v22 }
 0x208   :  { %3695 = vmatmul.msk.f32.gmra.mxu0 %vm840_vm2, %v874_v22 }
 0x20e   :  { %v883_v37 = vld [vmem:[#allocation3 + $0x80] sm:$0xff] }
 0x20f   :  { %3665 = vmatmul.msk.f32.gmra.mxu2 %vm840_vm2, %v883_v37 }
 0x210   :  { %3696 = vmatmul.msk.f32.gmra.mxu0 %vm840_vm2, %v883_v37 }
 0x217   :  { %1422 = vmatmul.f32.vlgmr.msrb.gmra.mxu2 %v4060_v52 }
 0x218   :  { %3697 = vmatmul.msk.f32.gmra.mxu0 %vm840_vm2, %v1088_v13  ;;  %1546 = vmatpush.msrb.mxu2 %v4606_v24 }
 0x21a   :  { %v957_v23 = vpop.f32.mrf.mxu2  ;;  %v1028_v32 = vpop.f32.mrf.mxu3  ;;  %1547 = vmatpush.msrb.mxu2 %v4635_v60 }
 0x21b   :  { %v1026_v33 = vadd.f32 %v1025_v31, %v957_v23 }
 0x21c   :  { %1548 = vmatpush.msrb.mxu2 %v4666_v10 }
 0x21d   :  { %v1162_v36 = vpop.f32.mrf.mxu0 }
 0x21e   :  { %v1210_v38 = vadd.f32 %v1162_v36, %v1026_v33  ;;  %1549 = vmatpush.msrb.mxu2 %v4694_v21 }
 0x220   :  { %v1230_v52 = vadd.f32 %v4740_v34, %v1210_v38 }
 0x222   :  { %v1246_v39 = vmax.f32 %v1230_v52, 0.0  ;;  %v960_v41 = vpop.f32.mrf.mxu2  ;;  %v1031_v43 = vpop.f32.mrf.mxu3 }
 0x223   :  { %v1029_v26 = vadd.f32 %v1028_v32, %v960_v41 }
 0x224   :  { %3698 = vmatmul.msk.f32.vlgmr.msrb.gmra.mxu1 %vm1268_vm3, %v1246_v39 }
 0x225   :  { %v1165_v44 = vpop.f32.mrf.mxu0 }
 0x226   :  { %v1211_v45 = vadd.f32 %v1165_v44, %v1029_v26 }
 0x228   :  { %v1231_v46 = vadd.f32 %v4740_v34, %v1211_v45 }
 0x22a   :  { %v1247_v30 = vmax.f32 %v1231_v46, 0.0  ;;  %v963_v47 = vpop.f32.mrf.mxu2  ;;  %v1034_v48 = vpop.f32.mrf.mxu3 }
 0x22b   :  { %v1032_v49 = vadd.f32 %v1031_v43, %v963_v47 }
 0x22c   :  { %3699 = vmatmul.msk.f32.gmra.mxu1 %vm1268_vm3, %v1247_v30 }
 0x22d   :  { %v1168_v28 = vpop.f32.mrf.mxu0 }
 0x22e   :  { %v1212_v51 = vadd.f32 %v1168_v28, %v1032_v49 }
 0x230   :  { %v1232_v57 = vadd.f32 %v4740_v34, %v1212_v51 }
 0x232   :  { %v1248_v53 = vmax.f32 %v1232_v57, 0.0  ;;  %v966_v54 = vpop.f32.mrf.mxu2  ;;  %v1037_v55 = vpop.f32.mrf.mxu3 }
 0x233   :  { %v1035_v56 = vadd.f32 %v1034_v48, %v966_v54 }
 0x234   :  { %3700 = vmatmul.msk.f32.gmra.mxu1 %vm1268_vm3, %v1248_v53 }
 0x235   :  { %v1171_v58 = vpop.f32.mrf.mxu0 }
 0x236   :  { %v1213_v35 = vadd.f32 %v1171_v58, %v1035_v56 }
 0x238   :  { %v1233_v42 = vadd.f32 %v4740_v34, %v1213_v35 }
 0x23a   :  { %v1249_v1 = vmax.f32 %v1233_v42, 0.0  ;;  %v969_v8 = vpop.f32.mrf.mxu2  ;;  %v1040_v61 = vpop.f32.mrf.mxu3 }
 0x23b   :  { %v1038_v17 = vadd.f32 %v1037_v55, %v969_v8 }
 0x23c   :  { %3701 = vmatmul.msk.f32.gmra.mxu1 %vm1268_vm3, %v1249_v1 }
 0x23d   :  { %v1174_v62 = vpop.f32.mrf.mxu0 }
 0x23e   :  { %v1214_v29 = vadd.f32 %v1174_v62, %v1038_v17 }
 0x240   :  { %v1234_v63 = vadd.f32 %v4740_v34, %v1214_v29 }
 0x242   :  { %v1250_v40 = vmax.f32 %v1234_v63, 0.0  ;;  %v972_v0 = vpop.f32.mrf.mxu2  ;;  %v1043_v50 = vpop.f32.mrf.mxu3 }
 0x243   :  { %v1041_v2 = vadd.f32 %v1040_v61, %v972_v0 }
 0x244   :  { %3702 = vmatmul.msk.f32.gmra.mxu1 %vm1268_vm3, %v1250_v40 }
 0x245   :  { %v1177_v4 = vpop.f32.mrf.mxu0 }
 0x246   :  { %v1215_v25 = vadd.f32 %v1177_v4, %v1041_v2 }
 0x248   :  { %v1235_v5 = vadd.f32 %v4740_v34, %v1215_v25 }
 0x24a   :  { %v1251_v6 = vmax.f32 %v1235_v5, 0.0  ;;  %v975_v59 = vpop.f32.mrf.mxu2  ;;  %v1046_v7 = vpop.f32.mrf.mxu3 }
 0x24b   :  { %v1044_v9 = vadd.f32 %v1043_v50, %v975_v59 }
 0x24c   :  { %3703 = vmatmul.msk.f32.gmra.mxu1 %vm1268_vm3, %v1251_v6 }
 0x24d   :  { %v1180_v11 = vpop.f32.mrf.mxu0 }
 0x24e   :  { %v1216_v27 = vadd.f32 %v1180_v11, %v1044_v9 }
 0x250   :  { %v1236_v12 = vadd.f32 %v4740_v34, %v1216_v27 }
 0x252   :  { %v1252_v14 = vmax.f32 %v1236_v12, 0.0  ;;  %v978_v3 = vpop.f32.mrf.mxu2  ;;  %v1049_v15 = vpop.f32.mrf.mxu3 }
 0x253   :  { %v1047_v16 = vadd.f32 %v1046_v7, %v978_v3 }
 0x254   :  { %3704 = vmatmul.msk.f32.gmra.mxu1 %vm1268_vm3, %v1252_v14 }
 0x255   :  { %v1183_v18 = vpop.f32.mrf.mxu0 }
 0x256   :  { %v1217_v19 = vadd.f32 %v1183_v18, %v1047_v16  ;;  %v4779_v18 = vld [vmem:[%s5245_s9] ss:$0 sm:$0xff] }
 0x258   :  { %v1237_v20 = vadd.f32 %v4740_v34, %v1217_v19 }
 0x25a   :  { %v1253_v22 = vmax.f32 %v1237_v20, 0.0  ;;  %v981_v37 = vpop.f32.mrf.mxu2  ;;  %v1052_v31 = vpop.f32.mrf.mxu3 }
 0x25b   :  { %v1050_v13 = vadd.f32 %v1049_v15, %v981_v37 }
 0x25c   :  { %3705 = vmatmul.msk.f32.gmra.mxu1 %vm1268_vm3, %v1253_v22 }
 0x25d   :  { %v1186_v23 = vpop.f32.mrf.mxu0 }
 0x25e   :  { %v1218_v32 = vadd.f32 %v1186_v23, %v1050_v13 }
 0x260   :  { %v1238_v33 = vadd.f32 %v4740_v34, %v1218_v32 }
 0x262   :  { %v1254_v36 = vmax.f32 %v1238_v33, 0.0  ;;  %v984_v38 = vpop.f32.mrf.mxu2  ;;  %v1055_v52 = vpop.f32.mrf.mxu3 }
 0x263   :  { %v1053_v39 = vadd.f32 %v1052_v31, %v984_v38 }
 0x264   :  { %3706 = vmatmul.msk.f32.gmra.mxu1 %vm1268_vm3, %v1254_v36 }
 0x265   :  { %v1189_v41 = vpop.f32.mrf.mxu0 }
 0x266   :  { %v1219_v43 = vadd.f32 %v1189_v41, %v1053_v39 }
 0x268   :  { %v1239_v26 = vadd.f32 %v4740_v34, %v1219_v43 }
 0x26a   :  { %v1255_v44 = vmax.f32 %v1239_v26, 0.0  ;;  %v987_v45 = vpop.f32.mrf.mxu2  ;;  %v1058_v46 = vpop.f32.mrf.mxu3 }
 0x26b   :  { %v1056_v30 = vadd.f32 %v1055_v52, %v987_v45 }
 0x26c   :  { %3707 = vmatmul.msk.f32.gmra.mxu1 %vm1268_vm3, %v1255_v44 }
 0x26d   :  { %v1192_v47 = vpop.f32.mrf.mxu0 }
 0x26e   :  { %v1220_v48 = vadd.f32 %v1192_v47, %v1056_v30 }
 0x270   :  { %v1240_v49 = vadd.f32 %v4740_v34, %v1220_v48 }
 0x272   :  { %v1256_v28 = vmax.f32 %v1240_v49, 0.0  ;;  %v990_v51 = vpop.f32.mrf.mxu2  ;;  %v1061_v53 = vpop.f32.mrf.mxu3 }
 0x273   :  { %v1059_v57 = vadd.f32 %v1058_v46, %v990_v51 }
 0x274   :  { %3708 = vmatmul.msk.f32.gmra.mxu1 %vm1268_vm3, %v1256_v28 }
 0x275   :  { %v1195_v54 = vpop.f32.mrf.mxu0 }
 0x276   :  { %v1221_v55 = vadd.f32 %v1195_v54, %v1059_v57 }
 0x278   :  { %v1241_v56 = vadd.f32 %v4740_v34, %v1221_v55 }
 0x27a   :  { %v1257_v58 = vmax.f32 %v1241_v56, 0.0  ;;  %v993_v35 = vpop.f32.mrf.mxu2  ;;  %v1064_v8 = vpop.f32.mrf.mxu3 }
 0x27b   :  { %v1062_v42 = vadd.f32 %v1061_v53, %v993_v35 }
 0x27c   :  { %3709 = vmatmul.msk.f32.gmra.mxu1 %vm1268_vm3, %v1257_v58 }
 0x27d   :  { %v1198_v1 = vpop.f32.mrf.mxu0 }
 0x27e   :  { %v1222_v61 = vadd.f32 %v1198_v1, %v1062_v42 }
 0x280   :  { %v1242_v17 = vadd.f32 %v4740_v34, %v1222_v61 }
 0x282   :  { %v1258_v62 = vmax.f32 %v1242_v17, 0.0  ;;  %v996_v29 = vpop.f32.mrf.mxu2  ;;  %v1067_v50 = vpop.f32.mrf.mxu3 }
 0x283   :  { %v1065_v63 = vadd.f32 %v1064_v8, %v996_v29 }
 0x284   :  { %3710 = vmatmul.msk.f32.gmra.mxu1 %vm1268_vm3, %v1258_v62 }
 0x285   :  { %v1201_v40 = vpop.f32.mrf.mxu0 }
 0x286   :  { %v1223_v0 = vadd.f32 %v1201_v40, %v1065_v63 }
 0x288   :  { %v1243_v2 = vadd.f32 %v4740_v34, %v1223_v0 }
 0x28a   :  { %v1259_v4 = vmax.f32 %v1243_v2, 0.0  ;;  %v999_v25 = vpop.f32.mrf.mxu2  ;;  %v1070_v9 = vpop.f32.mrf.mxu3 }
 0x28b   :  { %v1068_v5 = vadd.f32 %v1067_v50, %v999_v25 }
 0x28c   :  { %3711 = vmatmul.msk.f32.gmra.mxu1 %vm1268_vm3, %v1259_v4 }
 0x28d   :  { %v1204_v6 = vpop.f32.mrf.mxu0 }
 0x28e   :  { %v1224_v59 = vadd.f32 %v1204_v6, %v1068_v5 }
 0x290   :  { %v1244_v7 = vadd.f32 %v4740_v34, %v1224_v59 }
 0x292   :  { %v1260_v11 = vmax.f32 %v1244_v7, 0.0  ;;  %v1002_v27 = vpop.f32.mrf.mxu2 }
 0x293   :  { %v1071_v12 = vadd.f32 %v1070_v9, %v1002_v27 }
 0x294   :  { %3712 = vmatmul.msk.f32.gmra.mxu1 %vm1268_vm3, %v1260_v11 }
 0x295   :  { %v1207_v14 = vpop.f32.mrf.mxu0 }
 0x296   :  { %v1225_v3 = vadd.f32 %v1207_v14, %v1071_v12 }
 0x298   :  { %v1245_v15 = vadd.f32 %v4740_v34, %v1225_v3 }
 0x29a   :  { %v1261_v16 = vmax.f32 %v1245_v15, 0.0  ;;  %v1423_v20 = vpop.f32.mrf.mxu2 }
 0x29c   :  { %3713 = vmatmul.msk.f32.gmra.mxu1 %vm1268_vm3, %v1261_v16 }
 0x2a1   :  { %v1334_v19 = vpop.f32.mrf.mxu1 }
 0x2a2   :  { %v1335_v22 = vadd.f32 %v4779_v18, %v1334_v19 }
 0x2a4   :  { %v1426_v37 = vadd.f32 %v1423_v20, %v1335_v22 }
 0x2a6   :  { %3806 = vtanh.f32 %v1426_v37  ;;  %v3714_v13 = vmul.f32 -1.442695, %v1426_v37 }
 0x2a8   :  { %3808 = vpow2.f32 %v3714_v13 }
 0x2a9   :  { %v1337_v53 = vpop.f32.mrf.mxu1 }
 0x2aa   :  { %v1338_v54 = vadd.f32 %v4779_v18, %v1337_v53 }
 0x2ac   :  { %v3807_v31 = vpop.eup %3806 }
 0x2ad   :  { %1449 = vrot.lane.b32.xlu0 %v3807_v31, %s4061_s28 }
 0x2ae   :  { %v3809_v34 = vpop.eup %3808 }
 0x2af   :  { %v1430_v23 = vadd.f32 1.0, %v3809_v34 }
 0x2b1   :  { %3810 = vrcp.f32 %v1430_v23  ;;  %v1442_v39 = vand.u32 2147483648, %v1430_v23  ;;  %vm1436_vm5 = vweird.f32 %v1430_v23  ;;  %v1440_v41 = vand.u32 2147483647, %v1430_v23  ;;  %v1340_v12 = vpop.f32.mrf.mxu1 }
 0x2b2   :  { %v1341_v14 = vadd.f32 %v4779_v18, %v1340_v12 }
 0x2b3   :  { %v1443_v26 = vor.u32 1.1754944e-38, %v1442_v39  ;;  %vm1441_vm7 = vcmp.eq.f32.partialorder %v1440_v41, 8.507059e+37 }
 0x2b7   :  { %v3811_v32 = vpop.eup %3810 }
 0x2b8   :  { %v1432_v33 = vmul.f32 %v3811_v32, %v1430_v23  ;;  %vm1437_vm4 = vweird.f32 %v3811_v32 }
 0x2b9   :  { %vm1438_vm6 = vmor %vm1436_vm5, %vm1437_vm4 }
 0x2ba   :  { %v1433_v36 = vsub.f32 1.0, %v1432_v33 }
 0x2bc   :  { %v1434_v38 = vmul.f32 %v3811_v32, %v1433_v36 }
 0x2be   :  { %v1435_v52 = vadd.f32 %v3811_v32, %v1434_v38 }
 0x2c0   :  { %v1439_v43 = vsel %vm1438_vm6, %v3811_v32, %v1435_v52 }
 0x2c1   :  { %v1444_v45 = vsel %vm1441_vm7, %v1443_v26, %v1439_v43 }
 0x2c2   :  { %v1447_v30 = vmul.f32 0.0, %v1444_v45 }
 0x31f   :  { %v1450_v44 = vpop.permute.xlu0 %1449 }
 0x320   :  { %v1452_v46 = vmul.f32 %v1450_v44, %v1444_v45 }
 0x322   :  { %1454 = vrot.lane.b32.xlu0 %v1452_v46, %s4061_s28 }
 0x394   :  { %v1455_v47 = vpop.permute.xlu0 %1454 }
 0x395   :  { %v1457_v48 = vadd.f32 %v1455_v47, %v1447_v30 }
 0x397   :  { %3812 = vtanh.f32 %v1457_v48 }
 0x39d   :  { %v3813_v49 = vpop.eup %3812 }
 0x39e   :  { %1460 = vrot.lane.b32.xlu1 %v3813_v49, %s4061_s28 }
 0x410   :  { %v1461_v28 = vpop.permute.xlu1 %1460 }
 0x411   :  { %v1463_v51 = vmul.f32 %v1461_v28, %v1444_v45 }
 0x413   :  { %1466 = vrot.lane.b32.xlu1 %v1463_v51, %s4062_s29 }
 0x485   :  { %v1467_v57 = vpop.permute.xlu1 %1466 }
 0x486   :  { %3715 = vmatmul.msk.f32.vlgmr.msra.gmra.mxu2 %vm430_vm1, %v1467_v57 }
 0x487   :  { %1674 = vmatpush.msra.mxu2 %v4606_v24 }
 0x489   :  { %1675 = vmatpush.msra.mxu2 %v4635_v60 }
 0x48b   :  { %1676 = vmatpush.msra.mxu2 %v4666_v10 }
 0x48d   :  { %1677 = vmatpush.msra.mxu2 %v4694_v21 }
 0x509   :  { %v1487_v55 = vpop.f32.mrf.mxu2 }
 0x50a   :  { %v1490_v56 = vadd.f32 %v1487_v55, %v1338_v54 }
 0x50c   :  { %3814 = vtanh.f32 %v1490_v56  ;;  %v3716_v35 = vmul.f32 -1.442695, %v1490_v56 }
 0x50e   :  { %3816 = vpow2.f32 %v3716_v35 }
 0x512   :  { %v3815_v58 = vpop.eup %3814 }
 0x513   :  { %1513 = vrot.lane.b32.xlu2 %v3815_v58, %s4061_s28 }
 0x514   :  { %v3817_v42 = vpop.eup %3816 }
 0x515   :  { %v1494_v1 = vadd.f32 1.0, %v3817_v42 }
 0x517   :  { %3818 = vrcp.f32 %v1494_v1  ;;  %v1506_v63 = vand.u32 2147483648, %v1494_v1  ;;  %vm1500_vm9 = vweird.f32 %v1494_v1  ;;  %v1504_v40 = vand.u32 2147483647, %v1494_v1 }
 0x519   :  { %v1507_v50 = vor.u32 1.1754944e-38, %v1506_v63  ;;  %vm1505_vm11 = vcmp.eq.f32.partialorder %v1504_v40, 8.507059e+37 }
 0x51d   :  { %v3819_v8 = vpop.eup %3818 }
 0x51e   :  { %v1496_v61 = vmul.f32 %v3819_v8, %v1494_v1  ;;  %vm1501_vm8 = vweird.f32 %v3819_v8 }
 0x51f   :  { %vm1502_vm10 = vmor %vm1500_vm9, %vm1501_vm8 }
 0x520   :  { %v1497_v17 = vsub.f32 1.0, %v1496_v61 }
 0x522   :  { %v1498_v62 = vmul.f32 %v3819_v8, %v1497_v17 }
 0x524   :  { %v1499_v29 = vadd.f32 %v3819_v8, %v1498_v62 }
 0x526   :  { %v1503_v0 = vsel %vm1502_vm10, %v3819_v8, %v1499_v29 }
 0x527   :  { %v1508_v4 = vsel %vm1505_vm11, %v1507_v50, %v1503_v0 }
 0x528   :  { %v1511_v5 = vmul.f32 %v1508_v4, %v1457_v48  ;;  %v1343_v48 = vpop.f32.mrf.mxu1 }
 0x529   :  { %v1344_v49 = vadd.f32 %v4779_v18, %v1343_v48 }
 0x56d   :  { %v1514_v2 = vpop.permute.xlu2 %1513 }
 0x56e   :  { %v1516_v25 = vmul.f32 %v1514_v2, %v1508_v4 }
 0x570   :  { %1518 = vrot.lane.b32.xlu2 %v1516_v25, %s4061_s28 }
 0x5ca   :  { %v1519_v6 = vpop.permute.xlu2 %1518 }
 0x5cb   :  { %v1521_v59 = vadd.f32 %v1519_v6, %v1511_v5  ;;  %v4820_v6 = vld [vmem:[%s5242_s8 + $0x18] sm:$0xff] }
 0x5cd   :  { %3820 = vtanh.f32 %v1521_v59 }
 0x5d3   :  { %v3821_v7 = vpop.eup %3820 }
 0x5d4   :  { %1524 = vrot.lane.b32.xlu0 %v3821_v7, %s4061_s28 }
 0x646   :  { %v1525_v9 = vpop.permute.xlu0 %1524 }
 0x647   :  { %v1527_v11 = vmul.f32 %v1525_v9, %v1508_v4 }
 0x649   :  { %1530 = vrot.lane.b32.xlu1 %v1527_v11, %s4062_s29 }
 0x6bb   :  { %v1531_v27 = vpop.permute.xlu1 %1530 }
 0x6bc   :  { %3717 = vmatmul.msk.f32.vlgmr.msrb.gmra.mxu2 %vm430_vm1, %v1531_v27 }
 0x6bd   :  { %1802 = vmatpush.msrb.mxu2 %v4606_v24 }
 0x6bf   :  { %1803 = vmatpush.msrb.mxu2 %v4635_v60 }
 0x6c1   :  { %1804 = vmatpush.msrb.mxu2 %v4666_v10 }
 0x6c3   :  { %1805 = vmatpush.msrb.mxu2 %v4694_v21 }
 0x73f   :  { %v1551_v3 = vpop.f32.mrf.mxu2 }
 0x740   :  { %v1554_v15 = vadd.f32 %v1551_v3, %v1341_v14 }
 0x742   :  { %3822 = vtanh.f32 %v1554_v15  ;;  %v3718_v19 = vmul.f32 -1.442695, %v1554_v15 }
 0x744   :  { %3824 = vpow2.f32 %v3718_v19 }
 0x748   :  { %v3823_v16 = vpop.eup %3822 }
 0x749   :  { %1577 = vrot.lane.b32.xlu2 %v3823_v16, %s4061_s28 }
 0x74a   :  { %v3825_v20 = vpop.eup %3824 }
 0x74b   :  { %v1558_v22 = vadd.f32 1.0, %v3825_v20 }
 0x74d   :  { %3826 = vrcp.f32 %v1558_v22  ;;  %v1570_v32 = vand.u32 2147483648, %v1558_v22  ;;  %vm1564_vm13 = vweird.f32 %v1558_v22  ;;  %v1568_v33 = vand.u32 2147483647, %v1558_v22 }
 0x74f   :  { %v1571_v38 = vor.u32 1.1754944e-38, %v1570_v32  ;;  %vm1569_vm15 = vcmp.eq.f32.partialorder %v1568_v33, 8.507059e+37 }
 0x753   :  { %v3827_v37 = vpop.eup %3826 }
 0x754   :  { %v1560_v31 = vmul.f32 %v3827_v37, %v1558_v22  ;;  %vm1565_vm12 = vweird.f32 %v3827_v37 }
 0x755   :  { %vm1566_vm14 = vmor %vm1564_vm13, %vm1565_vm12 }
 0x756   :  { %v1561_v13 = vsub.f32 1.0, %v1560_v31 }
 0x758   :  { %v1562_v34 = vmul.f32 %v3827_v37, %v1561_v13 }
 0x75a   :  { %v1563_v23 = vadd.f32 %v3827_v37, %v1562_v34 }
 0x75c   :  { %v1567_v36 = vsel %vm1566_vm14, %v3827_v37, %v1563_v23 }
 0x75d   :  { %v1572_v39 = vsel %vm1569_vm15, %v1571_v38, %v1567_v36 }
 0x75e   :  { %v1575_v43 = vmul.f32 %v1572_v39, %v1521_v59  ;;  %v1346_v59 = vpop.f32.mrf.mxu1 }
 0x75f   :  { %v1347_v7 = vadd.f32 %v4779_v18, %v1346_v59 }
 0x7a3   :  { %v1578_v52 = vpop.permute.xlu2 %1577 }
 0x7a4   :  { %v1580_v41 = vmul.f32 %v1578_v52, %v1572_v39 }
 0x7a6   :  { %1582 = vrot.lane.b32.xlu0 %v1580_v41, %s4061_s28 }
 0x818   :  { %v1583_v26 = vpop.permute.xlu0 %1582 }
 0x819   :  { %v1585_v44 = vadd.f32 %v1583_v26, %v1575_v43  ;;  %v4836_v26 = vld [vmem:[%s5242_s8 + $0x10] sm:$0xff] }
 0x81b   :  { %3828 = vtanh.f32 %v1585_v44 }
 0x821   :  { %v3829_v45 = vpop.eup %3828 }
 0x822   :  { %1588 = vrot.lane.b32.xlu1 %v3829_v45, %s4061_s28 }
 0x894   :  { %v1589_v46 = vpop.permute.xlu1 %1588 }
 0x895   :  { %v1591_v30 = vmul.f32 %v1589_v46, %v1572_v39 }
 0x897   :  { %1594 = vrot.lane.b32.xlu2 %v1591_v30, %s4062_s29 }
 0x8f1   :  { %v1595_v47 = vpop.permute.xlu2 %1594 }
 0x8f2   :  { %3719 = vmatmul.msk.f32.vlgmr.msra.gmra.mxu3 %vm430_vm1, %v1595_v47 }
 0x8f3   :  { %1866 = vmatpush.msra.mxu3 %v4606_v24 }
 0x8f5   :  { %1867 = vmatpush.msra.mxu3 %v4635_v60 }
 0x8f7   :  { %1868 = vmatpush.msra.mxu3 %v4666_v10 }
 0x8f9   :  { %1869 = vmatpush.msra.mxu3 %v4694_v21 }
 0x975   :  { %v1615_v28 = vpop.f32.mrf.mxu3 }
 0x976   :  { %v1618_v51 = vadd.f32 %v1615_v28, %v1344_v49 }
 0x978   :  { %3830 = vtanh.f32 %v1618_v51  ;;  %v3720_v53 = vmul.f32 -1.442695, %v1618_v51 }
 0x97a   :  { %3832 = vpow2.f32 %v3720_v53 }
 0x97e   :  { %v3831_v57 = vpop.eup %3830 }
 0x97f   :  { %1641 = vrot.lane.b32.xlu0 %v3831_v57, %s4061_s28 }
 0x980   :  { %v3833_v54 = vpop.eup %3832 }
 0x981   :  { %v1622_v55 = vadd.f32 1.0, %v3833_v54 }
 0x983   :  { %3834 = vrcp.f32 %v1622_v55  ;;  %v1634_v1 = vand.u32 2147483648, %v1622_v55  ;;  %vm1628_vm2 = vweird.f32 %v1622_v55  ;;  %v1632_v8 = vand.u32 2147483647, %v1622_v55 }
 0x985   :  { %v1635_v17 = vor.u32 1.1754944e-38, %v1634_v1  ;;  %vm1633_vm5 = vcmp.eq.f32.partialorder %v1632_v8, 8.507059e+37 }
 0x989   :  { %v3835_v24 = vpop.eup %3834 }
 0x98a   :  { %v1624_v56 = vmul.f32 %v3835_v24, %v1622_v55  ;;  %vm1629_vm0 = vweird.f32 %v3835_v24 }
 0x98b   :  { %vm1630_vm4 = vmor %vm1628_vm2, %vm1629_vm0 }
 0x98c   :  { %v1625_v58 = vsub.f32 1.0, %v1624_v56 }
 0x98e   :  { %v1626_v35 = vmul.f32 %v3835_v24, %v1625_v58 }
 0x990   :  { %v1627_v42 = vadd.f32 %v3835_v24, %v1626_v35 }
 0x992   :  { %v1631_v61 = vsel %vm1630_vm4, %v3835_v24, %v1627_v42 }
 0x993   :  { %v1636_v29 = vsel %vm1633_vm5, %v1635_v17, %v1631_v61 }
 0x994   :  { %v1639_v40 = vmul.f32 %v1636_v29, %v1585_v44  ;;  %v1349_v44 = vpop.f32.mrf.mxu1 }
 0x995   :  { %v1350_v45 = vadd.f32 %v4779_v18, %v1349_v44 }
 0x9f1   :  { %v1642_v62 = vpop.permute.xlu0 %1641 }
 0x9f2   :  { %v1644_v63 = vmul.f32 %v1642_v62, %v1636_v29 }
 0x9f4   :  { %1646 = vrot.lane.b32.xlu1 %v1644_v63, %s4061_s28 }
 0xa66   :  { %v1647_v0 = vpop.permute.xlu1 %1646 }
 0xa67   :  { %v1649_v50 = vadd.f32 %v1647_v0, %v1639_v40  ;;  %v4852_v0 = vld [vmem:[%s5242_s8 + $0x8] sm:$0xff] }
 0xa69   :  { %3836 = vtanh.f32 %v1649_v50 }
 0xa6f   :  { %v3837_v2 = vpop.eup %3836 }
 0xa70   :  { %1652 = vrot.lane.b32.xlu2 %v3837_v2, %s4061_s28 }
 0xaca   :  { %v1653_v4 = vpop.permute.xlu2 %1652 }
 0xacb   :  { %v1655_v25 = vmul.f32 %v1653_v4, %v1636_v29 }
 0xacd   :  { %1658 = vrot.lane.b32.xlu0 %v1655_v25, %s4062_s29 }
 0xb3f   :  { %v1659_v5 = vpop.permute.xlu0 %1658 }
 0xb40   :  { %3721 = vmatmul.msk.f32.vlgmr.msra.gmra.mxu2 %vm430_vm1, %v1659_v5 }
 0xb41   :  { %1930 = vmatpush.msra.mxu2 %v4820_v6 }
 0xb43   :  { %1931 = vmatpush.msra.mxu2 %v4635_v60 }
 0xb45   :  { %1932 = vmatpush.msra.mxu2 %v4666_v10 }
 0xb47   :  { %1933 = vmatpush.msra.mxu2 %v4694_v21 }
 0xbc3   :  { %v1679_v9 = vpop.f32.mrf.mxu2 }
 0xbc4   :  { %v1682_v11 = vadd.f32 %v1679_v9, %v1347_v7 }
 0xbc6   :  { %3838 = vtanh.f32 %v1682_v11  ;;  %v3722_v12 = vmul.f32 -1.442695, %v1682_v11 }
 0xbc8   :  { %3840 = vpow2.f32 %v3722_v12 }
 0xbcc   :  { %v3839_v27 = vpop.eup %3838 }
 0xbcd   :  { %1705 = vrot.lane.b32.xlu1 %v3839_v27, %s4061_s28 }
 0xbce   :  { %v3841_v14 = vpop.eup %3840 }
 0xbcf   :  { %v1686_v3 = vadd.f32 1.0, %v3841_v14 }
 0xbd1   :  { %3842 = vrcp.f32 %v1686_v3  ;;  %v1698_v22 = vand.u32 2147483648, %v1686_v3  ;;  %vm1692_vm7 = vweird.f32 %v1686_v3  ;;  %v1696_v37 = vand.u32 2147483647, %v1686_v3 }
 0xbd3   :  { %v1699_v13 = vor.u32 1.1754944e-38, %v1698_v22  ;;  %vm1697_vm9 = vcmp.eq.f32.partialorder %v1696_v37, 8.507059e+37 }
 0xbd7   :  { %v3843_v15 = vpop.eup %3842 }
 0xbd8   :  { %v1688_v60 = vmul.f32 %v3843_v15, %v1686_v3  ;;  %vm1693_vm6 = vweird.f32 %v3843_v15 }
 0xbd9   :  { %vm1694_vm8 = vmor %vm1692_vm7, %vm1693_vm6 }
 0xbda   :  { %v1689_v16 = vsub.f32 1.0, %v1688_v60 }
 0xbdc   :  { %v1690_v19 = vmul.f32 %v3843_v15, %v1689_v16 }
 0xbde   :  { %v1691_v20 = vadd.f32 %v3843_v15, %v1690_v19 }
 0xbe0   :  { %v1695_v31 = vsel %vm1694_vm8, %v3843_v15, %v1691_v20 }
 0xbe1   :  { %v1700_v23 = vsel %vm1697_vm9, %v1699_v13, %v1695_v31 }
 0xbe2   :  { %v1703_v33 = vmul.f32 %v1700_v23, %v1649_v50  ;;  %v1352_v50 = vpop.f32.mrf.mxu1 }
 0xbe3   :  { %v1353_v2 = vadd.f32 %v4779_v18, %v1352_v50 }
 0xc3f   :  { %v1706_v34 = vpop.permute.xlu1 %1705 }
 0xc40   :  { %v1708_v32 = vmul.f32 %v1706_v34, %v1700_v23 }
 0xc42   :  { %1710 = vrot.lane.b32.xlu2 %v1708_v32, %s4061_s28 }
 0xc9c   :  { %v1711_v36 = vpop.permute.xlu2 %1710 }
 0xc9d   :  { %v1713_v38 = vadd.f32 %v1711_v36, %v1703_v33  ;;  %v4868_v36 = vld [vmem:[%s5242_s8] sm:$0xff] }
 0xc9f   :  { %3844 = vtanh.f32 %v1713_v38 }
 0xca5   :  { %v3845_v52 = vpop.eup %3844 }
 0xca6   :  { %1716 = vrot.lane.b32.xlu0 %v3845_v52, %s4061_s28 }
 0xd18   :  { %v1717_v39 = vpop.permute.xlu0 %1716 }
 0xd19   :  { %v1719_v41 = vmul.f32 %v1717_v39, %v1700_v23 }
 0xd1b   :  { %1722 = vrot.lane.b32.xlu1 %v1719_v41, %s4062_s29 }
 0xd8d   :  { %v1723_v43 = vpop.permute.xlu1 %1722 }
 0xd8e   :  { %3723 = vmatmul.msk.f32.vlgmr.msrb.gmra.mxu3 %vm430_vm1, %v1723_v43 }
 0xd8f   :  { %1994 = vmatpush.msrb.mxu3 %v4820_v6 }
 0xd91   :  { %1995 = vmatpush.msrb.mxu3 %v4836_v26 }
 0xd93   :  { %1996 = vmatpush.msrb.mxu3 %v4666_v10 }
 0xd95   :  { %1997 = vmatpush.msrb.mxu3 %v4694_v21 }
 0xe11   :  { %v1743_v46 = vpop.f32.mrf.mxu3 }
 0xe12   :  { %v1746_v30 = vadd.f32 %v1743_v46, %v1350_v45 }
 0xe14   :  { %3846 = vtanh.f32 %v1746_v30  ;;  %v3724_v48 = vmul.f32 -1.442695, %v1746_v30 }
 0xe16   :  { %3848 = vpow2.f32 %v3724_v48 }
 0xe1a   :  { %v3847_v47 = vpop.eup %3846 }
 0xe1b   :  { %1769 = vrot.lane.b32.xlu2 %v3847_v47, %s4061_s28 }
 0xe1c   :  { %v3849_v49 = vpop.eup %3848 }
 0xe1d   :  { %v1750_v28 = vadd.f32 1.0, %v3849_v49 }
 0xe1f   :  { %3850 = vrcp.f32 %v1750_v28  ;;  %v1762_v55 = vand.u32 2147483648, %v1750_v28  ;;  %vm1756_vm11 = vweird.f32 %v1750_v28  ;;  %v1760_v24 = vand.u32 2147483647, %v1750_v28 }
 0xe21   :  { %v1763_v58 = vor.u32 1.1754944e-38, %v1762_v55  ;;  %vm1761_vm13 = vcmp.eq.f32.partialorder %v1760_v24, 8.507059e+37 }
 0xe25   :  { %v3851_v51 = vpop.eup %3850 }
 0xe26   :  { %v1752_v57 = vmul.f32 %v3851_v51, %v1750_v28  ;;  %vm1757_vm10 = vweird.f32 %v3851_v51 }
 0xe27   :  { %vm1758_vm12 = vmor %vm1756_vm11, %vm1757_vm10 }
 0xe28   :  { %v1753_v53 = vsub.f32 1.0, %v1752_v57 }
 0xe2a   :  { %v1754_v10 = vmul.f32 %v3851_v51, %v1753_v53 }
 0xe2c   :  { %v1755_v54 = vadd.f32 %v3851_v51, %v1754_v10 }
 0xe2e   :  { %v1759_v56 = vsel %vm1758_vm12, %v3851_v51, %v1755_v54 }
 0xe2f   :  { %v1764_v42 = vsel %vm1761_vm13, %v1763_v58, %v1759_v56 }
 0xe30   :  { %v1767_v8 = vmul.f32 %v1764_v42, %v1713_v38  ;;  %v1355_v38 = vpop.f32.mrf.mxu1 }
 0xe31   :  { %v1356_v52 = vadd.f32 %v4779_v18, %v1355_v38 }
 0xe75   :  { %v1770_v35 = vpop.permute.xlu2 %1769 }
 0xe76   :  { %v1772_v1 = vmul.f32 %v1770_v35, %v1764_v42 }
 0xe78   :  { %1774 = vrot.lane.b32.xlu0 %v1772_v1, %s4061_s28 }
 0xeea   :  { %v1775_v61 = vpop.permute.xlu0 %1774 }
 0xeeb   :  { %v1777_v17 = vadd.f32 %v1775_v61, %v1767_v8 }
 0xeed   :  { %3852 = vtanh.f32 %v1777_v17 }
 0xef3   :  { %v3853_v62 = vpop.eup %3852 }
 0xef4   :  { %1780 = vrot.lane.b32.xlu1 %v3853_v62, %s4061_s28 }
 0xf66   :  { %v1781_v29 = vpop.permute.xlu1 %1780 }
 0xf67   :  { %v1783_v63 = vmul.f32 %v1781_v29, %v1764_v42 }
 0xf69   :  { %1786 = vrot.lane.b32.xlu2 %v1783_v63, %s4062_s29 }
 0xfc3   :  { %v1787_v40 = vpop.permute.xlu2 %1786 }
 0xfc4   :  { %3725 = vmatmul.msk.f32.vlgmr.msrb.gmra.mxu2 %vm430_vm1, %v1787_v40 }
 0xfc5   :  { %2058 = vmatpush.msrb.mxu2 %v4820_v6 }
 0xfc7   :  { %2059 = vmatpush.msrb.mxu2 %v4836_v26 }
 0xfc9   :  { %2060 = vmatpush.msrb.mxu2 %v4852_v0 }
 0xfcb   :  { %2061 = vmatpush.msrb.mxu2 %v4694_v21 }
0x1047   :  { %v1807_v4 = vpop.f32.mrf.mxu2 }
0x1048   :  { %v1810_v25 = vadd.f32 %v1807_v4, %v1353_v2 }
0x104a   :  { %3854 = vtanh.f32 %v1810_v25  ;;  %v3726_v59 = vmul.f32 -1.442695, %v1810_v25 }
0x104c   :  { %3856 = vpow2.f32 %v3726_v59 }
0x1050   :  { %v3855_v5 = vpop.eup %3854 }
0x1051   :  { %1833 = vrot.lane.b32.xlu0 %v3855_v5, %s4061_s28 }
0x1052   :  { %v3857_v7 = vpop.eup %3856 }
0x1053   :  { %v1814_v9 = vadd.f32 1.0, %v3857_v7 }
0x1055   :  { %3858 = vrcp.f32 %v1814_v9  ;;  %v1826_v21 = vand.u32 2147483648, %v1814_v9  ;;  %vm1820_vm15 = vweird.f32 %v1814_v9  ;;  %v1824_v15 = vand.u32 2147483647, %v1814_v9 }
0x1057   :  { %v1827_v16 = vor.u32 1.1754944e-38, %v1826_v21  ;;  %vm1825_vm2 = vcmp.eq.f32.partialorder %v1824_v15, 8.507059e+37 }
0x105b   :  { %v3859_v11 = vpop.eup %3858 }
0x105c   :  { %v1816_v27 = vmul.f32 %v3859_v11, %v1814_v9  ;;  %vm1821_vm14 = vweird.f32 %v3859_v11 }
0x105d   :  { %vm1822_vm0 = vmor %vm1820_vm15, %vm1821_vm14 }
0x105e   :  { %v1817_v12 = vsub.f32 1.0, %v1816_v27 }
0x1060   :  { %v1818_v14 = vmul.f32 %v3859_v11, %v1817_v12 }
0x1062   :  { %v1819_v3 = vadd.f32 %v3859_v11, %v1818_v14 }
0x1064   :  { %v1823_v60 = vsel %vm1822_vm0, %v3859_v11, %v1819_v3 }
0x1065   :  { %v1828_v20 = vsel %vm1825_vm2, %v1827_v16, %v1823_v60 }
0x1066   :  { %v1831_v37 = vmul.f32 %v1828_v20, %v1777_v17  ;;  %v1358_v17 = vpop.f32.mrf.mxu1 }
0x1067   :  { %v1359_v62 = vadd.f32 %v4779_v18, %v1358_v17 }
0x10c3   :  { %v1834_v19 = vpop.permute.xlu0 %1833 }
0x10c4   :  { %v1836_v22 = vmul.f32 %v1834_v19, %v1828_v20 }
0x10c6   :  { %1838 = vrot.lane.b32.xlu1 %v1836_v22, %s4061_s28 }
0x1138   :  { %v1839_v31 = vpop.permute.xlu1 %1838 }
0x1139   :  { %v1841_v13 = vadd.f32 %v1839_v31, %v1831_v37 }
0x113b   :  { %3860 = vtanh.f32 %v1841_v13 }
0x1141   :  { %v3861_v34 = vpop.eup %3860 }
0x1142   :  { %1844 = vrot.lane.b32.xlu2 %v3861_v34, %s4061_s28 }
0x119c   :  { %v1845_v23 = vpop.permute.xlu2 %1844 }
0x119d   :  { %v1847_v32 = vmul.f32 %v1845_v23, %v1828_v20 }
0x119f   :  { %1850 = vrot.lane.b32.xlu0 %v1847_v32, %s4062_s29 }
0x1211   :  { %v1851_v33 = vpop.permute.xlu0 %1850 }
0x1212   :  { %3727 = vmatmul.msk.f32.vlgmr.msra.gmra.mxu3 %vm430_vm1, %v1851_v33 }
0x1213   :  { %2122 = vmatpush.msra.mxu3 %v4820_v6 }
0x1215   :  { %2123 = vmatpush.msra.mxu3 %v4836_v26 }
0x1217   :  { %2124 = vmatpush.msra.mxu3 %v4852_v0 }
0x1219   :  { %2125 = vmatpush.msra.mxu3 %v4868_v36 }
0x1295   :  { %v1871_v39 = vpop.f32.mrf.mxu3 }
0x1296   :  { %v1874_v41 = vadd.f32 %v1871_v39, %v1356_v52 }
0x1298   :  { %3862 = vtanh.f32 %v1874_v41  ;;  %v3728_v44 = vmul.f32 -1.442695, %v1874_v41 }
0x129a   :  { %3864 = vpow2.f32 %v3728_v44 }
0x129e   :  { %v3863_v43 = vpop.eup %3862 }
0x129f   :  { %1897 = vrot.lane.b32.xlu1 %v3863_v43, %s4061_s28 }
0x12a0   :  { %v3865_v45 = vpop.eup %3864 }
0x12a1   :  { %v1878_v46 = vadd.f32 1.0, %v3865_v45 }
0x12a3   :  { %3866 = vrcp.f32 %v1878_v46  ;;  %v1890_v51 = vand.u32 2147483648, %v1878_v46  ;;  %vm1884_vm5 = vweird.f32 %v1878_v46  ;;  %v1888_v57 = vand.u32 2147483647, %v1878_v46 }
0x12a5   :  { %v1891_v10 = vor.u32 1.1754944e-38, %v1890_v51  ;;  %vm1889_vm7 = vcmp.eq.f32.partialorder %v1888_v57, 8.507059e+37 }
0x12a9   :  { %v3867_v30 = vpop.eup %3866 }
0x12aa   :  { %v1880_v47 = vmul.f32 %v3867_v30, %v1878_v46  ;;  %vm1885_vm4 = vweird.f32 %v3867_v30 }
0x12ab   :  { %vm1886_vm6 = vmor %vm1884_vm5, %vm1885_vm4 }
0x12ac   :  { %v1881_v48 = vsub.f32 1.0, %v1880_v47 }
0x12ae   :  { %v1882_v49 = vmul.f32 %v3867_v30, %v1881_v48 }
0x12b0   :  { %v1883_v28 = vadd.f32 %v3867_v30, %v1882_v49 }
0x12b2   :  { %v1887_v53 = vsel %vm1886_vm6, %v3867_v30, %v1883_v28 }
0x12b3   :  { %v1892_v55 = vsel %vm1889_vm7, %v1891_v10, %v1887_v53 }
0x12b4   :  { %v1895_v56 = vmul.f32 %v1892_v55, %v1841_v13  ;;  %v1361_v13 = vpop.f32.mrf.mxu1 }
0x12b5   :  { %v1362_v34 = vadd.f32 %v4779_v18, %v1361_v13 }
0x1311   :  { %v1898_v54 = vpop.permute.xlu1 %1897 }
0x1312   :  { %v1900_v24 = vmul.f32 %v1898_v54, %v1892_v55 }
0x1314   :  { %1902 = vrot.lane.b32.xlu2 %v1900_v24, %s4061_s28 }
0x136e   :  { %v1903_v58 = vpop.permute.xlu2 %1902 }
0x136f   :  { %v1905_v35 = vadd.f32 %v1903_v58, %v1895_v56 }
0x1371   :  { %3868 = vtanh.f32 %v1905_v35 }
0x1377   :  { %v3869_v42 = vpop.eup %3868 }
0x1378   :  { %1908 = vrot.lane.b32.xlu0 %v3869_v42, %s4061_s28 }
0x13ea   :  { %v1909_v1 = vpop.permute.xlu0 %1908 }
0x13eb   :  { %v1911_v8 = vmul.f32 %v1909_v1, %v1892_v55 }
0x13ed   :  { %1914 = vrot.lane.b32.xlu1 %v1911_v8, %s4062_s29 }
0x145f   :  { %v1915_v61 = vpop.permute.xlu1 %1914 }
0x1460   :  { %3729 = vmatmul.msk.f32.vlgmr.msra.gmra.mxu2 %vm430_vm1, %v1915_v61 }
0x1461   :  { %2186 = vmatpush.msra.mxu2 %v4820_v6 }
0x1463   :  { %2187 = vmatpush.msra.mxu2 %v4836_v26 }
0x1465   :  { %2188 = vmatpush.msra.mxu2 %v4852_v0 }
0x1467   :  { %2189 = vmatpush.msra.mxu2 %v4868_v36 }
0x14e3   :  { %v1935_v29 = vpop.f32.mrf.mxu2 }
0x14e4   :  { %v1938_v63 = vadd.f32 %v1935_v29, %v1359_v62 }
0x14e6   :  { %3870 = vtanh.f32 %v1938_v63  ;;  %v3730_v50 = vmul.f32 -1.442695, %v1938_v63 }
0x14e8   :  { %3872 = vpow2.f32 %v3730_v50 }
0x14ec   :  { %v3871_v40 = vpop.eup %3870 }
0x14ed   :  { %1961 = vrot.lane.b32.xlu2 %v3871_v40, %s4061_s28 }
0x14ee   :  { %v3873_v2 = vpop.eup %3872 }
0x14ef   :  { %v1942_v4 = vadd.f32 1.0, %v3873_v2 }
0x14f1   :  { %3874 = vrcp.f32 %v1942_v4  ;;  %v1954_v11 = vand.u32 2147483648, %v1942_v4  ;;  %vm1948_vm9 = vweird.f32 %v1942_v4  ;;  %v1952_v27 = vand.u32 2147483647, %v1942_v4 }
0x14f3   :  { %v1955_v14 = vor.u32 1.1754944e-38, %v1954_v11  ;;  %vm1953_vm11 = vcmp.eq.f32.partialorder %v1952_v27, 8.507059e+37 }
0x14f7   :  { %v3875_v25 = vpop.eup %3874 }
0x14f8   :  { %v1944_v5 = vmul.f32 %v3875_v25, %v1942_v4  ;;  %vm1949_vm8 = vweird.f32 %v3875_v25 }
0x14f9   :  { %vm1950_vm10 = vmor %vm1948_vm9, %vm1949_vm8 }
0x14fa   :  { %v1945_v59 = vsub.f32 1.0, %v1944_v5 }
0x14fc   :  { %v1946_v7 = vmul.f32 %v3875_v25, %v1945_v59 }
0x14fe   :  { %v1947_v9 = vadd.f32 %v3875_v25, %v1946_v7 }
0x1500   :  { %v1951_v12 = vsel %vm1950_vm10, %v3875_v25, %v1947_v9 }
0x1501   :  { %v1956_v21 = vsel %vm1953_vm11, %v1955_v14, %v1951_v12 }
0x1502   :  { %v1959_v60 = vmul.f32 %v1956_v21, %v1905_v35  ;;  %v1364_v35 = vpop.f32.mrf.mxu1 }
0x1503   :  { %v1365_v42 = vadd.f32 %v4779_v18, %v1364_v35 }
0x1547   :  { %v1962_v3 = vpop.permute.xlu2 %1961 }
0x1548   :  { %v1964_v15 = vmul.f32 %v1962_v3, %v1956_v21 }
0x154a   :  { %1966 = vrot.lane.b32.xlu0 %v1964_v15, %s4061_s28 }
0x15bc   :  { %v1967_v16 = vpop.permute.xlu0 %1966 }
0x15bd   :  { %v1969_v19 = vadd.f32 %v1967_v16, %v1959_v60 }
0x15bf   :  { %3876 = vtanh.f32 %v1969_v19 }
0x15c5   :  { %v3877_v20 = vpop.eup %3876 }
0x15c6   :  { %1972 = vrot.lane.b32.xlu1 %v3877_v20, %s4061_s28 }
0x1638   :  { %v1973_v22 = vpop.permute.xlu1 %1972 }
0x1639   :  { %v1975_v37 = vmul.f32 %v1973_v22, %v1956_v21 }
0x163b   :  { %1978 = vrot.lane.b32.xlu2 %v1975_v37, %s4062_s29 }
0x1695   :  { %v1979_v31 = vpop.permute.xlu2 %1978 }
0x1696   :  { %3731 = vmatmul.msk.f32.vlgmr.msrb.gmra.mxu3 %vm430_vm1, %v1979_v31 }
0x1697   :  { %2250 = vmatpush.msrb.mxu3 %v4820_v6 }
0x1699   :  { %2251 = vmatpush.msrb.mxu3 %v4836_v26 }
0x169b   :  { %2252 = vmatpush.msrb.mxu3 %v4852_v0 }
0x169d   :  { %2253 = vmatpush.msrb.mxu3 %v4868_v36 }
0x1719   :  { %v1999_v23 = vpop.f32.mrf.mxu3 }
0x171a   :  { %v2002_v32 = vadd.f32 %v1999_v23, %v1362_v34 }
0x171c   :  { %3878 = vtanh.f32 %v2002_v32  ;;  %v3732_v38 = vmul.f32 -1.442695, %v2002_v32 }
0x171e   :  { %3880 = vpow2.f32 %v3732_v38 }
0x1722   :  { %v3879_v33 = vpop.eup %3878 }
0x1723   :  { %2025 = vrot.lane.b32.xlu0 %v3879_v33, %s4061_s28 }
0x1724   :  { %v3881_v52 = vpop.eup %3880 }
0x1725   :  { %v2006_v39 = vadd.f32 1.0, %v3881_v52 }
0x1727   :  { %3882 = vrcp.f32 %v2006_v39  ;;  %v2018_v30 = vand.u32 2147483648, %v2006_v39  ;;  %vm2012_vm13 = vweird.f32 %v2006_v39  ;;  %v2016_v47 = vand.u32 2147483647, %v2006_v39 }
0x1729   :  { %v2019_v49 = vor.u32 1.1754944e-38, %v2018_v30  ;;  %vm2017_vm15 = vcmp.eq.f32.partialorder %v2016_v47, 8.507059e+37 }
0x172d   :  { %v3883_v41 = vpop.eup %3882 }
0x172e   :  { %v2008_v43 = vmul.f32 %v3883_v41, %v2006_v39  ;;  %vm2013_vm12 = vweird.f32 %v3883_v41 }
0x172f   :  { %vm2014_vm14 = vmor %vm2012_vm13, %vm2013_vm12 }
0x1730   :  { %v2009_v44 = vsub.f32 1.0, %v2008_v43 }
0x1732   :  { %v2010_v45 = vmul.f32 %v3883_v41, %v2009_v44 }
0x1734   :  { %v2011_v46 = vadd.f32 %v3883_v41, %v2010_v45 }
0x1736   :  { %v2015_v48 = vsel %vm2014_vm14, %v3883_v41, %v2011_v46 }
0x1737   :  { %v2020_v51 = vsel %vm2017_vm15, %v2019_v49, %v2015_v48 }
0x1738   :  { %v2023_v53 = vmul.f32 %v2020_v51, %v1969_v19  ;;  %v1367_v19 = vpop.f32.mrf.mxu1 }
0x1739   :  { %v1368_v20 = vadd.f32 %v4779_v18, %v1367_v19 }
0x1795   :  { %v2026_v28 = vpop.permute.xlu0 %2025 }
0x1796   :  { %v2028_v57 = vmul.f32 %v2026_v28, %v2020_v51  ;;  %v1370_v28 = vpop.f32.mrf.mxu1 }
0x1798   :  { %2030 = vrot.lane.b32.xlu1 %v2028_v57, %s4061_s28 }
0x180a   :  { %v2031_v10 = vpop.permute.xlu1 %2030 }
0x180b   :  { %v2033_v54 = vadd.f32 %v2031_v10, %v2023_v53 }
0x180d   :  { %3884 = vtanh.f32 %v2033_v54 }
0x1813   :  { %v3885_v55 = vpop.eup %3884 }
0x1814   :  { %2036 = vrot.lane.b32.xlu2 %v3885_v55, %s4061_s28 }
0x186e   :  { %v2037_v24 = vpop.permute.xlu2 %2036 }
0x186f   :  { %v2039_v56 = vmul.f32 %v2037_v24, %v2020_v51  ;;  %v4920_v51 = vld [vmem:[%s5245_s9] ss:$0 sm:$0xff] }
0x1870   :  { %v1371_v57 = vadd.f32 %v4920_v51, %v1370_v28 }
0x1871   :  { %2042 = vrot.lane.b32.xlu0 %v2039_v56, %s4062_s29 }
0x18e3   :  { %v2043_v58 = vpop.permute.xlu0 %2042 }
0x18e4   :  { %3733 = vmatmul.msk.f32.vlgmr.msrb.gmra.mxu2 %vm430_vm1, %v2043_v58 }
0x18e5   :  { %2314 = vmatpush.msrb.mxu2 %v4820_v6 }
0x18e7   :  { %2315 = vmatpush.msrb.mxu2 %v4836_v26 }
0x18e9   :  { %2316 = vmatpush.msrb.mxu2 %v4852_v0 }
0x18eb   :  { %2317 = vmatpush.msrb.mxu2 %v4868_v36 }
0x1967   :  { %v2063_v1 = vpop.f32.mrf.mxu2 }
0x1968   :  { %v2066_v8 = vadd.f32 %v2063_v1, %v1365_v42 }
0x196a   :  { %3886 = vtanh.f32 %v2066_v8  ;;  %v3734_v17 = vmul.f32 -1.442695, %v2066_v8 }
0x196c   :  { %3888 = vpow2.f32 %v3734_v17 }
0x1970   :  { %v3887_v61 = vpop.eup %3886 }
0x1971   :  { %2089 = vrot.lane.b32.xlu1 %v3887_v61, %s4061_s28 }
0x1972   :  { %v3889_v62 = vpop.eup %3888 }
0x1973   :  { %v2070_v29 = vadd.f32 1.0, %v3889_v62 }
0x1975   :  { %3890 = vrcp.f32 %v2070_v29  ;;  %v2082_v25 = vand.u32 2147483648, %v2070_v29  ;;  %vm2076_vm2 = vweird.f32 %v2070_v29  ;;  %v2080_v5 = vand.u32 2147483647, %v2070_v29 }
0x1977   :  { %v2083_v7 = vor.u32 1.1754944e-38, %v2082_v25  ;;  %vm2081_vm5 = vcmp.eq.f32.partialorder %v2080_v5, 8.507059e+37 }
0x197b   :  { %v3891_v63 = vpop.eup %3890 }
0x197c   :  { %v2072_v40 = vmul.f32 %v3891_v63, %v2070_v29  ;;  %vm2077_vm0 = vweird.f32 %v3891_v63 }
0x197d   :  { %vm2078_vm4 = vmor %vm2076_vm2, %vm2077_vm0 }
0x197e   :  { %v2073_v50 = vsub.f32 1.0, %v2072_v40 }
0x1980   :  { %v2074_v2 = vmul.f32 %v3891_v63, %v2073_v50 }
0x1982   :  { %v2075_v4 = vadd.f32 %v3891_v63, %v2074_v2 }
0x1984   :  { %v2079_v59 = vsel %vm2078_vm4, %v3891_v63, %v2075_v4 }
0x1985   :  { %v2084_v11 = vsel %vm2081_vm5, %v2083_v7, %v2079_v59 }
0x1986   :  { %v2087_v12 = vmul.f32 %v2084_v11, %v2033_v54 }
0x19e3   :  { %v2090_v9 = vpop.permute.xlu1 %2089 }
0x19e4   :  { %v2092_v27 = vmul.f32 %v2090_v9, %v2084_v11 }
0x19e6   :  { %2094 = vrot.lane.b32.xlu2 %v2092_v27, %s4061_s28 }
0x1a40   :  { %v2095_v14 = vpop.permute.xlu2 %2094 }
0x1a41   :  { %v2097_v3 = vadd.f32 %v2095_v14, %v2087_v12 }
0x1a43   :  { %3892 = vtanh.f32 %v2097_v3 }
0x1a49   :  { %v3893_v21 = vpop.eup %3892 }
0x1a4a   :  { %2100 = vrot.lane.b32.xlu0 %v3893_v21, %s4061_s28 }
0x1abc   :  { %v2101_v15 = vpop.permute.xlu0 %2100 }
0x1abd   :  { %v2103_v60 = vmul.f32 %v2101_v15, %v2084_v11  ;;  %v1373_v11 = vpop.f32.mrf.mxu1 }
0x1abe   :  { %v1374_v27 = vadd.f32 %v4920_v51, %v1373_v11 }
0x1abf   :  { %2106 = vrot.lane.b32.xlu1 %v2103_v60, %s4062_s29 }
0x1b31   :  { %v2107_v16 = vpop.permute.xlu1 %2106 }
0x1b32   :  { %3735 = vmatmul.msk.f32.vlgmr.msra.gmra.mxu3 %vm430_vm1, %v2107_v16 }
0x1b33   :  { %2378 = vmatpush.msra.mxu3 %v4820_v6 }
0x1b35   :  { %2379 = vmatpush.msra.mxu3 %v4836_v26 }
0x1b37   :  { %2380 = vmatpush.msra.mxu3 %v4852_v0 }
0x1b39   :  { %2381 = vmatpush.msra.mxu3 %v4868_v36 }
0x1bb5   :  { %v2127_v22 = vpop.f32.mrf.mxu3 }
0x1bb6   :  { %v2130_v37 = vadd.f32 %v2127_v22, %v1368_v20 }
0x1bb8   :  { %3894 = vtanh.f32 %v2130_v37  ;;  %v3736_v13 = vmul.f32 -1.442695, %v2130_v37 }
0x1bba   :  { %3896 = vpow2.f32 %v3736_v13 }
0x1bbe   :  { %v3895_v31 = vpop.eup %3894 }
0x1bbf   :  { %2153 = vrot.lane.b32.xlu2 %v3895_v31, %s4061_s28 }
0x1bc0   :  { %v3897_v34 = vpop.eup %3896 }
0x1bc1   :  { %v2134_v23 = vadd.f32 1.0, %v3897_v34 }
0x1bc3   :  { %3898 = vrcp.f32 %v2134_v23  ;;  %v2146_v36 = vand.u32 2147483648, %v2134_v23  ;;  %vm2140_vm7 = vweird.f32 %v2134_v23  ;;  %v2144_v18 = vand.u32 2147483647, %v2134_v23 }
0x1bc5   :  { %v2147_v52 = vor.u32 1.1754944e-38, %v2146_v36  ;;  %vm2145_vm9 = vcmp.eq.f32.partialorder %v2144_v18, 8.507059e+37 }
0x1bc9   :  { %v3899_v6 = vpop.eup %3898 }
0x1bca   :  { %v2136_v26 = vmul.f32 %v3899_v6, %v2134_v23  ;;  %vm2141_vm6 = vweird.f32 %v3899_v6 }
0x1bcb   :  { %vm2142_vm8 = vmor %vm2140_vm7, %vm2141_vm6 }
0x1bcc   :  { %v2137_v32 = vsub.f32 1.0, %v2136_v26 }
0x1bce   :  { %v2138_v0 = vmul.f32 %v3899_v6, %v2137_v32 }
0x1bd0   :  { %v2139_v33 = vadd.f32 %v3899_v6, %v2138_v0 }
0x1bd2   :  { %v2143_v38 = vsel %vm2142_vm8, %v3899_v6, %v2139_v33 }
0x1bd3   :  { %v2148_v41 = vsel %vm2145_vm9, %v2147_v52, %v2143_v38 }
0x1bd4   :  { %v2151_v44 = vmul.f32 %v2148_v41, %v2097_v3 }
0x1c19   :  { %v2154_v39 = vpop.permute.xlu2 %2153 }
0x1c1a   :  { %v2156_v43 = vmul.f32 %v2154_v39, %v2148_v41 }
0x1c1c   :  { %2158 = vrot.lane.b32.xlu0 %v2156_v43, %s4061_s28 }
0x1c8e   :  { %v2159_v45 = vpop.permute.xlu0 %2158 }
0x1c8f   :  { %v2161_v46 = vadd.f32 %v2159_v45, %v2151_v44 }
0x1c91   :  { %3900 = vtanh.f32 %v2161_v46 }
0x1c97   :  { %v3901_v30 = vpop.eup %3900 }
0x1c98   :  { %2164 = vrot.lane.b32.xlu1 %v3901_v30, %s4061_s28 }
0x1d0a   :  { %v2165_v47 = vpop.permute.xlu1 %2164 }
0x1d0b   :  { %v2167_v48 = vmul.f32 %v2165_v47, %v2148_v41  ;;  %v1376_v41 = vpop.f32.mrf.mxu1 }
0x1d0c   :  { %v1377_v43 = vadd.f32 %v4920_v51, %v1376_v41 }
0x1d0d   :  { %2170 = vrot.lane.b32.xlu2 %v2167_v48, %s4062_s29 }
0x1d67   :  { %v2171_v49 = vpop.permute.xlu2 %2170 }
0x1d68   :  { %3737 = vmatmul.msk.f32.vlgmr.msra.gmra.mxu2 %vm430_vm1, %v2171_v49 }
0x1deb   :  { %v2191_v53 = vpop.f32.mrf.mxu2 }
0x1dec   :  { %v2194_v10 = vadd.f32 %v2191_v53, %v1371_v57 }
0x1dee   :  { %3902 = vtanh.f32 %v2194_v10  ;;  %v3738_v55 = vmul.f32 -1.442695, %v2194_v10 }
0x1df0   :  { %3904 = vpow2.f32 %v3738_v55 }
0x1df4   :  { %v3903_v54 = vpop.eup %3902 }
0x1df5   :  { %2217 = vrot.lane.b32.xlu0 %v3903_v54, %s4061_s28 }
0x1df6   :  { %v3905_v24 = vpop.eup %3904 }
0x1df7   :  { %v2198_v56 = vadd.f32 1.0, %v3905_v24 }
0x1df9   :  { %3906 = vrcp.f32 %v2198_v56  ;;  %v2210_v61 = vand.u32 2147483648, %v2198_v56  ;;  %vm2204_vm11 = vweird.f32 %v2198_v56  ;;  %v2208_v17 = vand.u32 2147483647, %v2198_v56 }
0x1dfb   :  { %v2211_v29 = vor.u32 1.1754944e-38, %v2210_v61  ;;  %vm2209_vm13 = vcmp.eq.f32.partialorder %v2208_v17, 8.507059e+37 }
0x1dff   :  { %v3907_v58 = vpop.eup %3906 }
0x1e00   :  { %v2200_v35 = vmul.f32 %v3907_v58, %v2198_v56  ;;  %vm2205_vm10 = vweird.f32 %v3907_v58 }
0x1e01   :  { %vm2206_vm12 = vmor %vm2204_vm11, %vm2205_vm10 }
0x1e02   :  { %v2201_v42 = vsub.f32 1.0, %v2200_v35 }
0x1e04   :  { %v2202_v1 = vmul.f32 %v3907_v58, %v2201_v42 }
0x1e06   :  { %v2203_v8 = vadd.f32 %v3907_v58, %v2202_v1 }
0x1e08   :  { %v2207_v62 = vsel %vm2206_vm12, %v3907_v58, %v2203_v8 }
0x1e09   :  { %v2212_v40 = vsel %vm2209_vm13, %v2211_v29, %v2207_v62 }
0x1e0a   :  { %v2215_v2 = vmul.f32 %v2212_v40, %v2161_v46 }
0x1e67   :  { %v2218_v63 = vpop.permute.xlu0 %2217 }
0x1e68   :  { %v2220_v50 = vmul.f32 %v2218_v63, %v2212_v40 }
0x1e6a   :  { %2222 = vrot.lane.b32.xlu1 %v2220_v50, %s4061_s28 }
0x1edc   :  { %v2223_v4 = vpop.permute.xlu1 %2222 }
0x1edd   :  { %v2225_v25 = vadd.f32 %v2223_v4, %v2215_v2 }
0x1edf   :  { %3908 = vtanh.f32 %v2225_v25 }
0x1ee5   :  { %v3909_v5 = vpop.eup %3908 }
0x1ee6   :  { %2228 = vrot.lane.b32.xlu2 %v3909_v5, %s4061_s28 }
0x1f40   :  { %v2229_v59 = vpop.permute.xlu2 %2228 }
0x1f41   :  { %v2231_v7 = vmul.f32 %v2229_v59, %v2212_v40  ;;  %v1379_v40 = vpop.f32.mrf.mxu1 }
0x1f42   :  { %v1380_v50 = vadd.f32 %v4920_v51, %v1379_v40 }
0x1f43   :  { %2234 = vrot.lane.b32.xlu0 %v2231_v7, %s4062_s29 }
0x1fb5   :  { %v2235_v9 = vpop.permute.xlu0 %2234 }
0x1fb6   :  { %3739 = vmatmul.msk.f32.vlgmr.msrb.gmra.mxu3 %vm430_vm1, %v2235_v9 }
0x2039   :  { %v2255_v12 = vpop.f32.mrf.mxu3 }
0x203a   :  { %v2258_v14 = vadd.f32 %v2255_v12, %v1374_v27 }
0x203c   :  { %3910 = vtanh.f32 %v2258_v14  ;;  %v3740_v21 = vmul.f32 -1.442695, %v2258_v14 }
0x203e   :  { %3912 = vpow2.f32 %v3740_v21 }
0x2042   :  { %v3911_v3 = vpop.eup %3910 }
0x2043   :  { %2281 = vrot.lane.b32.xlu1 %v3911_v3, %s4061_s28 }
0x2044   :  { %v3913_v15 = vpop.eup %3912 }
0x2045   :  { %v2262_v60 = vadd.f32 1.0, %v3913_v15 }
0x2047   :  { %3914 = vrcp.f32 %v2262_v60  ;;  %v2274_v31 = vand.u32 2147483648, %v2262_v60  ;;  %vm2268_vm15 = vweird.f32 %v2262_v60  ;;  %v2272_v13 = vand.u32 2147483647, %v2262_v60 }
0x2049   :  { %v2275_v23 = vor.u32 1.1754944e-38, %v2274_v31  ;;  %vm2273_vm2 = vcmp.eq.f32.partialorder %v2272_v13, 8.507059e+37  ;;  %v4950_v13 = vld [vmem:[%s5246_s10 + $0x18] sm:$0xff] }
0x204a   :  { %2451 = vmatpush.msra.mxu2 %v4950_v13  ;;  %2515 = vmatpush.msrb.mxu3 %v4950_v13 }
0x204d   :  { %v3915_v16 = vpop.eup %3914 }
0x204e   :  { %v2264_v19 = vmul.f32 %v3915_v16, %v2262_v60  ;;  %vm2269_vm14 = vweird.f32 %v3915_v16 }
0x204f   :  { %vm2270_vm0 = vmor %vm2268_vm15, %vm2269_vm14 }
0x2050   :  { %v2265_v20 = vsub.f32 1.0, %v2264_v19 }
0x2052   :  { %v2266_v22 = vmul.f32 %v3915_v16, %v2265_v20 }
0x2054   :  { %v2267_v37 = vadd.f32 %v3915_v16, %v2266_v22 }
0x2056   :  { %v2271_v34 = vsel %vm2270_vm0, %v3915_v16, %v2267_v37 }
0x2057   :  { %v2276_v26 = vsel %vm2273_vm2, %v2275_v23, %v2271_v34  ;;  %v4955_v34 = vld [vmem:[%s5246_s10 + $0x10] sm:$0xff]  ;;  %v4962_v23 = vld [vmem:[%s5246_s10 + $0x8] sm:$0xff] }
0x2058   :  { %v2279_v0 = vmul.f32 %v2276_v26, %v2225_v25  ;;  %2452 = vmatpush.msra.mxu2 %v4955_v34  ;;  %2516 = vmatpush.msrb.mxu3 %v4955_v34 }
0x205a   :  { %2453 = vmatpush.msra.mxu2 %v4962_v23  ;;  %2517 = vmatpush.msrb.mxu3 %v4962_v23 }
0x20b5   :  { %v2282_v6 = vpop.permute.xlu1 %2281 }
0x20b6   :  { %v2284_v32 = vmul.f32 %v2282_v6, %v2276_v26  ;;  %v4969_v6 = vld [vmem:[%s5246_s10] sm:$0xff] }
0x20b7   :  { %2454 = vmatpush.msra.mxu2 %v4969_v6  ;;  %2518 = vmatpush.msrb.mxu3 %v4969_v6 }
0x20b8   :  { %2286 = vrot.lane.b32.xlu2 %v2284_v32, %s4061_s28 }
0x2112   :  { %v2287_v33 = vpop.permute.xlu2 %2286 }
0x2113   :  { %v2289_v36 = vadd.f32 %v2287_v33, %v2279_v0  ;;  %v4993_v33 = vld [vmem:[%s5247_s11] ss:$0 sm:$0xff] }
0x2115   :  { %3916 = vtanh.f32 %v2289_v36 }
0x211b   :  { %v3917_v18 = vpop.eup %3916 }
0x211c   :  { %2292 = vrot.lane.b32.xlu0 %v3917_v18, %s4061_s28 }
0x218e   :  { %v2293_v38 = vpop.permute.xlu0 %2292 }
0x218f   :  { %v2295_v52 = vmul.f32 %v2293_v38, %v2276_v26 }
0x2191   :  { %2298 = vrot.lane.b32.xlu1 %v2295_v52, %s4062_s29 }
0x2203   :  { %v2299_v39 = vpop.permute.xlu1 %2298 }
0x2204   :  { %3741 = vmatmul.msk.f32.vlgmr.msrb.gmra.mxu2 %vm430_vm1, %v2299_v39 }
0x2205   :  { %2579 = vmatpush.msrb.mxu2 %v4950_v13 }
0x2207   :  { %2580 = vmatpush.msrb.mxu2 %v4955_v34 }
0x2209   :  { %2581 = vmatpush.msrb.mxu2 %v4962_v23 }
0x220b   :  { %2582 = vmatpush.msrb.mxu2 %v4969_v6 }
0x2287   :  { %v2319_v44 = vpop.f32.mrf.mxu2 }
0x2288   :  { %v2322_v45 = vadd.f32 %v2319_v44, %v1377_v43 }
0x228a   :  { %3918 = vtanh.f32 %v2322_v45  ;;  %v3742_v30 = vmul.f32 -1.442695, %v2322_v45 }
0x228c   :  { %3920 = vpow2.f32 %v3742_v30 }
0x2290   :  { %v3919_v46 = vpop.eup %3918 }
0x2291   :  { %2345 = vrot.lane.b32.xlu2 %v3919_v46, %s4061_s28 }
0x2292   :  { %v3921_v47 = vpop.eup %3920 }
0x2293   :  { %v2326_v48 = vadd.f32 1.0, %v3921_v47 }
0x2295   :  { %3922 = vrcp.f32 %v2326_v48  ;;  %v2338_v54 = vand.u32 2147483648, %v2326_v48  ;;  %vm2332_vm5 = vweird.f32 %v2326_v48  ;;  %v2336_v55 = vand.u32 2147483647, %v2326_v48 }
0x2297   :  { %v2339_v56 = vor.u32 1.1754944e-38, %v2338_v54  ;;  %vm2337_vm7 = vcmp.eq.f32.partialorder %v2336_v55, 8.507059e+37 }
0x229b   :  { %v3923_v49 = vpop.eup %3922 }
0x229c   :  { %v2328_v28 = vmul.f32 %v3923_v49, %v2326_v48  ;;  %vm2333_vm4 = vweird.f32 %v3923_v49 }
0x229d   :  { %vm2334_vm6 = vmor %vm2332_vm5, %vm2333_vm4 }
0x229e   :  { %v2329_v57 = vsub.f32 1.0, %v2328_v28 }
0x22a0   :  { %v2330_v53 = vmul.f32 %v3923_v49, %v2329_v57 }
0x22a2   :  { %v2331_v10 = vadd.f32 %v3923_v49, %v2330_v53 }
0x22a4   :  { %v2335_v24 = vsel %vm2334_vm6, %v3923_v49, %v2331_v10 }
0x22a5   :  { %v2340_v35 = vsel %vm2337_vm7, %v2339_v56, %v2335_v24 }
0x22a6   :  { %v2343_v1 = vmul.f32 %v2340_v35, %v2289_v36 }
0x22eb   :  { %v2346_v58 = vpop.permute.xlu2 %2345 }
0x22ec   :  { %v2348_v42 = vmul.f32 %v2346_v58, %v2340_v35 }
0x22ee   :  { %2350 = vrot.lane.b32.xlu0 %v2348_v42, %s4061_s28 }
0x2360   :  { %v2351_v8 = vpop.permute.xlu0 %2350 }
0x2361   :  { %v2353_v61 = vadd.f32 %v2351_v8, %v2343_v1 }
0x2363   :  { %3924 = vtanh.f32 %v2353_v61 }
0x2369   :  { %v3925_v17 = vpop.eup %3924 }
0x236a   :  { %2356 = vrot.lane.b32.xlu1 %v3925_v17, %s4061_s28 }
0x23dc   :  { %v2357_v62 = vpop.permute.xlu1 %2356 }
0x23dd   :  { %v2359_v29 = vmul.f32 %v2357_v62, %v2340_v35 }
0x23df   :  { %2362 = vrot.lane.b32.xlu2 %v2359_v29, %s4062_s29 }
0x2439   :  { %v2363_v63 = vpop.permute.xlu2 %2362 }
0x243a   :  { %3743 = vmatmul.msk.f32.vlgmr.msra.gmra.mxu3 %vm430_vm1, %v2363_v63 }
0x243b   :  { %2643 = vmatpush.msra.mxu3 %v4950_v13 }
0x243d   :  { %2644 = vmatpush.msra.mxu3 %v4955_v34 }
0x243f   :  { %2645 = vmatpush.msra.mxu3 %v4962_v23 }
0x2441   :  { %2646 = vmatpush.msra.mxu3 %v4969_v6 }
0x24bd   :  { %v2383_v2 = vpop.f32.mrf.mxu3 }
0x24be   :  { %v2386_v4 = vadd.f32 %v2383_v2, %v1380_v50 }
0x24c0   :  { %3926 = vtanh.f32 %v2386_v4  ;;  %v3744_v5 = vmul.f32 -1.442695, %v2386_v4 }
0x24c2   :  { %3928 = vpow2.f32 %v3744_v5 }
0x24c6   :  { %v3927_v25 = vpop.eup %3926 }
0x24c7   :  { %2409 = vrot.lane.b32.xlu0 %v3927_v25, %s4061_s28 }
0x24c8   :  { %v3929_v59 = vpop.eup %3928 }
0x24c9   :  { %v2390_v7 = vadd.f32 1.0, %v3929_v59 }
0x24cb   :  { %3930 = vrcp.f32 %v2390_v7  ;;  %v2402_v3 = vand.u32 2147483648, %v2390_v7  ;;  %vm2396_vm9 = vweird.f32 %v2390_v7  ;;  %v2400_v51 = vand.u32 2147483647, %v2390_v7 }
0x24cd   :  { %v2403_v15 = vor.u32 1.1754944e-38, %v2402_v3  ;;  %vm2401_vm11 = vcmp.eq.f32.partialorder %v2400_v51, 8.507059e+37 }
0x24d1   :  { %v3931_v9 = vpop.eup %3930 }
0x24d2   :  { %v2392_v11 = vmul.f32 %v3931_v9, %v2390_v7  ;;  %vm2397_vm8 = vweird.f32 %v3931_v9 }
0x24d3   :  { %vm2398_vm10 = vmor %vm2396_vm9, %vm2397_vm8 }
0x24d4   :  { %v2393_v27 = vsub.f32 1.0, %v2392_v11 }
0x24d6   :  { %v2394_v12 = vmul.f32 %v3931_v9, %v2393_v27 }
0x24d8   :  { %v2395_v14 = vadd.f32 %v3931_v9, %v2394_v12 }
0x24da   :  { %v2399_v21 = vsel %vm2398_vm10, %v3931_v9, %v2395_v14 }
0x24db   :  { %v2404_v16 = vsel %vm2401_vm11, %v2403_v15, %v2399_v21 }
0x24dc   :  { %v2407_v20 = vmul.f32 %v2404_v16, %v2353_v61 }
0x2539   :  { %v2410_v60 = vpop.permute.xlu0 %2409 }
0x253a   :  { %v2412_v19 = vmul.f32 %v2410_v60, %v2404_v16 }
0x253c   :  { %2414 = vrot.lane.b32.xlu1 %v2412_v19, %s4061_s28 }
0x25ae   :  { %v2415_v22 = vpop.permute.xlu1 %2414 }
0x25af   :  { %v4943_v37 = vadd.f32 %v2415_v22, %v2407_v20 }
0x25b1   :  { %3932 = vtanh.f32 %v4943_v37 }
0x25b7   :  { %v3933_v31 = vpop.eup %3932 }
0x25b8   :  { %2420 = vrot.lane.b32.xlu2 %v3933_v31, %s4061_s28 }
0x2612   :  { %v2421_v26 = vpop.permute.xlu2 %2420 }
0x2613   :  { %v2423_v32 = vmul.f32 %v2421_v26, %v2404_v16 }
0x2615   :  { %2433 = vrot.lane.b32.xlu0 %v2423_v32, %s4062_s29 }
0x2687   :  { %v2434_v0 = vpop.permute.xlu0 %2433 }
0x2688   :  { %2436 = vst.msk [vmem:[#allocation5 + $0x78] sm:$0xff] %vm430_vm1, %v2434_v0  ;;  %3745 = vmatmul.msk.f32.vlgmr.msra.gmra.mxu2 %vm430_vm1, %v2434_v0 }
0x2689   :  { %2707 = vmatpush.msra.mxu2 %v4950_v13 }
0x268b   :  { %2708 = vmatpush.msra.mxu2 %v4955_v34 }
0x268d   :  { %2709 = vmatpush.msra.mxu2 %v4962_v23 }
0x268f   :  { %2710 = vmatpush.msra.mxu2 %v4969_v6 }
0x270b   :  { %v2456_v36 = vpop.f32.mrf.mxu2 }
0x270c   :  { %v2457_v18 = vadd.f32 %v4993_v33, %v2456_v36 }
0x270e   :  { %3934 = vtanh.f32 %v2457_v18  ;;  %v3746_v52 = vmul.f32 -1.442695, %v2457_v18 }
0x2710   :  { %3936 = vpow2.f32 %v3746_v52 }
0x2714   :  { %v3935_v38 = vpop.eup %3934 }
0x2715   :  { %2481 = vrot.lane.b32.xlu1 %v3935_v38, %s4061_s28 }
0x2716   :  { %v3937_v39 = vpop.eup %3936 }
0x2717   :  { %v2462_v41 = vadd.f32 1.0, %v3937_v39 }
0x2719   :  { %3938 = vrcp.f32 %v2462_v41  ;;  %v2474_v47 = vand.u32 2147483648, %v2462_v41  ;;  %vm2468_vm13 = vweird.f32 %v2462_v41  ;;  %v2472_v48 = vand.u32 2147483647, %v2462_v41 }
0x271b   :  { %v2475_v28 = vor.u32 1.1754944e-38, %v2474_v47  ;;  %vm2473_vm15 = vcmp.eq.f32.partialorder %v2472_v48, 8.507059e+37 }
0x271f   :  { %v3939_v43 = vpop.eup %3938 }
0x2720   :  { %v2464_v44 = vmul.f32 %v3939_v43, %v2462_v41  ;;  %vm2469_vm12 = vweird.f32 %v3939_v43 }
0x2721   :  { %vm2470_vm14 = vmor %vm2468_vm13, %vm2469_vm12 }
0x2722   :  { %v2465_v45 = vsub.f32 1.0, %v2464_v44 }
0x2724   :  { %v2466_v46 = vmul.f32 %v3939_v43, %v2465_v45 }
0x2726   :  { %v2467_v30 = vadd.f32 %v3939_v43, %v2466_v46 }
0x2728   :  { %v2471_v49 = vsel %vm2470_vm14, %v3939_v43, %v2467_v30 }
0x2729   :  { %v2476_v53 = vsel %vm2473_vm15, %v2475_v28, %v2471_v49 }
0x272a   :  { %v2479_v54 = vmul.f32 %v2476_v53, %v4943_v37 }
0x2787   :  { %v2482_v57 = vpop.permute.xlu1 %2481 }
0x2788   :  { %v2484_v10 = vmul.f32 %v2482_v57, %v2476_v53 }
0x278a   :  { %2486 = vrot.lane.b32.xlu2 %v2484_v10, %s4061_s28 }
0x27e4   :  { %v2487_v55 = vpop.permute.xlu2 %2486 }
0x27e5   :  { %v2489_v24 = vadd.f32 %v2487_v55, %v2479_v54 }
0x27e7   :  { %3940 = vtanh.f32 %v2489_v24 }
0x27ed   :  { %v3941_v56 = vpop.eup %3940 }
0x27ee   :  { %2492 = vrot.lane.b32.xlu0 %v3941_v56, %s4061_s28 }
0x2860   :  { %v2493_v58 = vpop.permute.xlu0 %2492 }
0x2861   :  { %v2495_v35 = vmul.f32 %v2493_v58, %v2476_v53 }
0x2863   :  { %2497 = vrot.lane.b32.xlu1 %v2495_v35, %s4062_s29 }
0x28d5   :  { %v2498_v42 = vpop.permute.xlu1 %2497 }
0x28d6   :  { %2500 = vst.msk [vmem:[#allocation5 + $0x70] sm:$0xff] %vm430_vm1, %v2498_v42  ;;  %3747 = vmatmul.msk.f32.vlgmr.msrb.gmra.mxu3 %vm430_vm1, %v2498_v42 }
0x28d7   :  { %2771 = vmatpush.msrb.mxu3 %v4950_v13 }
0x28d9   :  { %2772 = vmatpush.msrb.mxu3 %v4955_v34 }
0x28db   :  { %2773 = vmatpush.msrb.mxu3 %v4962_v23 }
0x28dd   :  { %2774 = vmatpush.msrb.mxu3 %v4969_v6 }
0x2959   :  { %v2520_v1 = vpop.f32.mrf.mxu3 }
0x295a   :  { %v2521_v8 = vadd.f32 %v4993_v33, %v2520_v1 }
0x295c   :  { %3942 = vtanh.f32 %v2521_v8  ;;  %v3748_v17 = vmul.f32 -1.442695, %v2521_v8 }
0x295e   :  { %3944 = vpow2.f32 %v3748_v17 }
0x2962   :  { %v3943_v61 = vpop.eup %3942 }
0x2963   :  { %2545 = vrot.lane.b32.xlu2 %v3943_v61, %s4061_s28 }
0x2964   :  { %v3945_v62 = vpop.eup %3944 }
0x2965   :  { %v2526_v29 = vadd.f32 1.0, %v3945_v62 }
0x2967   :  { %3946 = vrcp.f32 %v2526_v29  ;;  %v2538_v25 = vand.u32 2147483648, %v2526_v29  ;;  %vm2532_vm2 = vweird.f32 %v2526_v29  ;;  %v2536_v5 = vand.u32 2147483647, %v2526_v29 }
0x2969   :  { %v2539_v7 = vor.u32 1.1754944e-38, %v2538_v25  ;;  %vm2537_vm5 = vcmp.eq.f32.partialorder %v2536_v5, 8.507059e+37 }
0x296d   :  { %v3947_v63 = vpop.eup %3946 }
0x296e   :  { %v2528_v40 = vmul.f32 %v3947_v63, %v2526_v29  ;;  %vm2533_vm0 = vweird.f32 %v3947_v63 }
0x296f   :  { %vm2534_vm4 = vmor %vm2532_vm2, %vm2533_vm0 }
0x2970   :  { %v2529_v50 = vsub.f32 1.0, %v2528_v40 }
0x2972   :  { %v2530_v2 = vmul.f32 %v3947_v63, %v2529_v50 }
0x2974   :  { %v2531_v4 = vadd.f32 %v3947_v63, %v2530_v2 }
0x2976   :  { %v2535_v59 = vsel %vm2534_vm4, %v3947_v63, %v2531_v4 }
0x2977   :  { %v2540_v11 = vsel %vm2537_vm5, %v2539_v7, %v2535_v59 }
0x2978   :  { %v2543_v12 = vmul.f32 %v2540_v11, %v2489_v24 }
0x29bd   :  { %v2546_v9 = vpop.permute.xlu2 %2545 }
0x29be   :  { %v2548_v27 = vmul.f32 %v2546_v9, %v2540_v11 }
0x29c0   :  { %2550 = vrot.lane.b32.xlu0 %v2548_v27, %s4061_s28 }
0x2a32   :  { %v2551_v14 = vpop.permute.xlu0 %2550 }
0x2a33   :  { %v2553_v3 = vadd.f32 %v2551_v14, %v2543_v12 }
0x2a35   :  { %3948 = vtanh.f32 %v2553_v3 }
0x2a3b   :  { %v3949_v51 = vpop.eup %3948 }
0x2a3c   :  { %2556 = vrot.lane.b32.xlu1 %v3949_v51, %s4061_s28 }
0x2aae   :  { %v2557_v21 = vpop.permute.xlu1 %2556 }
0x2aaf   :  { %v2559_v15 = vmul.f32 %v2557_v21, %v2540_v11 }
0x2ab1   :  { %2561 = vrot.lane.b32.xlu2 %v2559_v15, %s4062_s29 }
0x2b0b   :  { %v2562_v60 = vpop.permute.xlu2 %2561 }
0x2b0c   :  { %2564 = vst.msk [vmem:[#allocation5 + $0x68] sm:$0xff] %vm430_vm1, %v2562_v60  ;;  %3749 = vmatmul.msk.f32.vlgmr.msrb.gmra.mxu2 %vm430_vm1, %v2562_v60 }
0x2b0d   :  { %2835 = vmatpush.msrb.mxu2 %v4950_v13 }
0x2b0f   :  { %2836 = vmatpush.msrb.mxu2 %v4955_v34 }
0x2b11   :  { %2837 = vmatpush.msrb.mxu2 %v4962_v23 }
0x2b13   :  { %2838 = vmatpush.msrb.mxu2 %v4969_v6 }
0x2b8f   :  { %v2584_v16 = vpop.f32.mrf.mxu2 }
0x2b90   :  { %v2585_v19 = vadd.f32 %v4993_v33, %v2584_v16 }
0x2b92   :  { %3950 = vtanh.f32 %v2585_v19  ;;  %v3750_v22 = vmul.f32 -1.442695, %v2585_v19 }
0x2b94   :  { %3952 = vpow2.f32 %v3750_v22 }
0x2b98   :  { %v3951_v20 = vpop.eup %3950 }
0x2b99   :  { %2609 = vrot.lane.b32.xlu0 %v3951_v20, %s4061_s28 }
0x2b9a   :  { %v3953_v37 = vpop.eup %3952 }
0x2b9b   :  { %v2590_v31 = vadd.f32 1.0, %v3953_v37 }
0x2b9d   :  { %3954 = vrcp.f32 %v2590_v31  ;;  %v2602_v38 = vand.u32 2147483648, %v2590_v31  ;;  %vm2596_vm7 = vweird.f32 %v2590_v31  ;;  %v2600_v52 = vand.u32 2147483647, %v2590_v31 }
0x2b9f   :  { %v2603_v41 = vor.u32 1.1754944e-38, %v2602_v38  ;;  %vm2601_vm9 = vcmp.eq.f32.partialorder %v2600_v52, 8.507059e+37 }
0x2ba3   :  { %v3955_v26 = vpop.eup %3954 }
0x2ba4   :  { %v2592_v32 = vmul.f32 %v3955_v26, %v2590_v31  ;;  %vm2597_vm6 = vweird.f32 %v3955_v26 }
0x2ba5   :  { %vm2598_vm8 = vmor %vm2596_vm7, %vm2597_vm6 }
0x2ba6   :  { %v2593_v0 = vsub.f32 1.0, %v2592_v32 }
0x2ba8   :  { %v2594_v36 = vmul.f32 %v3955_v26, %v2593_v0 }
0x2baa   :  { %v2595_v18 = vadd.f32 %v3955_v26, %v2594_v36 }
0x2bac   :  { %v2599_v39 = vsel %vm2598_vm8, %v3955_v26, %v2595_v18 }
0x2bad   :  { %v2604_v44 = vsel %vm2601_vm9, %v2603_v41, %v2599_v39 }
0x2bae   :  { %v2607_v46 = vmul.f32 %v2604_v44, %v2553_v3 }
0x2c0b   :  { %v2610_v43 = vpop.permute.xlu0 %2609 }
0x2c0c   :  { %v2612_v45 = vmul.f32 %v2610_v43, %v2604_v44 }
0x2c0e   :  { %2614 = vrot.lane.b32.xlu1 %v2612_v45, %s4061_s28 }
0x2c80   :  { %v2615_v30 = vpop.permute.xlu1 %2614 }
0x2c81   :  { %v2617_v47 = vadd.f32 %v2615_v30, %v2607_v46 }
0x2c83   :  { %3956 = vtanh.f32 %v2617_v47 }
0x2c89   :  { %v3957_v48 = vpop.eup %3956 }
0x2c8a   :  { %2620 = vrot.lane.b32.xlu2 %v3957_v48, %s4061_s28 }
0x2ce4   :  { %v2621_v49 = vpop.permute.xlu2 %2620 }
0x2ce5   :  { %v2623_v28 = vmul.f32 %v2621_v49, %v2604_v44 }
0x2ce7   :  { %2625 = vrot.lane.b32.xlu0 %v2623_v28, %s4062_s29 }
0x2d59   :  { %v2626_v57 = vpop.permute.xlu0 %2625 }
0x2d5a   :  { %2628 = vst.msk [vmem:[#allocation5 + $0x60] sm:$0xff] %vm430_vm1, %v2626_v57  ;;  %3751 = vmatmul.msk.f32.vlgmr.msra.gmra.mxu3 %vm430_vm1, %v2626_v57 }
0x2d5b   :  { %2899 = vmatpush.msra.mxu3 %v4950_v13 }
0x2d5d   :  { %2900 = vmatpush.msra.mxu3 %v4955_v34 }
0x2d5f   :  { %2901 = vmatpush.msra.mxu3 %v4962_v23 }
0x2d61   :  { %2902 = vmatpush.msra.mxu3 %v4969_v6 }
0x2ddd   :  { %v2648_v53 = vpop.f32.mrf.mxu3 }
0x2dde   :  { %v2649_v10 = vadd.f32 %v4993_v33, %v2648_v53 }
0x2de0   :  { %3958 = vtanh.f32 %v2649_v10  ;;  %v3752_v55 = vmul.f32 -1.442695, %v2649_v10 }
0x2de2   :  { %3960 = vpow2.f32 %v3752_v55 }
0x2de6   :  { %v3959_v54 = vpop.eup %3958 }
0x2de7   :  { %2673 = vrot.lane.b32.xlu1 %v3959_v54, %s4061_s28 }
0x2de8   :  { %v3961_v24 = vpop.eup %3960 }
0x2de9   :  { %v2654_v56 = vadd.f32 1.0, %v3961_v24 }
0x2deb   :  { %3962 = vrcp.f32 %v2654_v56  ;;  %v2666_v61 = vand.u32 2147483648, %v2654_v56  ;;  %vm2660_vm11 = vweird.f32 %v2654_v56  ;;  %v2664_v17 = vand.u32 2147483647, %v2654_v56 }
0x2ded   :  { %v2667_v29 = vor.u32 1.1754944e-38, %v2666_v61  ;;  %vm2665_vm13 = vcmp.eq.f32.partialorder %v2664_v17, 8.507059e+37 }
0x2df1   :  { %v3963_v58 = vpop.eup %3962 }
0x2df2   :  { %v2656_v35 = vmul.f32 %v3963_v58, %v2654_v56  ;;  %vm2661_vm10 = vweird.f32 %v3963_v58 }
0x2df3   :  { %vm2662_vm12 = vmor %vm2660_vm11, %vm2661_vm10 }
0x2df4   :  { %v2657_v42 = vsub.f32 1.0, %v2656_v35 }
0x2df6   :  { %v2658_v1 = vmul.f32 %v3963_v58, %v2657_v42 }
0x2df8   :  { %v2659_v8 = vadd.f32 %v3963_v58, %v2658_v1 }
0x2dfa   :  { %v2663_v62 = vsel %vm2662_vm12, %v3963_v58, %v2659_v8 }
0x2dfb   :  { %v2668_v40 = vsel %vm2665_vm13, %v2667_v29, %v2663_v62 }
0x2dfc   :  { %v2671_v2 = vmul.f32 %v2668_v40, %v2617_v47 }
0x2e59   :  { %v2674_v63 = vpop.permute.xlu1 %2673 }
0x2e5a   :  { %v2676_v50 = vmul.f32 %v2674_v63, %v2668_v40 }
0x2e5c   :  { %2678 = vrot.lane.b32.xlu2 %v2676_v50, %s4061_s28 }
0x2eb6   :  { %v2679_v4 = vpop.permute.xlu2 %2678 }
0x2eb7   :  { %v2681_v25 = vadd.f32 %v2679_v4, %v2671_v2 }
0x2eb9   :  { %3964 = vtanh.f32 %v2681_v25 }
0x2ebf   :  { %v3965_v5 = vpop.eup %3964 }
0x2ec0   :  { %2684 = vrot.lane.b32.xlu0 %v3965_v5, %s4061_s28 }
0x2f32   :  { %v2685_v59 = vpop.permute.xlu0 %2684 }
0x2f33   :  { %v2687_v7 = vmul.f32 %v2685_v59, %v2668_v40 }
0x2f35   :  { %2689 = vrot.lane.b32.xlu1 %v2687_v7, %s4062_s29 }
0x2fa7   :  { %v2690_v9 = vpop.permute.xlu1 %2689 }
0x2fa8   :  { %2692 = vst.msk [vmem:[#allocation5 + $0x58] sm:$0xff] %vm430_vm1, %v2690_v9  ;;  %3753 = vmatmul.msk.f32.vlgmr.msra.gmra.mxu2 %vm430_vm1, %v2690_v9 }
0x2fa9   :  { %2963 = vmatpush.msra.mxu2 %v4950_v13 }
0x2fab   :  { %2964 = vmatpush.msra.mxu2 %v4955_v34 }
0x2fad   :  { %2965 = vmatpush.msra.mxu2 %v4962_v23 }
0x2faf   :  { %2966 = vmatpush.msra.mxu2 %v4969_v6 }
0x302b   :  { %v2712_v11 = vpop.f32.mrf.mxu2 }
0x302c   :  { %v2713_v27 = vadd.f32 %v4993_v33, %v2712_v11 }
0x302e   :  { %3966 = vtanh.f32 %v2713_v27  ;;  %v3754_v14 = vmul.f32 -1.442695, %v2713_v27 }
0x3030   :  { %3968 = vpow2.f32 %v3754_v14 }
0x3034   :  { %v3967_v12 = vpop.eup %3966 }
0x3035   :  { %2737 = vrot.lane.b32.xlu2 %v3967_v12, %s4061_s28 }
0x3036   :  { %v3969_v3 = vpop.eup %3968 }
0x3037   :  { %v2718_v51 = vadd.f32 1.0, %v3969_v3 }
0x3039   :  { %3970 = vrcp.f32 %v2718_v51  ;;  %v2730_v20 = vand.u32 2147483648, %v2718_v51  ;;  %vm2724_vm15 = vweird.f32 %v2718_v51  ;;  %v2728_v22 = vand.u32 2147483647, %v2718_v51 }
0x303b   :  { %v2731_v31 = vor.u32 1.1754944e-38, %v2730_v20  ;;  %vm2729_vm2 = vcmp.eq.f32.partialorder %v2728_v22, 8.507059e+37 }
0x303f   :  { %v3971_v21 = vpop.eup %3970 }
0x3040   :  { %v2720_v15 = vmul.f32 %v3971_v21, %v2718_v51  ;;  %vm2725_vm14 = vweird.f32 %v3971_v21 }
0x3041   :  { %vm2726_vm0 = vmor %vm2724_vm15, %vm2725_vm14 }
0x3042   :  { %v2721_v60 = vsub.f32 1.0, %v2720_v15 }
0x3044   :  { %v2722_v16 = vmul.f32 %v3971_v21, %v2721_v60 }
0x3046   :  { %v2723_v19 = vadd.f32 %v3971_v21, %v2722_v16 }
0x3048   :  { %v2727_v37 = vsel %vm2726_vm0, %v3971_v21, %v2723_v19 }
0x3049   :  { %v2732_v32 = vsel %vm2729_vm2, %v2731_v31, %v2727_v37 }
0x304a   :  { %v2735_v36 = vmul.f32 %v2732_v32, %v2681_v25 }
0x308f   :  { %v2738_v26 = vpop.permute.xlu2 %2737 }
0x3090   :  { %v2740_v0 = vmul.f32 %v2738_v26, %v2732_v32 }
0x3092   :  { %2742 = vrot.lane.b32.xlu0 %v2740_v0, %s4061_s28 }
0x3104   :  { %v2743_v18 = vpop.permute.xlu0 %2742 }
0x3105   :  { %v2745_v38 = vadd.f32 %v2743_v18, %v2735_v36 }
0x3107   :  { %3972 = vtanh.f32 %v2745_v38 }
0x310d   :  { %v3973_v52 = vpop.eup %3972 }
0x310e   :  { %2748 = vrot.lane.b32.xlu1 %v3973_v52, %s4061_s28 }
0x3180   :  { %v2749_v39 = vpop.permute.xlu1 %2748 }
0x3181   :  { %v2751_v41 = vmul.f32 %v2749_v39, %v2732_v32 }
0x3183   :  { %2753 = vrot.lane.b32.xlu2 %v2751_v41, %s4062_s29 }
0x31dd   :  { %v2754_v43 = vpop.permute.xlu2 %2753 }
0x31de   :  { %2756 = vst.msk [vmem:[#allocation5 + $0x50] sm:$0xff] %vm430_vm1, %v2754_v43  ;;  %3755 = vmatmul.msk.f32.vlgmr.msrb.gmra.mxu3 %vm430_vm1, %v2754_v43 }
0x31df   :  { %3027 = vmatpush.msrb.mxu3 %v4950_v13 }
0x31e1   :  { %3028 = vmatpush.msrb.mxu3 %v4955_v34 }
0x31e3   :  { %3029 = vmatpush.msrb.mxu3 %v4962_v23 }
0x31e5   :  { %3030 = vmatpush.msrb.mxu3 %v4969_v6 }
0x3261   :  { %v2776_v44 = vpop.f32.mrf.mxu3 }
0x3262   :  { %v2777_v45 = vadd.f32 %v4993_v33, %v2776_v44 }
0x3264   :  { %3974 = vtanh.f32 %v2777_v45  ;;  %v3756_v30 = vmul.f32 -1.442695, %v2777_v45 }
0x3266   :  { %3976 = vpow2.f32 %v3756_v30 }
0x326a   :  { %v3975_v46 = vpop.eup %3974 }
0x326b   :  { %2801 = vrot.lane.b32.xlu0 %v3975_v46, %s4061_s28 }
0x326c   :  { %v3977_v47 = vpop.eup %3976 }
0x326d   :  { %v2782_v48 = vadd.f32 1.0, %v3977_v47 }
0x326f   :  { %3978 = vrcp.f32 %v2782_v48  ;;  %v2794_v54 = vand.u32 2147483648, %v2782_v48  ;;  %vm2788_vm5 = vweird.f32 %v2782_v48  ;;  %v2792_v55 = vand.u32 2147483647, %v2782_v48 }
0x3271   :  { %v2795_v56 = vor.u32 1.1754944e-38, %v2794_v54  ;;  %vm2793_vm7 = vcmp.eq.f32.partialorder %v2792_v55, 8.507059e+37 }
0x3275   :  { %v3979_v49 = vpop.eup %3978 }
0x3276   :  { %v2784_v28 = vmul.f32 %v3979_v49, %v2782_v48  ;;  %vm2789_vm4 = vweird.f32 %v3979_v49 }
0x3277   :  { %vm2790_vm6 = vmor %vm2788_vm5, %vm2789_vm4 }
0x3278   :  { %v2785_v57 = vsub.f32 1.0, %v2784_v28 }
0x327a   :  { %v2786_v53 = vmul.f32 %v3979_v49, %v2785_v57 }
0x327c   :  { %v2787_v10 = vadd.f32 %v3979_v49, %v2786_v53 }
0x327e   :  { %v2791_v24 = vsel %vm2790_vm6, %v3979_v49, %v2787_v10 }
0x327f   :  { %v2796_v35 = vsel %vm2793_vm7, %v2795_v56, %v2791_v24 }
0x3280   :  { %v2799_v1 = vmul.f32 %v2796_v35, %v2745_v38 }
0x32dd   :  { %v2802_v58 = vpop.permute.xlu0 %2801 }
0x32de   :  { %v2804_v42 = vmul.f32 %v2802_v58, %v2796_v35 }
0x32e0   :  { %2806 = vrot.lane.b32.xlu1 %v2804_v42, %s4061_s28 }
0x3352   :  { %v2807_v8 = vpop.permute.xlu1 %2806 }
0x3353   :  { %v2809_v61 = vadd.f32 %v2807_v8, %v2799_v1 }
0x3355   :  { %3980 = vtanh.f32 %v2809_v61 }
0x335b   :  { %v3981_v17 = vpop.eup %3980 }
0x335c   :  { %2812 = vrot.lane.b32.xlu2 %v3981_v17, %s4061_s28 }
0x33b6   :  { %v2813_v62 = vpop.permute.xlu2 %2812 }
0x33b7   :  { %v2815_v29 = vmul.f32 %v2813_v62, %v2796_v35 }
0x33b9   :  { %2817 = vrot.lane.b32.xlu0 %v2815_v29, %s4062_s29 }
0x342b   :  { %v2818_v63 = vpop.permute.xlu0 %2817 }
0x342c   :  { %2820 = vst.msk [vmem:[#allocation5 + $0x48] sm:$0xff] %vm430_vm1, %v2818_v63  ;;  %3757 = vmatmul.msk.f32.vlgmr.msrb.gmra.mxu2 %vm430_vm1, %v2818_v63 }
0x342d   :  { %3091 = vmatpush.msrb.mxu2 %v4950_v13 }
0x342f   :  { %3092 = vmatpush.msrb.mxu2 %v4955_v34 }
0x3431   :  { %3093 = vmatpush.msrb.mxu2 %v4962_v23 }
0x3433   :  { %3094 = vmatpush.msrb.mxu2 %v4969_v6 }
0x34af   :  { %v2840_v40 = vpop.f32.mrf.mxu2 }
0x34b0   :  { %v2841_v50 = vadd.f32 %v4993_v33, %v2840_v40 }
0x34b2   :  { %3982 = vtanh.f32 %v2841_v50  ;;  %v3758_v4 = vmul.f32 -1.442695, %v2841_v50 }
0x34b4   :  { %3984 = vpow2.f32 %v3758_v4 }
0x34b8   :  { %v3983_v2 = vpop.eup %3982 }
0x34b9   :  { %2865 = vrot.lane.b32.xlu1 %v3983_v2, %s4061_s28 }
0x34ba   :  { %v3985_v25 = vpop.eup %3984 }
0x34bb   :  { %v2846_v5 = vadd.f32 1.0, %v3985_v25 }
0x34bd   :  { %3986 = vrcp.f32 %v2846_v5  ;;  %v2858_v12 = vand.u32 2147483648, %v2846_v5  ;;  %vm2852_vm9 = vweird.f32 %v2846_v5  ;;  %v2856_v14 = vand.u32 2147483647, %v2846_v5 }
0x34bf   :  { %v2859_v51 = vor.u32 1.1754944e-38, %v2858_v12  ;;  %vm2857_vm11 = vcmp.eq.f32.partialorder %v2856_v14, 8.507059e+37 }
0x34c3   :  { %v3987_v59 = vpop.eup %3986 }
0x34c4   :  { %v2848_v7 = vmul.f32 %v3987_v59, %v2846_v5  ;;  %vm2853_vm8 = vweird.f32 %v3987_v59 }
0x34c5   :  { %vm2854_vm10 = vmor %vm2852_vm9, %vm2853_vm8 }
0x34c6   :  { %v2849_v9 = vsub.f32 1.0, %v2848_v7 }
0x34c8   :  { %v2850_v11 = vmul.f32 %v3987_v59, %v2849_v9 }
0x34ca   :  { %v2851_v27 = vadd.f32 %v3987_v59, %v2850_v11 }
0x34cc   :  { %v2855_v3 = vsel %vm2854_vm10, %v3987_v59, %v2851_v27 }
0x34cd   :  { %v2860_v15 = vsel %vm2857_vm11, %v2859_v51, %v2855_v3 }
0x34ce   :  { %v2863_v16 = vmul.f32 %v2860_v15, %v2809_v61 }
0x352b   :  { %v2866_v21 = vpop.permute.xlu1 %2865 }
0x352c   :  { %v2868_v60 = vmul.f32 %v2866_v21, %v2860_v15 }
0x352e   :  { %2870 = vrot.lane.b32.xlu2 %v2868_v60, %s4061_s28 }
0x3588   :  { %v2871_v19 = vpop.permute.xlu2 %2870 }
0x3589   :  { %v2873_v20 = vadd.f32 %v2871_v19, %v2863_v16 }
0x358b   :  { %3988 = vtanh.f32 %v2873_v20 }
0x3591   :  { %v3989_v22 = vpop.eup %3988 }
0x3592   :  { %2876 = vrot.lane.b32.xlu0 %v3989_v22, %s4061_s28 }
0x3604   :  { %v2877_v37 = vpop.permute.xlu0 %2876 }
0x3605   :  { %v2879_v31 = vmul.f32 %v2877_v37, %v2860_v15 }
0x3607   :  { %2881 = vrot.lane.b32.xlu1 %v2879_v31, %s4062_s29 }
0x3679   :  { %v2882_v26 = vpop.permute.xlu1 %2881 }
0x367a   :  { %2884 = vst.msk [vmem:[#allocation5 + $0x40] sm:$0xff] %vm430_vm1, %v2882_v26  ;;  %3759 = vmatmul.msk.f32.vlgmr.msra.gmra.mxu3 %vm430_vm1, %v2882_v26 }
0x367b   :  { %3155 = vmatpush.msra.mxu3 %v4950_v13 }
0x367d   :  { %3156 = vmatpush.msra.mxu3 %v4955_v34 }
0x367f   :  { %3157 = vmatpush.msra.mxu3 %v4962_v23 }
0x3681   :  { %3158 = vmatpush.msra.mxu3 %v4969_v6 }
0x36fd   :  { %v2904_v32 = vpop.f32.mrf.mxu3 }
0x36fe   :  { %v2905_v0 = vadd.f32 %v4993_v33, %v2904_v32 }
0x3700   :  { %3990 = vtanh.f32 %v2905_v0  ;;  %v3760_v18 = vmul.f32 -1.442695, %v2905_v0 }
0x3702   :  { %3992 = vpow2.f32 %v3760_v18 }
0x3706   :  { %v3991_v36 = vpop.eup %3990 }
0x3707   :  { %2929 = vrot.lane.b32.xlu2 %v3991_v36, %s4061_s28 }
0x3708   :  { %v3993_v38 = vpop.eup %3992 }
0x3709   :  { %v2910_v52 = vadd.f32 1.0, %v3993_v38 }
0x370b   :  { %3994 = vrcp.f32 %v2910_v52  ;;  %v2922_v46 = vand.u32 2147483648, %v2910_v52  ;;  %vm2916_vm13 = vweird.f32 %v2910_v52  ;;  %v2920_v30 = vand.u32 2147483647, %v2910_v52 }
0x370d   :  { %v2923_v48 = vor.u32 1.1754944e-38, %v2922_v46  ;;  %vm2921_vm15 = vcmp.eq.f32.partialorder %v2920_v30, 8.507059e+37 }
0x3711   :  { %v3995_v39 = vpop.eup %3994 }
0x3712   :  { %v2912_v41 = vmul.f32 %v3995_v39, %v2910_v52  ;;  %vm2917_vm12 = vweird.f32 %v3995_v39 }
0x3713   :  { %vm2918_vm14 = vmor %vm2916_vm13, %vm2917_vm12 }
0x3714   :  { %v2913_v43 = vsub.f32 1.0, %v2912_v41 }
0x3716   :  { %v2914_v44 = vmul.f32 %v3995_v39, %v2913_v43 }
0x3718   :  { %v2915_v45 = vadd.f32 %v3995_v39, %v2914_v44 }
0x371a   :  { %v2919_v47 = vsel %vm2918_vm14, %v3995_v39, %v2915_v45 }
0x371b   :  { %v2924_v28 = vsel %vm2921_vm15, %v2923_v48, %v2919_v47 }
0x371c   :  { %v2927_v53 = vmul.f32 %v2924_v28, %v2873_v20 }
0x3761   :  { %v2930_v49 = vpop.permute.xlu2 %2929 }
0x3762   :  { %v2932_v57 = vmul.f32 %v2930_v49, %v2924_v28 }
0x3764   :  { %2934 = vrot.lane.b32.xlu0 %v2932_v57, %s4061_s28 }
0x37d6   :  { %v2935_v10 = vpop.permute.xlu0 %2934 }
0x37d7   :  { %v2937_v54 = vadd.f32 %v2935_v10, %v2927_v53 }
0x37d9   :  { %3996 = vtanh.f32 %v2937_v54 }
0x37df   :  { %v3997_v55 = vpop.eup %3996 }
0x37e0   :  { %2940 = vrot.lane.b32.xlu1 %v3997_v55, %s4061_s28 }
0x3852   :  { %v2941_v24 = vpop.permute.xlu1 %2940 }
0x3853   :  { %v2943_v56 = vmul.f32 %v2941_v24, %v2924_v28 }
0x3855   :  { %2945 = vrot.lane.b32.xlu2 %v2943_v56, %s4062_s29 }
0x38af   :  { %v2946_v58 = vpop.permute.xlu2 %2945 }
0x38b0   :  { %2948 = vst.msk [vmem:[#allocation5 + $0x38] sm:$0xff] %vm430_vm1, %v2946_v58  ;;  %3761 = vmatmul.msk.f32.vlgmr.msra.gmra.mxu2 %vm430_vm1, %v2946_v58 }
0x38b1   :  { %3219 = vmatpush.msra.mxu2 %v4950_v13 }
0x38b3   :  { %3220 = vmatpush.msra.mxu2 %v4955_v34 }
0x38b5   :  { %3221 = vmatpush.msra.mxu2 %v4962_v23 }
0x38b7   :  { %3222 = vmatpush.msra.mxu2 %v4969_v6 }
0x3933   :  { %v2968_v35 = vpop.f32.mrf.mxu2 }
0x3934   :  { %v2969_v42 = vadd.f32 %v4993_v33, %v2968_v35 }
0x3936   :  { %3998 = vtanh.f32 %v2969_v42  ;;  %v3762_v8 = vmul.f32 -1.442695, %v2969_v42 }
0x3938   :  { %4000 = vpow2.f32 %v3762_v8 }
0x393c   :  { %v3999_v1 = vpop.eup %3998 }
0x393d   :  { %2993 = vrot.lane.b32.xlu0 %v3999_v1, %s4061_s28 }
0x393e   :  { %v4001_v61 = vpop.eup %4000 }
0x393f   :  { %v2974_v17 = vadd.f32 1.0, %v4001_v61 }
0x3941   :  { %4002 = vrcp.f32 %v2974_v17  ;;  %v2986_v2 = vand.u32 2147483648, %v2974_v17  ;;  %vm2980_vm2 = vweird.f32 %v2974_v17  ;;  %v2984_v4 = vand.u32 2147483647, %v2974_v17 }
0x3943   :  { %v2987_v5 = vor.u32 1.1754944e-38, %v2986_v2  ;;  %vm2985_vm5 = vcmp.eq.f32.partialorder %v2984_v4, 8.507059e+37 }
0x3947   :  { %v4003_v62 = vpop.eup %4002 }
0x3948   :  { %v2976_v29 = vmul.f32 %v4003_v62, %v2974_v17  ;;  %vm2981_vm0 = vweird.f32 %v4003_v62 }
0x3949   :  { %vm2982_vm4 = vmor %vm2980_vm2, %vm2981_vm0 }
0x394a   :  { %v2977_v63 = vsub.f32 1.0, %v2976_v29 }
0x394c   :  { %v2978_v40 = vmul.f32 %v4003_v62, %v2977_v63 }
0x394e   :  { %v2979_v50 = vadd.f32 %v4003_v62, %v2978_v40 }
0x3950   :  { %v2983_v25 = vsel %vm2982_vm4, %v4003_v62, %v2979_v50 }
0x3951   :  { %v2988_v7 = vsel %vm2985_vm5, %v2987_v5, %v2983_v25 }
0x3952   :  { %v2991_v11 = vmul.f32 %v2988_v7, %v2937_v54 }
0x39af   :  { %v2994_v59 = vpop.permute.xlu0 %2993 }
0x39b0   :  { %v2996_v9 = vmul.f32 %v2994_v59, %v2988_v7 }
0x39b2   :  { %2998 = vrot.lane.b32.xlu1 %v2996_v9, %s4061_s28 }
0x3a24   :  { %v2999_v27 = vpop.permute.xlu1 %2998 }
0x3a25   :  { %v3001_v12 = vadd.f32 %v2999_v27, %v2991_v11 }
0x3a27   :  { %4004 = vtanh.f32 %v3001_v12 }
0x3a2d   :  { %v4005_v14 = vpop.eup %4004 }
0x3a2e   :  { %3004 = vrot.lane.b32.xlu2 %v4005_v14, %s4061_s28 }
0x3a88   :  { %v3005_v3 = vpop.permute.xlu2 %3004 }
0x3a89   :  { %v3007_v51 = vmul.f32 %v3005_v3, %v2988_v7 }
0x3a8b   :  { %3009 = vrot.lane.b32.xlu0 %v3007_v51, %s4062_s29 }
0x3afd   :  { %v3010_v21 = vpop.permute.xlu0 %3009 }
0x3afe   :  { %3012 = vst.msk [vmem:[#allocation5 + $0x30] sm:$0xff] %vm430_vm1, %v3010_v21  ;;  %3763 = vmatmul.msk.f32.vlgmr.msrb.gmra.mxu3 %vm430_vm1, %v3010_v21 }
0x3aff   :  { %3283 = vmatpush.msrb.mxu3 %v4950_v13 }
0x3b01   :  { %3284 = vmatpush.msrb.mxu3 %v4955_v34 }
0x3b03   :  { %3285 = vmatpush.msrb.mxu3 %v4962_v23 }
0x3b05   :  { %3286 = vmatpush.msrb.mxu3 %v4969_v6 }
0x3b81   :  { %v3032_v15 = vpop.f32.mrf.mxu3 }
0x3b82   :  { %v3033_v60 = vadd.f32 %v4993_v33, %v3032_v15 }
0x3b84   :  { %4006 = vtanh.f32 %v3033_v60  ;;  %v3764_v19 = vmul.f32 -1.442695, %v3033_v60 }
0x3b86   :  { %4008 = vpow2.f32 %v3764_v19 }
0x3b8a   :  { %v4007_v16 = vpop.eup %4006 }
0x3b8b   :  { %3057 = vrot.lane.b32.xlu1 %v4007_v16, %s4061_s28 }
0x3b8c   :  { %v4009_v20 = vpop.eup %4008 }
0x3b8d   :  { %v3038_v22 = vadd.f32 1.0, %v4009_v20 }
0x3b8f   :  { %4010 = vrcp.f32 %v3038_v22  ;;  %v3050_v36 = vand.u32 2147483648, %v3038_v22  ;;  %vm3044_vm7 = vweird.f32 %v3038_v22  ;;  %v3048_v18 = vand.u32 2147483647, %v3038_v22 }
0x3b91   :  { %v3051_v52 = vor.u32 1.1754944e-38, %v3050_v36  ;;  %vm3049_vm9 = vcmp.eq.f32.partialorder %v3048_v18, 8.507059e+37 }
0x3b95   :  { %v4011_v37 = vpop.eup %4010 }
0x3b96   :  { %v3040_v31 = vmul.f32 %v4011_v37, %v3038_v22  ;;  %vm3045_vm6 = vweird.f32 %v4011_v37 }
0x3b97   :  { %vm3046_vm8 = vmor %vm3044_vm7, %vm3045_vm6 }
0x3b98   :  { %v3041_v26 = vsub.f32 1.0, %v3040_v31 }
0x3b9a   :  { %v3042_v32 = vmul.f32 %v4011_v37, %v3041_v26 }
0x3b9c   :  { %v3043_v0 = vadd.f32 %v4011_v37, %v3042_v32 }
0x3b9e   :  { %v3047_v38 = vsel %vm3046_vm8, %v4011_v37, %v3043_v0 }
0x3b9f   :  { %v3052_v41 = vsel %vm3049_vm9, %v3051_v52, %v3047_v38 }
0x3ba0   :  { %v3055_v44 = vmul.f32 %v3052_v41, %v3001_v12 }
0x3bfd   :  { %v3058_v39 = vpop.permute.xlu1 %3057 }
0x3bfe   :  { %v3060_v43 = vmul.f32 %v3058_v39, %v3052_v41 }
0x3c00   :  { %3062 = vrot.lane.b32.xlu2 %v3060_v43, %s4061_s28 }
0x3c5a   :  { %v3063_v45 = vpop.permute.xlu2 %3062 }
0x3c5b   :  { %v3065_v46 = vadd.f32 %v3063_v45, %v3055_v44 }
0x3c5d   :  { %4012 = vtanh.f32 %v3065_v46 }
0x3c63   :  { %v4013_v30 = vpop.eup %4012 }
0x3c64   :  { %3068 = vrot.lane.b32.xlu0 %v4013_v30, %s4061_s28 }
0x3cd6   :  { %v3069_v47 = vpop.permute.xlu0 %3068 }
0x3cd7   :  { %v3071_v48 = vmul.f32 %v3069_v47, %v3052_v41 }
0x3cd9   :  { %3073 = vrot.lane.b32.xlu1 %v3071_v48, %s4062_s29 }
0x3d4b   :  { %v3074_v49 = vpop.permute.xlu1 %3073 }
0x3d4c   :  { %3076 = vst.msk [vmem:[#allocation5 + $0x28] sm:$0xff] %vm430_vm1, %v3074_v49  ;;  %3765 = vmatmul.msk.f32.vlgmr.msrb.gmra.mxu2 %vm430_vm1, %v3074_v49 }
0x3d4d   :  { %3347 = vmatpush.msrb.mxu2 %v4950_v13 }
0x3d4f   :  { %3348 = vmatpush.msrb.mxu2 %v4955_v34 }
0x3d51   :  { %3349 = vmatpush.msrb.mxu2 %v4962_v23 }
0x3d53   :  { %3350 = vmatpush.msrb.mxu2 %v4969_v6 }
0x3dcf   :  { %v3096_v28 = vpop.f32.mrf.mxu2 }
0x3dd0   :  { %v3097_v57 = vadd.f32 %v4993_v33, %v3096_v28 }
0x3dd2   :  { %4014 = vtanh.f32 %v3097_v57  ;;  %v3766_v10 = vmul.f32 -1.442695, %v3097_v57 }
0x3dd4   :  { %4016 = vpow2.f32 %v3766_v10 }
0x3dd8   :  { %v4015_v53 = vpop.eup %4014 }
0x3dd9   :  { %3121 = vrot.lane.b32.xlu2 %v4015_v53, %s4061_s28 }
0x3dda   :  { %v4017_v54 = vpop.eup %4016 }
0x3ddb   :  { %v3102_v55 = vadd.f32 1.0, %v4017_v54 }
0x3ddd   :  { %4018 = vrcp.f32 %v3102_v55  ;;  %v3114_v23 = vand.u32 2147483648, %v3102_v55  ;;  %vm3108_vm11 = vweird.f32 %v3102_v55  ;;  %v3112_v6 = vand.u32 2147483647, %v3102_v55 }
0x3ddf   :  { %v3115_v42 = vor.u32 1.1754944e-38, %v3114_v23  ;;  %vm3113_vm13 = vcmp.eq.f32.partialorder %v3112_v6, 8.507059e+37  ;;  %v4059_v6 = vld [vmem:[%s5247_s11] ss:$0 sm:$0xff] }
0x3de3   :  { %v4019_v24 = vpop.eup %4018 }
0x3de4   :  { %v3104_v13 = vmul.f32 %v4019_v24, %v3102_v55  ;;  %vm3109_vm10 = vweird.f32 %v4019_v24 }
0x3de5   :  { %vm3110_vm12 = vmor %vm3108_vm11, %vm3109_vm10 }
0x3de6   :  { %v3105_v56 = vsub.f32 1.0, %v3104_v13 }
0x3de8   :  { %v3106_v34 = vmul.f32 %v4019_v24, %v3105_v56 }
0x3dea   :  { %v3107_v58 = vadd.f32 %v4019_v24, %v3106_v34 }
0x3dec   :  { %v3111_v35 = vsel %vm3110_vm12, %v4019_v24, %v3107_v58 }
0x3ded   :  { %v3116_v8 = vsel %vm3113_vm13, %v3115_v42, %v3111_v35 }
0x3dee   :  { %v3119_v17 = vmul.f32 %v3116_v8, %v3065_v46 }
0x3e33   :  { %v3122_v1 = vpop.permute.xlu2 %3121 }
0x3e34   :  { %v3124_v61 = vmul.f32 %v3122_v1, %v3116_v8 }
0x3e36   :  { %3126 = vrot.lane.b32.xlu0 %v3124_v61, %s4061_s28 }
0x3ea8   :  { %v3127_v62 = vpop.permute.xlu0 %3126 }
0x3ea9   :  { %v3129_v29 = vadd.f32 %v3127_v62, %v3119_v17 }
0x3eab   :  { %4020 = vtanh.f32 %v3129_v29 }
0x3eb1   :  { %v4021_v63 = vpop.eup %4020 }
0x3eb2   :  { %3132 = vrot.lane.b32.xlu1 %v4021_v63, %s4061_s28 }
0x3f24   :  { %v3133_v40 = vpop.permute.xlu1 %3132 }
0x3f25   :  { %v3135_v50 = vmul.f32 %v3133_v40, %v3116_v8 }
0x3f27   :  { %3137 = vrot.lane.b32.xlu2 %v3135_v50, %s4062_s29 }
0x3f81   :  { %v3138_v2 = vpop.permute.xlu2 %3137 }
0x3f82   :  { %3140 = vst.msk [vmem:[#allocation5 + $0x20] sm:$0xff] %vm430_vm1, %v3138_v2  ;;  %3767 = vmatmul.msk.f32.vlgmr.msra.gmra.mxu3 %vm430_vm1, %v3138_v2 }
0x4005   :  { %v3160_v4 = vpop.f32.mrf.mxu3 }
0x4006   :  { %v3161_v25 = vadd.f32 %v4993_v33, %v3160_v4 }
0x4008   :  { %4022 = vtanh.f32 %v3161_v25  ;;  %v3768_v59 = vmul.f32 -1.442695, %v3161_v25 }
0x400a   :  { %4024 = vpow2.f32 %v3768_v59 }
0x400e   :  { %v4023_v5 = vpop.eup %4022 }
0x400f   :  { %3185 = vrot.lane.b32.xlu0 %v4023_v5, %s4061_s28 }
0x4010   :  { %v4025_v7 = vpop.eup %4024 }
0x4011   :  { %v3166_v9 = vadd.f32 1.0, %v4025_v7 }
0x4013   :  { %4026 = vrcp.f32 %v3166_v9  ;;  %v3178_v51 = vand.u32 2147483648, %v3166_v9  ;;  %vm3172_vm15 = vweird.f32 %v3166_v9  ;;  %v3176_v21 = vand.u32 2147483647, %v3166_v9 }
0x4015   :  { %v3179_v60 = vor.u32 1.1754944e-38, %v3178_v51  ;;  %vm3177_vm2 = vcmp.eq.f32.partialorder %v3176_v21, 8.507059e+37 }
0x4019   :  { %v4027_v11 = vpop.eup %4026 }
0x401a   :  { %v3168_v27 = vmul.f32 %v4027_v11, %v3166_v9  ;;  %vm3173_vm14 = vweird.f32 %v4027_v11 }
0x401b   :  { %vm3174_vm0 = vmor %vm3172_vm15, %vm3173_vm14 }
0x401c   :  { %v3169_v12 = vsub.f32 1.0, %v3168_v27 }
0x401e   :  { %v3170_v14 = vmul.f32 %v4027_v11, %v3169_v12 }
0x4020   :  { %v3171_v3 = vadd.f32 %v4027_v11, %v3170_v14 }
0x4022   :  { %v3175_v15 = vsel %vm3174_vm0, %v4027_v11, %v3171_v3 }
0x4023   :  { %v3180_v19 = vsel %vm3177_vm2, %v3179_v60, %v3175_v15 }
0x4024   :  { %v3183_v22 = vmul.f32 %v3180_v19, %v3129_v29 }
0x4081   :  { %v3186_v16 = vpop.permute.xlu0 %3185 }
0x4082   :  { %v3188_v20 = vmul.f32 %v3186_v16, %v3180_v19 }
0x4084   :  { %3190 = vrot.lane.b32.xlu1 %v3188_v20, %s4061_s28 }
0x40f6   :  { %v3191_v37 = vpop.permute.xlu1 %3190 }
0x40f7   :  { %v3193_v31 = vadd.f32 %v3191_v37, %v3183_v22 }
0x40f9   :  { %4028 = vtanh.f32 %v3193_v31 }
0x40ff   :  { %v4029_v26 = vpop.eup %4028 }
0x4100   :  { %3196 = vrot.lane.b32.xlu2 %v4029_v26, %s4061_s28 }
0x415a   :  { %v3197_v32 = vpop.permute.xlu2 %3196 }
0x415b   :  { %v3199_v0 = vmul.f32 %v3197_v32, %v3180_v19 }
0x415d   :  { %3201 = vrot.lane.b32.xlu0 %v3199_v0, %s4062_s29 }
0x41cf   :  { %v3202_v36 = vpop.permute.xlu0 %3201 }
0x41d0   :  { %3204 = vst.msk [vmem:[#allocation5 + $0x18] sm:$0xff] %vm430_vm1, %v3202_v36  ;;  %3769 = vmatmul.msk.f32.vlgmr.msra.gmra.mxu2 %vm430_vm1, %v3202_v36 }
0x4253   :  { %v3224_v18 = vpop.f32.mrf.mxu2 }
0x4254   :  { %v3225_v38 = vadd.f32 %v4993_v33, %v3224_v18 }
0x4256   :  { %4030 = vtanh.f32 %v3225_v38  ;;  %v3770_v39 = vmul.f32 -1.442695, %v3225_v38 }
0x4258   :  { %4032 = vpow2.f32 %v3770_v39 }
0x425c   :  { %v4031_v52 = vpop.eup %4030 }
0x425d   :  { %3249 = vrot.lane.b32.xlu1 %v4031_v52, %s4061_s28 }
0x425e   :  { %v4033_v41 = vpop.eup %4032 }
0x425f   :  { %v3230_v43 = vadd.f32 1.0, %v4033_v41 }
0x4261   :  { %4034 = vrcp.f32 %v3230_v43  ;;  %v3242_v48 = vand.u32 2147483648, %v3230_v43  ;;  %vm3236_vm5 = vweird.f32 %v3230_v43  ;;  %v3240_v49 = vand.u32 2147483647, %v3230_v43 }
0x4263   :  { %v3243_v28 = vor.u32 1.1754944e-38, %v3242_v48  ;;  %vm3241_vm7 = vcmp.eq.f32.partialorder %v3240_v49, 8.507059e+37  ;;  %v3416_v48 = vld [vmem:[%s5248_s12 + $0x18] sm:$0xff]  ;;  %v3415_v49 = vld [vmem:[%s5248_s12 + $0x10] sm:$0xff] }
0x4264   :  { %3481 = vmatpush.msra.mxu3 %v3416_v48 }
0x4266   :  { %3482 = vmatpush.msra.mxu3 %v3415_v49 }
0x4267   :  { %v4035_v44 = vpop.eup %4034 }
0x4268   :  { %v3232_v45 = vmul.f32 %v4035_v44, %v3230_v43  ;;  %vm3237_vm4 = vweird.f32 %v4035_v44 }
0x4269   :  { %vm3238_vm6 = vmor %vm3236_vm5, %vm3237_vm4 }
0x426a   :  { %v3233_v46 = vsub.f32 1.0, %v3232_v45 }
0x426c   :  { %v3234_v30 = vmul.f32 %v4035_v44, %v3233_v46 }
0x426e   :  { %v3235_v47 = vadd.f32 %v4035_v44, %v3234_v30 }
0x4270   :  { %v3239_v33 = vsel %vm3238_vm6, %v4035_v44, %v3235_v47 }
0x4271   :  { %v3244_v53 = vsel %vm3241_vm7, %v3243_v28, %v3239_v33  ;;  %v3414_v33 = vld [vmem:[%s5248_s12 + $0x8] sm:$0xff]  ;;  %v3413_v28 = vld [vmem:[%s5248_s12] sm:$0xff] }
0x4272   :  { %v3247_v54 = vmul.f32 %v3244_v53, %v3193_v31  ;;  %3483 = vmatpush.msra.mxu3 %v3414_v33 }
0x4274   :  { %3484 = vmatpush.msra.mxu3 %v3413_v28 }
0x42cf   :  { %v3250_v57 = vpop.permute.xlu1 %3249 }
0x42d0   :  { %v3252_v10 = vmul.f32 %v3250_v57, %v3244_v53 }
0x42d2   :  { %3254 = vrot.lane.b32.xlu2 %v3252_v10, %s4061_s28 }
0x432c   :  { %v3255_v55 = vpop.permute.xlu2 %3254 }
0x432d   :  { %v3257_v24 = vadd.f32 %v3255_v55, %v3247_v54  ;;  %v3400_v55 = vld [vmem:[#allocation5 + $0x18] sm:$0xff] }
0x432f   :  { %4036 = vtanh.f32 %v3257_v24 }
0x4335   :  { %v4037_v13 = vpop.eup %4036 }
0x4336   :  { %3260 = vrot.lane.b32.xlu0 %v4037_v13, %s4061_s28  ;;  %v3402_v13 = vld [vmem:[#allocation5 + $0x28] sm:$0xff] }
0x43a8   :  { %v3261_v56 = vpop.permute.xlu0 %3260 }
0x43a9   :  { %v3263_v34 = vmul.f32 %v3261_v56, %v3244_v53  ;;  %v3403_v56 = vld [vmem:[#allocation5 + $0x30] sm:$0xff] }
0x43ab   :  { %3265 = vrot.lane.b32.xlu1 %v3263_v34, %s4062_s29  ;;  %v3404_v34 = vld [vmem:[#allocation5 + $0x38] sm:$0xff] }
0x441d   :  { %v3266_v58 = vpop.permute.xlu1 %3265 }
0x441e   :  { %3268 = vst.msk [vmem:[#allocation5 + $0x10] sm:$0xff] %vm430_vm1, %v3266_v58  ;;  %3771 = vmatmul.msk.f32.vlgmr.msrb.gmra.mxu3 %vm430_vm1, %v3266_v58  ;;  %v3405_v58 = vld [vmem:[#allocation5 + $0x40] sm:$0xff] }
0x4425   :  { %v3399_v54 = vld [vmem:[#allocation5 + $0x10] sm:$0xff] }
0x44a1   :  { %v3288_v23 = vpop.f32.mrf.mxu3 }
0x44a2   :  { %v3289_v35 = vadd.f32 %v4059_v6, %v3288_v23  ;;  %v3406_v23 = vld [vmem:[#allocation5 + $0x48] sm:$0xff] }
0x44a4   :  { %4038 = vtanh.f32 %v3289_v35  ;;  %v3772_v1 = vmul.f32 -1.442695, %v3289_v35  ;;  %v3408_v35 = vld [vmem:[#allocation5 + $0x58] sm:$0xff] }
0x44a6   :  { %4040 = vpow2.f32 %v3772_v1  ;;  %v3410_v1 = vld [vmem:[#allocation5 + $0x68] sm:$0xff] }
0x44aa   :  { %v4039_v42 = vpop.eup %4038 }
0x44ab   :  { %3313 = vrot.lane.b32.xlu2 %v4039_v42, %s4061_s28  ;;  %v3409_v42 = vld [vmem:[#allocation5 + $0x60] sm:$0xff] }
0x44ac   :  { %v4041_v8 = vpop.eup %4040 }
0x44ad   :  { %v3294_v61 = vadd.f32 1.0, %v4041_v8  ;;  %v3411_v8 = vld [vmem:[#allocation5 + $0x70] sm:$0xff] }
0x44af   :  { %4042 = vrcp.f32 %v3294_v61  ;;  %v3306_v50 = vand.u32 2147483648, %v3294_v61  ;;  %vm3300_vm9 = vweird.f32 %v3294_v61  ;;  %v3304_v2 = vand.u32 2147483647, %v3294_v61 }
0x44b1   :  { %v3307_v25 = vor.u32 1.1754944e-38, %v3306_v50  ;;  %vm3305_vm11 = vcmp.eq.f32.partialorder %v3304_v2, 8.507059e+37 }
0x44b5   :  { %v4043_v17 = vpop.eup %4042 }
0x44b6   :  { %v3296_v62 = vmul.f32 %v4043_v17, %v3294_v61  ;;  %vm3301_vm8 = vweird.f32 %v4043_v17  ;;  %v3412_v61 = vld [vmem:[#allocation5 + $0x78] sm:$0xff] }
0x44b7   :  { %vm3302_vm10 = vmor %vm3300_vm9, %vm3301_vm8 }
0x44b8   :  { %v3297_v29 = vsub.f32 1.0, %v3296_v62 }
0x44ba   :  { %v3298_v63 = vmul.f32 %v4043_v17, %v3297_v29 }
0x44bc   :  { %v3299_v40 = vadd.f32 %v4043_v17, %v3298_v63 }
0x44be   :  { %v3303_v4 = vsel %vm3302_vm10, %v4043_v17, %v3299_v40  ;;  %v3805_v17 = vld [vmem:[%s5249_s13] ss:$0 sm:$0xff] }
0x44bf   :  { %v3308_v59 = vsel %vm3305_vm11, %v3307_v25, %v3303_v4 }
0x44c0   :  { %v3311_v9 = vmul.f32 %v3308_v59, %v3257_v24  ;;  %v3401_v24 = vld [vmem:[#allocation5 + $0x20] sm:$0xff] }
0x4505   :  { %v3314_v5 = vpop.permute.xlu2 %3313 }
0x4506   :  { %v3316_v7 = vmul.f32 %v3314_v5, %v3308_v59 }
0x4508   :  { %3318 = vrot.lane.b32.xlu0 %v3316_v7, %s4061_s28 }
0x457a   :  { %v3319_v11 = vpop.permute.xlu0 %3318 }
0x457b   :  { %v3321_v27 = vadd.f32 %v3319_v11, %v3311_v9 }
0x457d   :  { %4044 = vtanh.f32 %v3321_v27 }
0x4583   :  { %v4045_v12 = vpop.eup %4044 }
0x4584   :  { %3324 = vrot.lane.b32.xlu1 %v4045_v12, %s4061_s28 }
0x45f6   :  { %v3325_v14 = vpop.permute.xlu1 %3324 }
0x45f7   :  { %v3327_v3 = vmul.f32 %v3325_v14, %v3308_v59 }
0x45f9   :  { %3329 = vrot.lane.b32.xlu2 %v3327_v3, %s4062_s29 }
0x4653   :  { %v3330_v51 = vpop.permute.xlu2 %3329 }
0x4654   :  { %3332 = vst.msk [vmem:[#allocation5 + $0x8] sm:$0xff] %vm430_vm1, %v3330_v51  ;;  %3773 = vmatmul.msk.f32.vlgmr.msrb.gmra.mxu2 %vm430_vm1, %v3330_v51 }
0x465b   :  { %v3398_v10 = vld [vmem:[#allocation5 + $0x8] sm:$0xff] }
0x46d7   :  { %v3352_v21 = vpop.f32.mrf.mxu2 }
0x46d8   :  { %v3353_v15 = vadd.f32 %v4059_v6, %v3352_v21  ;;  %v3407_v6 = vld [vmem:[#allocation5 + $0x50] sm:$0xff] }
0x46da   :  { %4046 = vtanh.f32 %v3353_v15  ;;  %v3774_v16 = vmul.f32 -1.442695, %v3353_v15 }
0x46dc   :  { %4048 = vpow2.f32 %v3774_v16 }
0x46e0   :  { %v4047_v60 = vpop.eup %4046 }
0x46e1   :  { %3377 = vrot.lane.b32.xlu0 %v4047_v60, %s4061_s28 }
0x46e2   :  { %v4049_v19 = vpop.eup %4048 }
0x46e3   :  { %v3358_v20 = vadd.f32 1.0, %v4049_v19 }
0x46e5   :  { %4050 = vrcp.f32 %v3358_v20  ;;  %v3370_v0 = vand.u32 2147483648, %v3358_v20  ;;  %vm3364_vm13 = vweird.f32 %v3358_v20  ;;  %v3368_v36 = vand.u32 2147483647, %v3358_v20 }
0x46e7   :  { %v3371_v38 = vor.u32 1.1754944e-38, %v3370_v0  ;;  %vm3369_vm15 = vcmp.eq.f32.partialorder %v3368_v36, 8.507059e+37 }
0x46eb   :  { %v4051_v22 = vpop.eup %4050 }
0x46ec   :  { %v3360_v37 = vmul.f32 %v4051_v22, %v3358_v20  ;;  %vm3365_vm12 = vweird.f32 %v4051_v22 }
0x46ed   :  { %vm3366_vm14 = vmor %vm3364_vm13, %vm3365_vm12 }
0x46ee   :  { %v3361_v31 = vsub.f32 1.0, %v3360_v37 }
0x46f0   :  { %v3362_v26 = vmul.f32 %v4051_v22, %v3361_v31 }
0x46f2   :  { %v3363_v32 = vadd.f32 %v4051_v22, %v3362_v26 }
0x46f4   :  { %v3367_v18 = vsel %vm3366_vm14, %v4051_v22, %v3363_v32 }
0x46f5   :  { %v3372_v39 = vsel %vm3369_vm15, %v3371_v38, %v3367_v18 }
0x46f6   :  { %v3375_v43 = vmul.f32 %v3372_v39, %v3321_v27 }
0x4753   :  { %v3378_v52 = vpop.permute.xlu0 %3377 }
0x4754   :  { %v3380_v41 = vmul.f32 %v3378_v52, %v3372_v39 }
0x4756   :  { %3382 = vrot.lane.b32.xlu1 %v3380_v41, %s4061_s28 }
0x47c8   :  { %v3383_v44 = vpop.permute.xlu1 %3382 }
0x47c9   :  { %v3385_v45 = vadd.f32 %v3383_v44, %v3375_v43 }
0x47cb   :  { %4052 = vtanh.f32 %v3385_v45 }
0x47d1   :  { %v4053_v46 = vpop.eup %4052 }
0x47d2   :  { %3388 = vrot.lane.b32.xlu2 %v4053_v46, %s4061_s28 }
0x482c   :  { %v3389_v30 = vpop.permute.xlu2 %3388 }
0x482d   :  { %v3391_v47 = vmul.f32 %v3389_v30, %v3372_v39 }
0x482f   :  { %3393 = vrot.lane.b32.xlu0 %v3391_v47, %s4062_s29 }
0x48a1   :  { %v3394_v57 = vpop.permute.xlu0 %3393 }
0x48a2   :  { %3396 = vst.msk [vmem:[#allocation5] sm:$0xff] %vm430_vm1, %v3394_v57 }
0x48a9   :  { %v3397_v53 = vld [vmem:[#allocation5] sm:$0xff] }
0x48aa   :  { %3775 = vmatmul.msk.f32.vlgmr.msra.gmra.mxu3 %vm430_vm1, %v3397_v53 }
0x48b2   :  { %3776 = vmatmul.msk.f32.gmra.mxu3 %vm430_vm1, %v3398_v10 }
0x48ba   :  { %3777 = vmatmul.msk.f32.gmra.mxu3 %vm430_vm1, %v3399_v54 }
0x48c2   :  { %3778 = vmatmul.msk.f32.gmra.mxu3 %vm430_vm1, %v3400_v55 }
0x48ca   :  { %3779 = vmatmul.msk.f32.gmra.mxu3 %vm430_vm1, %v3401_v24 }
0x48d2   :  { %3780 = vmatmul.msk.f32.gmra.mxu3 %vm430_vm1, %v3402_v13 }
0x48da   :  { %3781 = vmatmul.msk.f32.gmra.mxu3 %vm430_vm1, %v3403_v56 }
0x48e2   :  { %3782 = vmatmul.msk.f32.gmra.mxu3 %vm430_vm1, %v3404_v34 }
0x48ea   :  { %3783 = vmatmul.msk.f32.gmra.mxu3 %vm430_vm1, %v3405_v58 }
0x48f2   :  { %3784 = vmatmul.msk.f32.gmra.mxu3 %vm430_vm1, %v3406_v23 }
0x48fa   :  { %3785 = vmatmul.msk.f32.gmra.mxu3 %vm430_vm1, %v3407_v6 }
0x4902   :  { %3786 = vmatmul.msk.f32.gmra.mxu3 %vm430_vm1, %v3408_v35 }
0x490a   :  { %3787 = vmatmul.msk.f32.gmra.mxu3 %vm430_vm1, %v3409_v42 }
0x4912   :  { %3788 = vmatmul.msk.f32.gmra.mxu3 %vm430_vm1, %v3410_v1 }
0x491a   :  { %3789 = vmatmul.msk.f32.gmra.mxu3 %vm430_vm1, %v3411_v8 }
0x4922   :  { %3790 = vmatmul.msk.f32.gmra.mxu3 %vm430_vm1, %v3412_v61 }
0x492d   :  { %v3486_v62 = vpop.f32.mrf.mxu3 }
0x492e   :  { %v3487_v29 = vadd.f32 %v3805_v17, %v3486_v62 }
0x4930   :  { %3534 = vst.msk [vmem:[%s5250_s14] sm:$0xff] %vm1268_vm3, %v3487_v29 }
0x4935   :  { %v3489_v63 = vpop.f32.mrf.mxu3 }
0x4936   :  { %v3490_v40 = vadd.f32 %v3805_v17, %v3489_v63 }
0x4938   :  { %3535 = vst.msk [vmem:[%s5250_s14 + $0x8] sm:$0xff] %vm1268_vm3, %v3490_v40 }
0x493d   :  { %v3492_v50 = vpop.f32.mrf.mxu3 }
0x493e   :  { %v3493_v2 = vadd.f32 %v3805_v17, %v3492_v50 }
0x4940   :  { %3536 = vst.msk [vmem:[%s5250_s14 + $0x10] sm:$0xff] %vm1268_vm3, %v3493_v2 }
0x4945   :  { %v3495_v4 = vpop.f32.mrf.mxu3 }
0x4946   :  { %v3496_v25 = vadd.f32 %v3805_v17, %v3495_v4 }
0x4948   :  { %3537 = vst.msk [vmem:[%s5250_s14 + $0x18] sm:$0xff] %vm1268_vm3, %v3496_v25 }
0x494d   :  { %v3498_v5 = vpop.f32.mrf.mxu3 }
0x494e   :  { %v3499_v59 = vadd.f32 %v3805_v17, %v3498_v5 }
0x4950   :  { %3538 = vst.msk [vmem:[%s5250_s14 + $0x20] sm:$0xff] %vm1268_vm3, %v3499_v59 }
0x4955   :  { %v3501_v7 = vpop.f32.mrf.mxu3 }
0x4956   :  { %v3502_v9 = vadd.f32 %v3805_v17, %v3501_v7 }
0x4958   :  { %3539 = vst.msk [vmem:[%s5250_s14 + $0x28] sm:$0xff] %vm1268_vm3, %v3502_v9 }
0x495d   :  { %v3504_v11 = vpop.f32.mrf.mxu3 }
0x495e   :  { %v3505_v27 = vadd.f32 %v3805_v17, %v3504_v11 }
0x4960   :  { %3540 = vst.msk [vmem:[%s5250_s14 + $0x30] sm:$0xff] %vm1268_vm3, %v3505_v27 }
0x4965   :  { %v3507_v12 = vpop.f32.mrf.mxu3 }
0x4966   :  { %v3508_v14 = vadd.f32 %v3805_v17, %v3507_v12 }
0x4968   :  { %3541 = vst.msk [vmem:[%s5250_s14 + $0x38] sm:$0xff] %vm1268_vm3, %v3508_v14 }
0x496d   :  { %v3510_v3 = vpop.f32.mrf.mxu3 }
0x496e   :  { %v3511_v51 = vadd.f32 %v3805_v17, %v3510_v3 }
0x4970   :  { %3542 = vst.msk [vmem:[%s5250_s14 + $0x40] sm:$0xff] %vm1268_vm3, %v3511_v51 }
0x4975   :  { %v3513_v21 = vpop.f32.mrf.mxu3 }
0x4976   :  { %v3514_v15 = vadd.f32 %v3805_v17, %v3513_v21 }
0x4978   :  { %3543 = vst.msk [vmem:[%s5250_s14 + $0x48] sm:$0xff] %vm1268_vm3, %v3514_v15 }
0x497d   :  { %v3516_v60 = vpop.f32.mrf.mxu3 }
0x497e   :  { %v3517_v16 = vadd.f32 %v3805_v17, %v3516_v60 }
0x4980   :  { %3544 = vst.msk [vmem:[%s5250_s14 + $0x50] sm:$0xff] %vm1268_vm3, %v3517_v16 }
0x4985   :  { %v3519_v19 = vpop.f32.mrf.mxu3 }
0x4986   :  { %v3520_v20 = vadd.f32 %v3805_v17, %v3519_v19 }
0x4988   :  { %3545 = vst.msk [vmem:[%s5250_s14 + $0x58] sm:$0xff] %vm1268_vm3, %v3520_v20 }
0x498d   :  { %v3522_v22 = vpop.f32.mrf.mxu3 }
0x498e   :  { %v3523_v37 = vadd.f32 %v3805_v17, %v3522_v22 }
0x4990   :  { %3546 = vst.msk [vmem:[%s5250_s14 + $0x60] sm:$0xff] %vm1268_vm3, %v3523_v37 }
0x4995   :  { %v3525_v31 = vpop.f32.mrf.mxu3 }
0x4996   :  { %v3526_v26 = vadd.f32 %v3805_v17, %v3525_v31 }
0x4998   :  { %3547 = vst.msk [vmem:[%s5250_s14 + $0x68] sm:$0xff] %vm1268_vm3, %v3526_v26 }
0x499d   :  { %v3528_v32 = vpop.f32.mrf.mxu3 }
0x499e   :  { %v3529_v0 = vadd.f32 %v3805_v17, %v3528_v32 }
0x49a0   :  { %3548 = vst.msk [vmem:[%s5250_s14 + $0x70] sm:$0xff] %vm1268_vm3, %v3529_v0 }
0x49a5   :  { %v3531_v36 = vpop.f32.mrf.mxu3 }
0x49a6   :  { %v3532_v18 = vadd.f32 %v3805_v17, %v3531_v36 }
0x49a8   :  { %3549 = vst.msk [vmem:[%s5250_s14 + $0x78] sm:$0xff] %vm1268_vm3, %v3532_v18 }

</bundles_post_ra>
